<compile_context>
chip_gen: v6e
topology: v6e:2x2x1
jax: 0.10.0
libtpu: 0.0.40
codegen_flags: <defaults>
</compile_context>

<pallas_src>
import functools

import numpy as np

import jax
import jax.numpy as jnp
from jax.experimental import pallas as pl
from jax.experimental.pallas import tpu as pltpu

LEAKY_SLOPE = 0.01   # F.leaky_relu default
BN_EPS = 1e-5        # nn.BatchNorm2d default


# ------------------------------ Pallas kernel ------------------------------- #

def _fused_cnn_kernel(p1_ref, w1_ref, w2_ref, w3_ref, w4_ref,
                      bn1_ref, bn2_ref, bn3_ref, bn4_ref,
                      s2_ref, s3_ref, s4_ref, wfc_ref, bfc_ref,
                      out_ref, *, pool_rows):
    """Whole CNN_3x3 forward in one kernel; everything VMEM resident.

    p1_ref : (N*64, 9)  bf16  stage-1 im2col patches, window-major row order.
    wX_ref : stage weights, bf16.  w1: (9, C1); w2..w4: (taps, Cin, Cout).
    bnX_ref: (3, C) f32   rows = [conv bias, BN gamma, BN beta].
    sX_ref : (taps*R_out, R_prev) bf16 0/1 selection (in-kernel im2col) for
             convs 2-4; conv-output rows are window-major ordered.
    wfc_ref: (C4, nout) bf16, bfc_ref: (1, nout) f32.
    pool_rows: static per-stage row-block size of the 2x2 pool windows.
    """
    bf16, f32 = jnp.bfloat16, jnp.float32

    def post(y, bn_ref):
        """conv bias -> leaky_relu -> BatchNorm2d (training-mode batch stats,
        biased variance) over all N*Ho*Wo rows.  Single-pass sum / sum-sq."""
        prm = bn_ref[...]                                   # (3, C) f32
        y = y + prm[0:1, :]                                 # conv bias
        y = jnp.where(y >= 0, y, LEAKY_SLOPE * y)           # leaky ReLU (f32)
        inv_r = 1.0 / y.shape[0]
        mean = jnp.sum(y, axis=0, keepdims=True) * inv_r
        var = jnp.sum(y * y, axis=0, keepdims=True) * inv_r - mean * mean
        return (y - mean) * jax.lax.rsqrt(var + BN_EPS) * prm[1:2, :] + prm[2:3, :]

    def pool(y, m):
        """MaxPool2d(2,2): rows are window-major -> max of 4 leading row blocks
        (rows beyond 4*m are positions dropped by the floor pool; they only
        contribute to the BN statistics above)."""
        return jnp.maximum(jnp.maximum(y[0:m], y[m:2 * m]),
                           jnp.maximum(y[2 * m:3 * m], y[3 * m:4 * m]))

    def conv_taps(x, s_ref, w_ref):
        """k x k conv (with zero padding) as in-kernel tap accumulation:
        one 0/1 selection matmul gathers the shifted rows for every tap
        (= im2col of the VMEM-resident pooled activation), then per-tap
        (Cin, Cout) bf16 MXU dots accumulated in f32."""
        taps, cin, cout = w_ref.shape
        r_out = s_ref.shape[0] // taps
        h = jnp.dot(s_ref[...], x.astype(bf16),
                    preferred_element_type=f32).astype(bf16)   # (taps*r_out, cin)
        acc = None
        for t in range(taps):
            z = jnp.dot(h[t * r_out:(t + 1) * r_out], w_ref[t],
                        preferred_element_type=f32)            # (r_out, cout)
            acc = z if acc is None else acc + z
        return acc

    m1, m2, m3, m4 = pool_rows

    # stage 1: conv 3x3 (im2col matmul) -> post -> pool :  (N*64, 9) -> (N*16, 64)
    y = jnp.dot(p1_ref[...], w1_ref[...], preferred_element_type=f32)
    a = pool(post(y, bn1_ref), m1)
    # stage 2: conv 3x3, pad 1                         :  (N*16, 64) -> (N*4, 128)
    a = pool(post(conv_taps(a, s2_ref, w2_ref), bn2_ref), m2)
    # stage 3: conv 2x2, pad 1 (3x3 out, floor pool)   :  (N*4, 128) -> (N, 256)
    a = pool(post(conv_taps(a, s3_ref, w3_ref), bn3_ref), m3)
    # stage 4: conv 2x2, pad 1                         :  (N, 256)   -> (N, 512)
    a = pool(post(conv_taps(a, s4_ref, w4_ref), bn4_ref), m4)
    # fc: flatten (already (N, 512)) @ (512, nout) + bias
    out_ref[...] = jnp.dot(a.astype(bf16), wfc_ref[...],
                           preferred_element_type=f32) + bfc_ref[...]


# ----------------------- static (numpy) index structures -------------------- #

def _window_major_positions(n, ho, wo):
    """Conv-output positions ordered so the 4 pool-window taps are 4 contiguous
    blocks of n*(ho//2)*(wo//2) rows; positions dropped by the floor pool
    (needed only for BN stats) are appended last."""
    hp, wp = ho // 2, wo // 2
    pos = [(b, 2 * i + dh, 2 * j + dw)
           for dh in range(2) for dw in range(2)
           for b in range(n) for i in range(hp) for j in range(wp)]
    pos += [(b, i, j) for b in range(n) for i in range(ho) for j in range(wo)
            if i >= 2 * hp or j >= 2 * wp]
    return pos


def _tap_selector(n, h_in, w_in, k, pad):
    """0/1 matrix of shape (k*k*R_out, n*h_in*w_in): block t gathers, for every
    (window-major ordered) conv-output position, the input row hit by tap
    t=(i,j) of a k x k / padding=`pad` conv (all-zero row when the tap lands in
    the zero padding)."""
    ho = h_in + 2 * pad - k + 1
    wo = w_in + 2 * pad - k + 1
    pos = _window_major_positions(n, ho, wo)
    r_out = len(pos)
    sel = np.zeros((k * k * r_out, n * h_in * w_in), np.float32)
    for t in range(k * k):
        i, j = divmod(t, k)
        for r, (b, oh, ow) in enumerate(pos):
            h, w = oh + i - pad, ow + j - pad
            if 0 <= h < h_in and 0 <= w < w_in:
                sel[t * r_out + r, (b * h_in + h) * w_in + w] = 1.0
    return sel


# ------------------------------- JAX glue ------------------------------------ #

def _stage1_patches(x_nhwc):
    """(N, 8, 8, 1) -> (N*64, 9) im2col patches for conv1 (3x3, pad 1), rows in
    window-major 2x2-pool order.  Tiny (4.6 KB); the raw input has to come from
    HBM anyway, so this stays in the XLA wrapper."""
    n, h, w, _ = x_nhwc.shape
    xp = jnp.pad(x_nhwc, ((0, 0), (1, 1), (1, 1), (0, 0)))
    cols = [xp[:, i:i + h, j:j + w, :] for i in range(3) for j in range(3)]
    p = jnp.concatenate(cols, axis=-1)                     # (N, 8, 8, 9)
    hp, wp = h // 2, w // 2
    blocks = [p[:, dh::2, dw::2, :].reshape(n * hp * wp, 9)
              for dh in range(2) for dw in range(2)]
    return jnp.concatenate(blocks, axis=0)                 # (N*64, 9)


def prepare_params(params, batch):
    """One-time (outside jit) packing of all kernel operands that do not depend
    on the input: bf16 stacked weights, packed (3, C) bias/gamma/beta, 0/1 tap
    selection matrices, pre-transposed FC weight."""
    def stack_taps(w_oihw):
        cout, cin, k, _ = w_oihw.shape
        # (Cout, Cin, K, K) -> (K*K, Cin, Cout); slab t=(i*K+j) is w[:, :, i, j].T
        return jnp.transpose(w_oihw, (2, 3, 1, 0)).reshape(
            k * k, cin, cout).astype(jnp.bfloat16)

    kp = {}
    c1 = params["w1"].shape[0]
    # stage-1 weight consumed as a single (9, C1) im2col matmul operand
    kp["w1"] = jnp.transpose(params["w1"], (2, 3, 1, 0)).reshape(
        9, c1).astype(jnp.bfloat16)
    kp["w2"] = stack_taps(params["w2"])
    kp["w3"] = stack_taps(params["w3"])
    kp["w4"] = stack_taps(params["w4"])
    for i in range(1, 5):
        kp[f"bn{i}"] = jnp.stack(
            [params[f"b{i}"], params[f"g{i}"], params[f"be{i}"]],
            axis=0).astype(jnp.float32)                    # (3, C)
    # geometry of the 8x8 CNN_3x3: pooled spatial sizes 4 -> 2 -> 1 feed convs 2-4
    kp["s2"] = jnp.asarray(_tap_selector(batch, 4, 4, 3, 1), jnp.bfloat16)
    kp["s3"] = jnp.asarray(_tap_selector(batch, 2, 2, 2, 1), jnp.bfloat16)
    kp["s4"] = jnp.asarray(_tap_selector(batch, 1, 1, 2, 1), jnp.bfloat16)
    kp["wfc"] = params["wfc"].T.astype(jnp.bfloat16)       # (C4, nout)
    kp["bfc"] = params["bfc"].reshape(1, -1).astype(jnp.float32)
    return kp


def cnn_3x3_forward(x_nchw, kp):
    """Forward pass; x_nchw: (N, 1, 8, 8).  Everything past the stage-1 im2col
    runs in a single fused Pallas kernel."""
    n = x_nchw.shape[0]
    x = jnp.transpose(x_nchw, (0, 2, 3, 1)).astype(jnp.float32)   # NCHW -> NHWC
    p1 = _stage1_patches(x).astype(jnp.bfloat16)                  # (N*64, 9)
    nout = kp["bfc"].shape[1]
    # TODO(synk): dropout branch (self.dropout=False by default) is not applied.
    kernel = functools.partial(_fused_cnn_kernel,
                               pool_rows=(16 * n, 4 * n, n, n))
    return pl.pallas_call(
        kernel,
        out_shape=jax.ShapeDtypeStruct((n, nout), jnp.float32),
        in_specs=[pl.BlockSpec(memory_space=pltpu.MemorySpace.VMEM)] * 14,
        out_specs=pl.BlockSpec(memory_space=pltpu.MemorySpace.VMEM),
    )(p1, kp["w1"], kp["w2"], kp["w3"], kp["w4"],
      kp["bn1"], kp["bn2"], kp["bn3"], kp["bn4"],
      kp["s2"], kp["s3"], kp["s4"], kp["wfc"], kp["bfc"])


# ------------------------- deterministic parameters -------------------------- #

def init_params(key, chi=64, energy=False):
    ks = jax.random.split(key, 5)

    def conv_init(k, cout, cin, ksz):
        fan_in = cin * ksz * ksz
        scale = 1.0 / (fan_in ** 0.5)
        kw, kb = jax.random.split(k)
        w = jax.random.uniform(kw, (cout, cin, ksz, ksz), jnp.float32, -scale, scale)
        b = jax.random.uniform(kb, (cout,), jnp.float32, -scale, scale)
        return w, b

    p = {}
    p["w1"], p["b1"] = conv_init(ks[0], chi, 1, 3)
    p["w2"], p["b2"] = conv_init(ks[1], chi * 2, chi, 3)
    p["w3"], p["b3"] = conv_init(ks[2], chi * 4, chi * 2, 2)
    p["w4"], p["b4"] = conv_init(ks[3], chi * 8, chi * 4, 2)
    for i, c in zip(range(1, 5), [chi, chi * 2, chi * 4, chi * 8]):
        p[f"g{i}"] = jnp.ones((c,), jnp.float32)    # BatchNorm2d default weight
        p[f"be{i}"] = jnp.zeros((c,), jnp.float32)  # BatchNorm2d default bias
    nout = 4 if energy else 3
    fan_in = chi * 8
    scale = 1.0 / (fan_in ** 0.5)
    kw, kb = jax.random.split(ks[4])
    p["wfc"] = jax.random.uniform(kw, (nout, chi * 8), jnp.float32, -scale, scale)
    p["bfc"] = jax.random.uniform(kb, (nout,), jnp.float32, -scale, scale)
    return p


if __name__ == "__main__":
    key = jax.random.PRNGKey(0)
    kx, kparams = jax.random.split(key)
    # Module docstring implies 8x8 single-channel input; small batch of 2 (NCHW).
    x = jax.random.normal(kx, (2, 1, 8, 8), jnp.float32)
    params = init_params(kparams, chi=64)
    kp = prepare_params(params, batch=x.shape[0])        # one-time, outside jit
    fwd = jax.jit(cnn_3x3_forward)
    out = fwd(x, kp)
    jax.block_until_ready(out)
    assert out.shape == (2, 3)
    assert bool(jnp.all(jnp.isfinite(out)))
    print("KERNEL_OK")
</pallas_src>

<mosaic_0001>
module attributes {stable_mosaic.version = 11 : i64} {
  func.func @_fused_cnn_kernel(%arg0: memref<128x9xbf16, #tpu.memory_space<vmem>>, %arg1: memref<9x64xbf16, #tpu.memory_space<vmem>>, %arg2: memref<9x64x128xbf16, #tpu.memory_space<vmem>>, %arg3: memref<4x128x256xbf16, #tpu.memory_space<vmem>>, %arg4: memref<4x256x512xbf16, #tpu.memory_space<vmem>>, %arg5: memref<3x64xf32, #tpu.memory_space<vmem>>, %arg6: memref<3x128xf32, #tpu.memory_space<vmem>>, %arg7: memref<3x256xf32, #tpu.memory_space<vmem>>, %arg8: memref<3x512xf32, #tpu.memory_space<vmem>>, %arg9: memref<288x32xbf16, #tpu.memory_space<vmem>>, %arg10: memref<72x8xbf16, #tpu.memory_space<vmem>>, %arg11: memref<32x2xbf16, #tpu.memory_space<vmem>>, %arg12: memref<512x3xbf16, #tpu.memory_space<vmem>>, %arg13: memref<1x3xf32, #tpu.memory_space<vmem>>, %arg14: memref<2x3xf32, #tpu.memory_space<vmem>>) attributes {dimension_semantics = [], scalar_prefetch = 0 : i64, scratch_operands = 0 : i64, tpu.core_type = #tpu.core_type<tc>} {
    %c0 = arith.constant 0 : index
    %c0_0 = arith.constant 0 : index
    %0 = vector.load %arg0[%c0, %c0_0] : memref<128x9xbf16, #tpu.memory_space<vmem>>, vector<128x9xbf16>
    %c0_1 = arith.constant 0 : index
    %c0_2 = arith.constant 0 : index
    %1 = vector.load %arg1[%c0_1, %c0_2] : memref<9x64xbf16, #tpu.memory_space<vmem>>, vector<9x64xbf16>
    %cst = arith.constant dense<0.000000e+00> : vector<128x64xf32>
    %2 = tpu.matmul %0, %1, %cst {dimension_numbers = #tpu.dot_dimension_numbers<[1], [0], [0], [1], [0, 0, 1, 1], [], []>} : vector<128x9xbf16>, vector<9x64xbf16>, vector<128x64xf32> -> vector<128x64xf32>
    %c0_3 = arith.constant 0 : index
    %c0_4 = arith.constant 0 : index
    %3 = vector.load %arg5[%c0_3, %c0_4] : memref<3x64xf32, #tpu.memory_space<vmem>>, vector<3x64xf32>
    %4 = vector.extract_strided_slice %3 {offsets = [0, 0], sizes = [1, 64], strides = [1, 1]} : vector<3x64xf32> to vector<1x64xf32>
    %5 = vector.broadcast %4 : vector<1x64xf32> to vector<128x64xf32>
    %6 = arith.addf %2, %5 : vector<128x64xf32>
    %cst_5 = arith.constant 0.000000e+00 : f32
    %7 = vector.broadcast %cst_5 : f32 to vector<128x64xf32>
    %8 = arith.cmpf oge, %6, %7 : vector<128x64xf32>
    %cst_6 = arith.constant 0.00999999977 : f32
    %9 = vector.broadcast %cst_6 : f32 to vector<128x64xf32>
    %10 = arith.mulf %9, %6 : vector<128x64xf32>
    %11 = arith.select %8, %6, %10 : vector<128x64xi1>, vector<128x64xf32>
    %cst_7 = arith.constant dense<0.000000e+00> : vector<64xf32>
    %12 = vector.multi_reduction <add>, %11, %cst_7 [0] : vector<128x64xf32> to vector<64xf32>
    %13 = vector.shape_cast %12 : vector<64xf32> to vector<1x64xf32>
    %cst_8 = arith.constant 7.812500e-03 : f32
    %14 = vector.broadcast %cst_8 : f32 to vector<1x64xf32>
    %15 = arith.mulf %13, %14 : vector<1x64xf32>
    %16 = arith.mulf %11, %11 : vector<128x64xf32>
    %cst_9 = arith.constant dense<0.000000e+00> : vector<64xf32>
    %17 = vector.multi_reduction <add>, %16, %cst_9 [0] : vector<128x64xf32> to vector<64xf32>
    %18 = vector.shape_cast %17 : vector<64xf32> to vector<1x64xf32>
    %cst_10 = arith.constant 7.812500e-03 : f32
    %19 = vector.broadcast %cst_10 : f32 to vector<1x64xf32>
    %20 = arith.mulf %18, %19 : vector<1x64xf32>
    %21 = arith.mulf %15, %15 : vector<1x64xf32>
    %22 = arith.subf %20, %21 : vector<1x64xf32>
    %23 = vector.broadcast %15 : vector<1x64xf32> to vector<128x64xf32>
    %24 = arith.subf %11, %23 : vector<128x64xf32>
    %cst_11 = arith.constant 9.99999974E-6 : f32
    %25 = vector.broadcast %cst_11 : f32 to vector<1x64xf32>
    %26 = arith.addf %22, %25 : vector<1x64xf32>
    %27 = math.rsqrt %26 : vector<1x64xf32>
    %28 = vector.broadcast %27 : vector<1x64xf32> to vector<128x64xf32>
    %29 = arith.mulf %24, %28 : vector<128x64xf32>
    %30 = vector.extract_strided_slice %3 {offsets = [1, 0], sizes = [1, 64], strides = [1, 1]} : vector<3x64xf32> to vector<1x64xf32>
    %31 = vector.broadcast %30 : vector<1x64xf32> to vector<128x64xf32>
    %32 = arith.mulf %29, %31 : vector<128x64xf32>
    %33 = vector.extract_strided_slice %3 {offsets = [2, 0], sizes = [1, 64], strides = [1, 1]} : vector<3x64xf32> to vector<1x64xf32>
    %34 = vector.broadcast %33 : vector<1x64xf32> to vector<128x64xf32>
    %35 = arith.addf %32, %34 : vector<128x64xf32>
    %36 = vector.extract_strided_slice %35 {offsets = [0, 0], sizes = [32, 64], strides = [1, 1]} : vector<128x64xf32> to vector<32x64xf32>
    %37 = vector.extract_strided_slice %35 {offsets = [32, 0], sizes = [32, 64], strides = [1, 1]} : vector<128x64xf32> to vector<32x64xf32>
    %38 = arith.maximumf %36, %37 : vector<32x64xf32>
    %39 = vector.extract_strided_slice %35 {offsets = [64, 0], sizes = [32, 64], strides = [1, 1]} : vector<128x64xf32> to vector<32x64xf32>
    %40 = vector.extract_strided_slice %35 {offsets = [96, 0], sizes = [32, 64], strides = [1, 1]} : vector<128x64xf32> to vector<32x64xf32>
    %41 = arith.maximumf %39, %40 : vector<32x64xf32>
    %42 = arith.maximumf %38, %41 : vector<32x64xf32>
    %c0_12 = arith.constant 0 : index
    %c0_13 = arith.constant 0 : index
    %43 = vector.load %arg9[%c0_12, %c0_13] : memref<288x32xbf16, #tpu.memory_space<vmem>>, vector<288x32xbf16>
    %44 = arith.truncf %42 : vector<32x64xf32> to vector<32x64xbf16>
    %cst_14 = arith.constant dense<0.000000e+00> : vector<288x64xf32>
    %45 = tpu.matmul %43, %44, %cst_14 {dimension_numbers = #tpu.dot_dimension_numbers<[1], [0], [0], [1], [0, 0, 1, 1], [], []>} : vector<288x32xbf16>, vector<32x64xbf16>, vector<288x64xf32> -> vector<288x64xf32>
    %46 = arith.truncf %45 : vector<288x64xf32> to vector<288x64xbf16>
    %47 = vector.extract_strided_slice %46 {offsets = [0, 0], sizes = [32, 64], strides = [1, 1]} : vector<288x64xbf16> to vector<32x64xbf16>
    %c0_15 = arith.constant 0 : index
    %c0_16 = arith.constant 0 : index
    %c0_17 = arith.constant 0 : index
    %48 = vector.load %arg2[%c0_15, %c0_16, %c0_17] : memref<9x64x128xbf16, #tpu.memory_space<vmem>>, vector<1x64x128xbf16>
    %49 = vector.shape_cast %48 : vector<1x64x128xbf16> to vector<64x128xbf16>
    %cst_18 = arith.constant dense<0.000000e+00> : vector<32x128xf32>
    %50 = tpu.matmul %47, %49, %cst_18 {dimension_numbers = #tpu.dot_dimension_numbers<[1], [0], [0], [1], [0, 0, 1, 1], [], []>} : vector<32x64xbf16>, vector<64x128xbf16>, vector<32x128xf32> -> vector<32x128xf32>
    %51 = vector.extract_strided_slice %46 {offsets = [32, 0], sizes = [32, 64], strides = [1, 1]} : vector<288x64xbf16> to vector<32x64xbf16>
    %c1 = arith.constant 1 : index
    %c0_19 = arith.constant 0 : index
    %c0_20 = arith.constant 0 : index
    %52 = vector.load %arg2[%c1, %c0_19, %c0_20] : memref<9x64x128xbf16, #tpu.memory_space<vmem>>, vector<1x64x128xbf16>
    %53 = vector.shape_cast %52 : vector<1x64x128xbf16> to vector<64x128xbf16>
    %cst_21 = arith.constant dense<0.000000e+00> : vector<32x128xf32>
    %54 = tpu.matmul %51, %53, %cst_21 {dimension_numbers = #tpu.dot_dimension_numbers<[1], [0], [0], [1], [0, 0, 1, 1], [], []>} : vector<32x64xbf16>, vector<64x128xbf16>, vector<32x128xf32> -> vector<32x128xf32>
    %55 = arith.addf %50, %54 : vector<32x128xf32>
    %56 = vector.extract_strided_slice %46 {offsets = [64, 0], sizes = [32, 64], strides = [1, 1]} : vector<288x64xbf16> to vector<32x64xbf16>
    %c2 = arith.constant 2 : index
    %c0_22 = arith.constant 0 : index
    %c0_23 = arith.constant 0 : index
    %57 = vector.load %arg2[%c2, %c0_22, %c0_23] : memref<9x64x128xbf16, #tpu.memory_space<vmem>>, vector<1x64x128xbf16>
    %58 = vector.shape_cast %57 : vector<1x64x128xbf16> to vector<64x128xbf16>
    %cst_24 = arith.constant dense<0.000000e+00> : vector<32x128xf32>
    %59 = tpu.matmul %56, %58, %cst_24 {dimension_numbers = #tpu.dot_dimension_numbers<[1], [0], [0], [1], [0, 0, 1, 1], [], []>} : vector<32x64xbf16>, vector<64x128xbf16>, vector<32x128xf32> -> vector<32x128xf32>
    %60 = arith.addf %55, %59 : vector<32x128xf32>
    %61 = vector.extract_strided_slice %46 {offsets = [96, 0], sizes = [32, 64], strides = [1, 1]} : vector<288x64xbf16> to vector<32x64xbf16>
    %c3 = arith.constant 3 : index
    %c0_25 = arith.constant 0 : index
    %c0_26 = arith.constant 0 : index
    %62 = vector.load %arg2[%c3, %c0_25, %c0_26] : memref<9x64x128xbf16, #tpu.memory_space<vmem>>, vector<1x64x128xbf16>
    %63 = vector.shape_cast %62 : vector<1x64x128xbf16> to vector<64x128xbf16>
    %cst_27 = arith.constant dense<0.000000e+00> : vector<32x128xf32>
    %64 = tpu.matmul %61, %63, %cst_27 {dimension_numbers = #tpu.dot_dimension_numbers<[1], [0], [0], [1], [0, 0, 1, 1], [], []>} : vector<32x64xbf16>, vector<64x128xbf16>, vector<32x128xf32> -> vector<32x128xf32>
    %65 = arith.addf %60, %64 : vector<32x128xf32>
    %66 = vector.extract_strided_slice %46 {offsets = [128, 0], sizes = [32, 64], strides = [1, 1]} : vector<288x64xbf16> to vector<32x64xbf16>
    %c4 = arith.constant 4 : index
    %c0_28 = arith.constant 0 : index
    %c0_29 = arith.constant 0 : index
    %67 = vector.load %arg2[%c4, %c0_28, %c0_29] : memref<9x64x128xbf16, #tpu.memory_space<vmem>>, vector<1x64x128xbf16>
    %68 = vector.shape_cast %67 : vector<1x64x128xbf16> to vector<64x128xbf16>
    %cst_30 = arith.constant dense<0.000000e+00> : vector<32x128xf32>
    %69 = tpu.matmul %66, %68, %cst_30 {dimension_numbers = #tpu.dot_dimension_numbers<[1], [0], [0], [1], [0, 0, 1, 1], [], []>} : vector<32x64xbf16>, vector<64x128xbf16>, vector<32x128xf32> -> vector<32x128xf32>
    %70 = arith.addf %65, %69 : vector<32x128xf32>
    %71 = vector.extract_strided_slice %46 {offsets = [160, 0], sizes = [32, 64], strides = [1, 1]} : vector<288x64xbf16> to vector<32x64xbf16>
    %c5 = arith.constant 5 : index
    %c0_31 = arith.constant 0 : index
    %c0_32 = arith.constant 0 : index
    %72 = vector.load %arg2[%c5, %c0_31, %c0_32] : memref<9x64x128xbf16, #tpu.memory_space<vmem>>, vector<1x64x128xbf16>
    %73 = vector.shape_cast %72 : vector<1x64x128xbf16> to vector<64x128xbf16>
    %cst_33 = arith.constant dense<0.000000e+00> : vector<32x128xf32>
    %74 = tpu.matmul %71, %73, %cst_33 {dimension_numbers = #tpu.dot_dimension_numbers<[1], [0], [0], [1], [0, 0, 1, 1], [], []>} : vector<32x64xbf16>, vector<64x128xbf16>, vector<32x128xf32> -> vector<32x128xf32>
    %75 = arith.addf %70, %74 : vector<32x128xf32>
    %76 = vector.extract_strided_slice %46 {offsets = [192, 0], sizes = [32, 64], strides = [1, 1]} : vector<288x64xbf16> to vector<32x64xbf16>
    %c6 = arith.constant 6 : index
    %c0_34 = arith.constant 0 : index
    %c0_35 = arith.constant 0 : index
    %77 = vector.load %arg2[%c6, %c0_34, %c0_35] : memref<9x64x128xbf16, #tpu.memory_space<vmem>>, vector<1x64x128xbf16>
    %78 = vector.shape_cast %77 : vector<1x64x128xbf16> to vector<64x128xbf16>
    %cst_36 = arith.constant dense<0.000000e+00> : vector<32x128xf32>
    %79 = tpu.matmul %76, %78, %cst_36 {dimension_numbers = #tpu.dot_dimension_numbers<[1], [0], [0], [1], [0, 0, 1, 1], [], []>} : vector<32x64xbf16>, vector<64x128xbf16>, vector<32x128xf32> -> vector<32x128xf32>
    %80 = arith.addf %75, %79 : vector<32x128xf32>
    %81 = vector.extract_strided_slice %46 {offsets = [224, 0], sizes = [32, 64], strides = [1, 1]} : vector<288x64xbf16> to vector<32x64xbf16>
    %c7 = arith.constant 7 : index
    %c0_37 = arith.constant 0 : index
    %c0_38 = arith.constant 0 : index
    %82 = vector.load %arg2[%c7, %c0_37, %c0_38] : memref<9x64x128xbf16, #tpu.memory_space<vmem>>, vector<1x64x128xbf16>
    %83 = vector.shape_cast %82 : vector<1x64x128xbf16> to vector<64x128xbf16>
    %cst_39 = arith.constant dense<0.000000e+00> : vector<32x128xf32>
    %84 = tpu.matmul %81, %83, %cst_39 {dimension_numbers = #tpu.dot_dimension_numbers<[1], [0], [0], [1], [0, 0, 1, 1], [], []>} : vector<32x64xbf16>, vector<64x128xbf16>, vector<32x128xf32> -> vector<32x128xf32>
    %85 = arith.addf %80, %84 : vector<32x128xf32>
    %86 = vector.extract_strided_slice %46 {offsets = [256, 0], sizes = [32, 64], strides = [1, 1]} : vector<288x64xbf16> to vector<32x64xbf16>
    %c8 = arith.constant 8 : index
    %c0_40 = arith.constant 0 : index
    %c0_41 = arith.constant 0 : index
    %87 = vector.load %arg2[%c8, %c0_40, %c0_41] : memref<9x64x128xbf16, #tpu.memory_space<vmem>>, vector<1x64x128xbf16>
    %88 = vector.shape_cast %87 : vector<1x64x128xbf16> to vector<64x128xbf16>
    %cst_42 = arith.constant dense<0.000000e+00> : vector<32x128xf32>
    %89 = tpu.matmul %86, %88, %cst_42 {dimension_numbers = #tpu.dot_dimension_numbers<[1], [0], [0], [1], [0, 0, 1, 1], [], []>} : vector<32x64xbf16>, vector<64x128xbf16>, vector<32x128xf32> -> vector<32x128xf32>
    %90 = arith.addf %85, %89 : vector<32x128xf32>
    %c0_43 = arith.constant 0 : index
    %c0_44 = arith.constant 0 : index
    %91 = vector.load %arg6[%c0_43, %c0_44] : memref<3x128xf32, #tpu.memory_space<vmem>>, vector<3x128xf32>
    %92 = vector.extract_strided_slice %91 {offsets = [0, 0], sizes = [1, 128], strides = [1, 1]} : vector<3x128xf32> to vector<1x128xf32>
    %93 = vector.broadcast %92 : vector<1x128xf32> to vector<32x128xf32>
    %94 = arith.addf %90, %93 : vector<32x128xf32>
    %cst_45 = arith.constant 0.000000e+00 : f32
    %95 = vector.broadcast %cst_45 : f32 to vector<32x128xf32>
    %96 = arith.cmpf oge, %94, %95 : vector<32x128xf32>
    %cst_46 = arith.constant 0.00999999977 : f32
    %97 = vector.broadcast %cst_46 : f32 to vector<32x128xf32>
    %98 = arith.mulf %97, %94 : vector<32x128xf32>
    %99 = arith.select %96, %94, %98 : vector<32x128xi1>, vector<32x128xf32>
    %cst_47 = arith.constant dense<0.000000e+00> : vector<128xf32>
    %100 = vector.multi_reduction <add>, %99, %cst_47 [0] : vector<32x128xf32> to vector<128xf32>
    %101 = vector.shape_cast %100 : vector<128xf32> to vector<1x128xf32>
    %cst_48 = arith.constant 3.125000e-02 : f32
    %102 = vector.broadcast %cst_48 : f32 to vector<1x128xf32>
    %103 = arith.mulf %101, %102 : vector<1x128xf32>
    %104 = arith.mulf %99, %99 : vector<32x128xf32>
    %cst_49 = arith.constant dense<0.000000e+00> : vector<128xf32>
    %105 = vector.multi_reduction <add>, %104, %cst_49 [0] : vector<32x128xf32> to vector<128xf32>
    %106 = vector.shape_cast %105 : vector<128xf32> to vector<1x128xf32>
    %cst_50 = arith.constant 3.125000e-02 : f32
    %107 = vector.broadcast %cst_50 : f32 to vector<1x128xf32>
    %108 = arith.mulf %106, %107 : vector<1x128xf32>
    %109 = arith.mulf %103, %103 : vector<1x128xf32>
    %110 = arith.subf %108, %109 : vector<1x128xf32>
    %111 = vector.broadcast %103 : vector<1x128xf32> to vector<32x128xf32>
    %112 = arith.subf %99, %111 : vector<32x128xf32>
    %cst_51 = arith.constant 9.99999974E-6 : f32
    %113 = vector.broadcast %cst_51 : f32 to vector<1x128xf32>
    %114 = arith.addf %110, %113 : vector<1x128xf32>
    %115 = math.rsqrt %114 : vector<1x128xf32>
    %116 = vector.broadcast %115 : vector<1x128xf32> to vector<32x128xf32>
    %117 = arith.mulf %112, %116 : vector<32x128xf32>
    %118 = vector.extract_strided_slice %91 {offsets = [1, 0], sizes = [1, 128], strides = [1, 1]} : vector<3x128xf32> to vector<1x128xf32>
    %119 = vector.broadcast %118 : vector<1x128xf32> to vector<32x128xf32>
    %120 = arith.mulf %117, %119 : vector<32x128xf32>
    %121 = vector.extract_strided_slice %91 {offsets = [2, 0], sizes = [1, 128], strides = [1, 1]} : vector<3x128xf32> to vector<1x128xf32>
    %122 = vector.broadcast %121 : vector<1x128xf32> to vector<32x128xf32>
    %123 = arith.addf %120, %122 : vector<32x128xf32>
    %124 = vector.extract_strided_slice %123 {offsets = [0, 0], sizes = [8, 128], strides = [1, 1]} : vector<32x128xf32> to vector<8x128xf32>
    %125 = vector.extract_strided_slice %123 {offsets = [8, 0], sizes = [8, 128], strides = [1, 1]} : vector<32x128xf32> to vector<8x128xf32>
    %126 = arith.maximumf %124, %125 : vector<8x128xf32>
    %127 = vector.extract_strided_slice %123 {offsets = [16, 0], sizes = [8, 128], strides = [1, 1]} : vector<32x128xf32> to vector<8x128xf32>
    %128 = vector.extract_strided_slice %123 {offsets = [24, 0], sizes = [8, 128], strides = [1, 1]} : vector<32x128xf32> to vector<8x128xf32>
    %129 = arith.maximumf %127, %128 : vector<8x128xf32>
    %130 = arith.maximumf %126, %129 : vector<8x128xf32>
    %c0_52 = arith.constant 0 : index
    %c0_53 = arith.constant 0 : index
    %131 = vector.load %arg10[%c0_52, %c0_53] : memref<72x8xbf16, #tpu.memory_space<vmem>>, vector<72x8xbf16>
    %132 = arith.truncf %130 : vector<8x128xf32> to vector<8x128xbf16>
    %cst_54 = arith.constant dense<0.000000e+00> : vector<72x128xf32>
    %133 = tpu.matmul %131, %132, %cst_54 {dimension_numbers = #tpu.dot_dimension_numbers<[1], [0], [0], [1], [0, 0, 1, 1], [], []>} : vector<72x8xbf16>, vector<8x128xbf16>, vector<72x128xf32> -> vector<72x128xf32>
    %134 = arith.truncf %133 : vector<72x128xf32> to vector<72x128xbf16>
    %135 = vector.extract_strided_slice %134 {offsets = [0, 0], sizes = [18, 128], strides = [1, 1]} : vector<72x128xbf16> to vector<18x128xbf16>
    %c0_55 = arith.constant 0 : index
    %c0_56 = arith.constant 0 : index
    %c0_57 = arith.constant 0 : index
    %136 = vector.load %arg3[%c0_55, %c0_56, %c0_57] : memref<4x128x256xbf16, #tpu.memory_space<vmem>>, vector<1x128x256xbf16>
    %137 = vector.shape_cast %136 : vector<1x128x256xbf16> to vector<128x256xbf16>
    %cst_58 = arith.constant dense<0.000000e+00> : vector<18x256xf32>
    %138 = tpu.matmul %135, %137, %cst_58 {dimension_numbers = #tpu.dot_dimension_numbers<[1], [0], [0], [1], [0, 0, 1, 1], [], []>} : vector<18x128xbf16>, vector<128x256xbf16>, vector<18x256xf32> -> vector<18x256xf32>
    %139 = vector.extract_strided_slice %134 {offsets = [18, 0], sizes = [18, 128], strides = [1, 1]} : vector<72x128xbf16> to vector<18x128xbf16>
    %c1_59 = arith.constant 1 : index
    %c0_60 = arith.constant 0 : index
    %c0_61 = arith.constant 0 : index
    %140 = vector.load %arg3[%c1_59, %c0_60, %c0_61] : memref<4x128x256xbf16, #tpu.memory_space<vmem>>, vector<1x128x256xbf16>
    %141 = vector.shape_cast %140 : vector<1x128x256xbf16> to vector<128x256xbf16>
    %cst_62 = arith.constant dense<0.000000e+00> : vector<18x256xf32>
    %142 = tpu.matmul %139, %141, %cst_62 {dimension_numbers = #tpu.dot_dimension_numbers<[1], [0], [0], [1], [0, 0, 1, 1], [], []>} : vector<18x128xbf16>, vector<128x256xbf16>, vector<18x256xf32> -> vector<18x256xf32>
    %143 = arith.addf %138, %142 : vector<18x256xf32>
    %144 = vector.extract_strided_slice %134 {offsets = [36, 0], sizes = [18, 128], strides = [1, 1]} : vector<72x128xbf16> to vector<18x128xbf16>
    %c2_63 = arith.constant 2 : index
    %c0_64 = arith.constant 0 : index
    %c0_65 = arith.constant 0 : index
    %145 = vector.load %arg3[%c2_63, %c0_64, %c0_65] : memref<4x128x256xbf16, #tpu.memory_space<vmem>>, vector<1x128x256xbf16>
    %146 = vector.shape_cast %145 : vector<1x128x256xbf16> to vector<128x256xbf16>
    %cst_66 = arith.constant dense<0.000000e+00> : vector<18x256xf32>
    %147 = tpu.matmul %144, %146, %cst_66 {dimension_numbers = #tpu.dot_dimension_numbers<[1], [0], [0], [1], [0, 0, 1, 1], [], []>} : vector<18x128xbf16>, vector<128x256xbf16>, vector<18x256xf32> -> vector<18x256xf32>
    %148 = arith.addf %143, %147 : vector<18x256xf32>
    %149 = vector.extract_strided_slice %134 {offsets = [54, 0], sizes = [18, 128], strides = [1, 1]} : vector<72x128xbf16> to vector<18x128xbf16>
    %c3_67 = arith.constant 3 : index
    %c0_68 = arith.constant 0 : index
    %c0_69 = arith.constant 0 : index
    %150 = vector.load %arg3[%c3_67, %c0_68, %c0_69] : memref<4x128x256xbf16, #tpu.memory_space<vmem>>, vector<1x128x256xbf16>
    %151 = vector.shape_cast %150 : vector<1x128x256xbf16> to vector<128x256xbf16>
    %cst_70 = arith.constant dense<0.000000e+00> : vector<18x256xf32>
    %152 = tpu.matmul %149, %151, %cst_70 {dimension_numbers = #tpu.dot_dimension_numbers<[1], [0], [0], [1], [0, 0, 1, 1], [], []>} : vector<18x128xbf16>, vector<128x256xbf16>, vector<18x256xf32> -> vector<18x256xf32>
    %153 = arith.addf %148, %152 : vector<18x256xf32>
    %c0_71 = arith.constant 0 : index
    %c0_72 = arith.constant 0 : index
    %154 = vector.load %arg7[%c0_71, %c0_72] : memref<3x256xf32, #tpu.memory_space<vmem>>, vector<3x256xf32>
    %155 = vector.extract_strided_slice %154 {offsets = [0, 0], sizes = [1, 256], strides = [1, 1]} : vector<3x256xf32> to vector<1x256xf32>
    %156 = vector.broadcast %155 : vector<1x256xf32> to vector<18x256xf32>
    %157 = arith.addf %153, %156 : vector<18x256xf32>
    %cst_73 = arith.constant 0.000000e+00 : f32
    %158 = vector.broadcast %cst_73 : f32 to vector<18x256xf32>
    %159 = arith.cmpf oge, %157, %158 : vector<18x256xf32>
    %cst_74 = arith.constant 0.00999999977 : f32
    %160 = vector.broadcast %cst_74 : f32 to vector<18x256xf32>
    %161 = arith.mulf %160, %157 : vector<18x256xf32>
    %162 = arith.select %159, %157, %161 : vector<18x256xi1>, vector<18x256xf32>
    %cst_75 = arith.constant dense<0.000000e+00> : vector<256xf32>
    %163 = vector.multi_reduction <add>, %162, %cst_75 [0] : vector<18x256xf32> to vector<256xf32>
    %164 = vector.shape_cast %163 : vector<256xf32> to vector<1x256xf32>
    %cst_76 = arith.constant 0.055555556 : f32
    %165 = vector.broadcast %cst_76 : f32 to vector<1x256xf32>
    %166 = arith.mulf %164, %165 : vector<1x256xf32>
    %167 = arith.mulf %162, %162 : vector<18x256xf32>
    %cst_77 = arith.constant dense<0.000000e+00> : vector<256xf32>
    %168 = vector.multi_reduction <add>, %167, %cst_77 [0] : vector<18x256xf32> to vector<256xf32>
    %169 = vector.shape_cast %168 : vector<256xf32> to vector<1x256xf32>
    %cst_78 = arith.constant 0.055555556 : f32
    %170 = vector.broadcast %cst_78 : f32 to vector<1x256xf32>
    %171 = arith.mulf %169, %170 : vector<1x256xf32>
    %172 = arith.mulf %166, %166 : vector<1x256xf32>
    %173 = arith.subf %171, %172 : vector<1x256xf32>
    %174 = vector.broadcast %166 : vector<1x256xf32> to vector<18x256xf32>
    %175 = arith.subf %162, %174 : vector<18x256xf32>
    %cst_79 = arith.constant 9.99999974E-6 : f32
    %176 = vector.broadcast %cst_79 : f32 to vector<1x256xf32>
    %177 = arith.addf %173, %176 : vector<1x256xf32>
    %178 = math.rsqrt %177 : vector<1x256xf32>
    %179 = vector.broadcast %178 : vector<1x256xf32> to vector<18x256xf32>
    %180 = arith.mulf %175, %179 : vector<18x256xf32>
    %181 = vector.extract_strided_slice %154 {offsets = [1, 0], sizes = [1, 256], strides = [1, 1]} : vector<3x256xf32> to vector<1x256xf32>
    %182 = vector.broadcast %181 : vector<1x256xf32> to vector<18x256xf32>
    %183 = arith.mulf %180, %182 : vector<18x256xf32>
    %184 = vector.extract_strided_slice %154 {offsets = [2, 0], sizes = [1, 256], strides = [1, 1]} : vector<3x256xf32> to vector<1x256xf32>
    %185 = vector.broadcast %184 : vector<1x256xf32> to vector<18x256xf32>
    %186 = arith.addf %183, %185 : vector<18x256xf32>
    %187 = vector.extract_strided_slice %186 {offsets = [0, 0], sizes = [2, 256], strides = [1, 1]} : vector<18x256xf32> to vector<2x256xf32>
    %188 = vector.extract_strided_slice %186 {offsets = [2, 0], sizes = [2, 256], strides = [1, 1]} : vector<18x256xf32> to vector<2x256xf32>
    %189 = arith.maximumf %187, %188 : vector<2x256xf32>
    %190 = vector.extract_strided_slice %186 {offsets = [4, 0], sizes = [2, 256], strides = [1, 1]} : vector<18x256xf32> to vector<2x256xf32>
    %191 = vector.extract_strided_slice %186 {offsets = [6, 0], sizes = [2, 256], strides = [1, 1]} : vector<18x256xf32> to vector<2x256xf32>
    %192 = arith.maximumf %190, %191 : vector<2x256xf32>
    %193 = arith.maximumf %189, %192 : vector<2x256xf32>
    %c0_80 = arith.constant 0 : index
    %c0_81 = arith.constant 0 : index
    %194 = vector.load %arg11[%c0_80, %c0_81] : memref<32x2xbf16, #tpu.memory_space<vmem>>, vector<32x2xbf16>
    %195 = arith.truncf %193 : vector<2x256xf32> to vector<2x256xbf16>
    %cst_82 = arith.constant dense<0.000000e+00> : vector<32x256xf32>
    %196 = tpu.matmul %194, %195, %cst_82 {dimension_numbers = #tpu.dot_dimension_numbers<[1], [0], [0], [1], [0, 0, 1, 1], [], []>} : vector<32x2xbf16>, vector<2x256xbf16>, vector<32x256xf32> -> vector<32x256xf32>
    %197 = arith.truncf %196 : vector<32x256xf32> to vector<32x256xbf16>
    %198 = vector.extract_strided_slice %197 {offsets = [0, 0], sizes = [8, 256], strides = [1, 1]} : vector<32x256xbf16> to vector<8x256xbf16>
    %c0_83 = arith.constant 0 : index
    %c0_84 = arith.constant 0 : index
    %c0_85 = arith.constant 0 : index
    %199 = vector.load %arg4[%c0_83, %c0_84, %c0_85] : memref<4x256x512xbf16, #tpu.memory_space<vmem>>, vector<1x256x512xbf16>
    %200 = vector.shape_cast %199 : vector<1x256x512xbf16> to vector<256x512xbf16>
    %cst_86 = arith.constant dense<0.000000e+00> : vector<8x512xf32>
    %201 = tpu.matmul %198, %200, %cst_86 {dimension_numbers = #tpu.dot_dimension_numbers<[1], [0], [0], [1], [0, 0, 1, 1], [], []>} : vector<8x256xbf16>, vector<256x512xbf16>, vector<8x512xf32> -> vector<8x512xf32>
    %202 = vector.extract_strided_slice %197 {offsets = [8, 0], sizes = [8, 256], strides = [1, 1]} : vector<32x256xbf16> to vector<8x256xbf16>
    %c1_87 = arith.constant 1 : index
    %c0_88 = arith.constant 0 : index
    %c0_89 = arith.constant 0 : index
    %203 = vector.load %arg4[%c1_87, %c0_88, %c0_89] : memref<4x256x512xbf16, #tpu.memory_space<vmem>>, vector<1x256x512xbf16>
    %204 = vector.shape_cast %203 : vector<1x256x512xbf16> to vector<256x512xbf16>
    %cst_90 = arith.constant dense<0.000000e+00> : vector<8x512xf32>
    %205 = tpu.matmul %202, %204, %cst_90 {dimension_numbers = #tpu.dot_dimension_numbers<[1], [0], [0], [1], [0, 0, 1, 1], [], []>} : vector<8x256xbf16>, vector<256x512xbf16>, vector<8x512xf32> -> vector<8x512xf32>
    %206 = arith.addf %201, %205 : vector<8x512xf32>
    %207 = vector.extract_strided_slice %197 {offsets = [16, 0], sizes = [8, 256], strides = [1, 1]} : vector<32x256xbf16> to vector<8x256xbf16>
    %c2_91 = arith.constant 2 : index
    %c0_92 = arith.constant 0 : index
    %c0_93 = arith.constant 0 : index
    %208 = vector.load %arg4[%c2_91, %c0_92, %c0_93] : memref<4x256x512xbf16, #tpu.memory_space<vmem>>, vector<1x256x512xbf16>
    %209 = vector.shape_cast %208 : vector<1x256x512xbf16> to vector<256x512xbf16>
    %cst_94 = arith.constant dense<0.000000e+00> : vector<8x512xf32>
    %210 = tpu.matmul %207, %209, %cst_94 {dimension_numbers = #tpu.dot_dimension_numbers<[1], [0], [0], [1], [0, 0, 1, 1], [], []>} : vector<8x256xbf16>, vector<256x512xbf16>, vector<8x512xf32> -> vector<8x512xf32>
    %211 = arith.addf %206, %210 : vector<8x512xf32>
    %212 = vector.extract_strided_slice %197 {offsets = [24, 0], sizes = [8, 256], strides = [1, 1]} : vector<32x256xbf16> to vector<8x256xbf16>
    %c3_95 = arith.constant 3 : index
    %c0_96 = arith.constant 0 : index
    %c0_97 = arith.constant 0 : index
    %213 = vector.load %arg4[%c3_95, %c0_96, %c0_97] : memref<4x256x512xbf16, #tpu.memory_space<vmem>>, vector<1x256x512xbf16>
    %214 = vector.shape_cast %213 : vector<1x256x512xbf16> to vector<256x512xbf16>
    %cst_98 = arith.constant dense<0.000000e+00> : vector<8x512xf32>
    %215 = tpu.matmul %212, %214, %cst_98 {dimension_numbers = #tpu.dot_dimension_numbers<[1], [0], [0], [1], [0, 0, 1, 1], [], []>} : vector<8x256xbf16>, vector<256x512xbf16>, vector<8x512xf32> -> vector<8x512xf32>
    %216 = arith.addf %211, %215 : vector<8x512xf32>
    %c0_99 = arith.constant 0 : index
    %c0_100 = arith.constant 0 : index
    %217 = vector.load %arg8[%c0_99, %c0_100] : memref<3x512xf32, #tpu.memory_space<vmem>>, vector<3x512xf32>
    %218 = vector.extract_strided_slice %217 {offsets = [0, 0], sizes = [1, 512], strides = [1, 1]} : vector<3x512xf32> to vector<1x512xf32>
    %219 = vector.broadcast %218 : vector<1x512xf32> to vector<8x512xf32>
    %220 = arith.addf %216, %219 : vector<8x512xf32>
    %cst_101 = arith.constant 0.000000e+00 : f32
    %221 = vector.broadcast %cst_101 : f32 to vector<8x512xf32>
    %222 = arith.cmpf oge, %220, %221 : vector<8x512xf32>
    %cst_102 = arith.constant 0.00999999977 : f32
    %223 = vector.broadcast %cst_102 : f32 to vector<8x512xf32>
    %224 = arith.mulf %223, %220 : vector<8x512xf32>
    %225 = arith.select %222, %220, %224 : vector<8x512xi1>, vector<8x512xf32>
    %cst_103 = arith.constant dense<0.000000e+00> : vector<512xf32>
    %226 = vector.multi_reduction <add>, %225, %cst_103 [0] : vector<8x512xf32> to vector<512xf32>
    %227 = vector.shape_cast %226 : vector<512xf32> to vector<1x512xf32>
    %cst_104 = arith.constant 1.250000e-01 : f32
    %228 = vector.broadcast %cst_104 : f32 to vector<1x512xf32>
    %229 = arith.mulf %227, %228 : vector<1x512xf32>
    %230 = arith.mulf %225, %225 : vector<8x512xf32>
    %cst_105 = arith.constant dense<0.000000e+00> : vector<512xf32>
    %231 = vector.multi_reduction <add>, %230, %cst_105 [0] : vector<8x512xf32> to vector<512xf32>
    %232 = vector.shape_cast %231 : vector<512xf32> to vector<1x512xf32>
    %cst_106 = arith.constant 1.250000e-01 : f32
    %233 = vector.broadcast %cst_106 : f32 to vector<1x512xf32>
    %234 = arith.mulf %232, %233 : vector<1x512xf32>
    %235 = arith.mulf %229, %229 : vector<1x512xf32>
    %236 = arith.subf %234, %235 : vector<1x512xf32>
    %237 = vector.broadcast %229 : vector<1x512xf32> to vector<8x512xf32>
    %238 = arith.subf %225, %237 : vector<8x512xf32>
    %cst_107 = arith.constant 9.99999974E-6 : f32
    %239 = vector.broadcast %cst_107 : f32 to vector<1x512xf32>
    %240 = arith.addf %236, %239 : vector<1x512xf32>
    %241 = math.rsqrt %240 : vector<1x512xf32>
    %242 = vector.broadcast %241 : vector<1x512xf32> to vector<8x512xf32>
    %243 = arith.mulf %238, %242 : vector<8x512xf32>
    %244 = vector.extract_strided_slice %217 {offsets = [1, 0], sizes = [1, 512], strides = [1, 1]} : vector<3x512xf32> to vector<1x512xf32>
    %245 = vector.broadcast %244 : vector<1x512xf32> to vector<8x512xf32>
    %246 = arith.mulf %243, %245 : vector<8x512xf32>
    %247 = vector.extract_strided_slice %217 {offsets = [2, 0], sizes = [1, 512], strides = [1, 1]} : vector<3x512xf32> to vector<1x512xf32>
    %248 = vector.broadcast %247 : vector<1x512xf32> to vector<8x512xf32>
    %249 = arith.addf %246, %248 : vector<8x512xf32>
    %250 = vector.extract_strided_slice %249 {offsets = [0, 0], sizes = [2, 512], strides = [1, 1]} : vector<8x512xf32> to vector<2x512xf32>
    %251 = vector.extract_strided_slice %249 {offsets = [2, 0], sizes = [2, 512], strides = [1, 1]} : vector<8x512xf32> to vector<2x512xf32>
    %252 = arith.maximumf %250, %251 : vector<2x512xf32>
    %253 = vector.extract_strided_slice %249 {offsets = [4, 0], sizes = [2, 512], strides = [1, 1]} : vector<8x512xf32> to vector<2x512xf32>
    %254 = vector.extract_strided_slice %249 {offsets = [6, 0], sizes = [2, 512], strides = [1, 1]} : vector<8x512xf32> to vector<2x512xf32>
    %255 = arith.maximumf %253, %254 : vector<2x512xf32>
    %256 = arith.maximumf %252, %255 : vector<2x512xf32>
    %257 = arith.truncf %256 : vector<2x512xf32> to vector<2x512xbf16>
    %c0_108 = arith.constant 0 : index
    %c0_109 = arith.constant 0 : index
    %258 = vector.load %arg12[%c0_108, %c0_109] : memref<512x3xbf16, #tpu.memory_space<vmem>>, vector<512x3xbf16>
    %cst_110 = arith.constant dense<0.000000e+00> : vector<2x3xf32>
    %259 = tpu.matmul %257, %258, %cst_110 {dimension_numbers = #tpu.dot_dimension_numbers<[1], [0], [0], [1], [0, 0, 1, 1], [], []>} : vector<2x512xbf16>, vector<512x3xbf16>, vector<2x3xf32> -> vector<2x3xf32>
    %c0_111 = arith.constant 0 : index
    %c0_112 = arith.constant 0 : index
    %260 = vector.load %arg13[%c0_111, %c0_112] : memref<1x3xf32, #tpu.memory_space<vmem>>, vector<1x3xf32>
    %261 = vector.broadcast %260 : vector<1x3xf32> to vector<2x3xf32>
    %262 = arith.addf %259, %261 : vector<2x3xf32>
    %c0_113 = arith.constant 0 : index
    %c0_114 = arith.constant 0 : index
    %263 = vector.load %arg14[%c0_113, %c0_114] : memref<2x3xf32, #tpu.memory_space<vmem>>, vector<2x3xf32>
    tpu.vector_store %arg14[%c0_113, %c0_114], %262 {strides = array<i32>} : memref<2x3xf32, #tpu.memory_space<vmem>>, vector<2x3xf32>,
    return
  }
}

</mosaic_0001>

<bundles_post_ra>
// kernel: cnn_3x3_forward.1
= control target key start
LH: loop header
LB: loop body
LE: loop exit
PB: predicated region body
PF: predicated region fallthrough
CT: control target
= control target key end

     0   :  { %19 = vsyncpa [#allocation3], 0  ;;  %s7912_s0 = inlined_call_operand.vmem [shape: bf16[128,9], index: 0, kind: input, shape index: {}]   ;;  %s7913_s1 = inlined_call_operand.vmem [shape: bf16[9,64], index: 1, kind: input, shape index: {}]   ;;  %s7914_s2 = inlined_call_operand.vmem [shape: bf16[9,64,128], index: 2, kind: input, shape index: {}]   ;;  %s7915_s3 = inlined_call_operand.vmem [shape: bf16[4,128,256], index: 3, kind: input, shape index: {}]   ;;  %s7916_s4 = inlined_call_operand.hbm [shape: bf16[4,256,512], index: 4, kind: input, shape index: {}]   ;;  %s7917_s5 = inlined_call_operand.vmem [shape: f32[3,64], index: 5, kind: input, shape index: {}]   ;;  %s7918_s6 = inlined_call_operand.vmem [shape: f32[3,128], index: 6, kind: input, shape index: {}]   ;;  %s7919_s7 = inlined_call_operand.vmem [shape: f32[3,256], index: 7, kind: input, shape index: {}]   ;;  %s7920_s8 = inlined_call_operand.vmem [shape: f32[3,512], index: 8, kind: input, shape index: {}]   ;;  %s7921_s9 = inlined_call_operand.vmem [shape: bf16[288,32], index: 9, kind: input, shape index: {}]   ;;  %s7922_s10 = inlined_call_operand.vmem [shape: bf16[72,8], index: 10, kind: input, shape index: {}]   ;;  %s7923_s11 = inlined_call_operand.vmem [shape: bf16[32,2], index: 11, kind: input, shape index: {}]   ;;  %s7924_s12 = inlined_call_operand.vmem [shape: bf16[512,3], index: 12, kind: input, shape index: {}]   ;;  %s7925_s13 = inlined_call_operand.vmem [shape: f32[1,3], index: 13, kind: input, shape index: {}]   ;;  %s7926_s14 = inlined_call_operand.hbm [shape: f32[2,3], index: 14, kind: output, shape index: {}]  }
   0x1   :  { %20 = vsyncpa [#allocation4], 0  ;;  %s6823_s29 = smov [#allocation2]  }
   0x2   :  { %s34_s30 = sshll.u32 %s6823_s29, 4  ;;  %s35_s30 = int_to_ptr.vmem [resolvable:$true] %s34_s30 }
   0x3   :  { %s6787_s15 = scalar_lea.vmem %s35_s30, 32768  ;;  %p6792_p1 = scmp.lt.s32.totalorder %s35_s30, %s35_s30 }
   0x4   :  { %p6788_p0 = scmp.ne.s32.totalorder %s35_s30, %s6787_s15  ;;  %p6793_p2 = scmp.lt.s32.totalorder %s6787_s15, %s6787_s15 }
   0x6   :  { %p6794_p3 = por %p6793_p2, %p6792_p1 }
   0x8   :  { %p6795_p4 = pnand %p6794_p3, %p6788_p0 }
   0xa   :  { %6798 = shalt.err (!%p6795_p4)
}
   0xb   :  { %s6824_s16 = smov 256   ;;  %s6825_s17 = smov 16  }
   0xc   :  { %40 = dma.hbm_to_vmem [thread:$0]  %s7916_s4, 32768, %s35_s30, [#allocation3], %s6824_s16, %s6824_s16, %s6825_s17  }
   0xd   :  { %6819 = dma.done.wait [#allocation3], 32768  }
   0xe   :  { %6820 = vsyncadd [#allocation3], 4294934528  ;;  %vm156_vm0 = vcmask 1043456   ;;  %vm157_vm1 = vcmask 1044480   ;;  %v6826_v0 = vmov 65535   ;;  %vm131_vm2 = vcmask 72704  }
   0xf   :  { %v158_v1 = vsel %vm156_vm0, 4294967295, %v6826_v0  ;;  %v6181_v3 = vld [vmem:[%s7913_s1] sm:$0x1f]   ;;  %v6183_v6 = vld [vmem:[%s7912_s0 + $0x8] sm:$0xff]   ;;  %v6184_v7 = vld [vmem:[%s7912_s0 + $0x10] sm:$0xff]   ;;  %vm617_vm3 = vcmask 261120   ;;  %v82_v14 = vlaneseq }
  0x10   :  { %v159_v2 = vsel %vm157_vm1, %v158_v1, 0  ;;  %v6182_v4 = vld [vmem:[%s7912_s0] sm:$0xff]   ;;  %v6185_v8 = vld [vmem:[%s7912_s0 + $0x18] sm:$0xff]   ;;  %v6187_v10 = vld [vmem:[%s7912_s0 + $0x28] sm:$0xff]   ;;  %vm308_vm6 = vcmask 523264   ;;  %s6830_s18 = smov [#allocation5]  }
  0x11   :  { %v161_v5 = vand.u32 %v6181_v3, %v159_v2  ;;  %5987 = vmatprep.mubr.msk.bf16.mxu0 %vm131_vm2, %v6182_v4  ;;  %v6186_v9 = vld [vmem:[%s7912_s0 + $0x20] sm:$0xff]   ;;  %v6188_v11 = vld [vmem:[%s7912_s0 + $0x30] sm:$0xff]   ;;  %v6189_v12 = vld [vmem:[%s7912_s0 + $0x38] sm:$0xff]   ;;  %v6950_v15 = vshrl.u32 %v82_v14, 7  ;;  %s5256_s19 = sshll.u32 %s6830_s18, 4  ;;  %s5257_s19 = int_to_ptr.vmem [resolvable:$true] %s5256_s19 }
  0x12   :  { %v6190_v13 = vld [vmem:[%s7921_s9] sm:$0xff]   ;;  %s6799_s20 = scalar_lea.vmem %s5257_s19, 32  ;;  %p6804_p6 = scmp.lt.s32.totalorder %s5257_s19, %s5257_s19 }
  0x13   :  { %5985 = vmatprep.subr.bf16.mxu0 %v161_v5  ;;  %6007 = vmatprep.mubr.msk.bf16.mxu1 %vm617_vm3, %v6190_v13  ;;  %v6953_v16 = vsub.s32 0, %v6950_v15  ;;  %v6958_v17 = vld [vmem:[%s7917_s5] sm:$0x7]  ;;  %p6800_p5 = scmp.ne.s32.totalorder %s5257_s19, %s6799_s20  ;;  %p6805_p7 = scmp.lt.s32.totalorder %s6799_s20, %s6799_s20 }
  0x14   :  { %5986 = vmatpush3.bf16.msra.mxu0 %v161_v5 }
  0x15   :  { %v6962_v18 = vrot.slane %v6958_v17, %v6953_v16  ;;  %p6806_p8 = por %p6805_p7, %p6804_p6 }
  0x17   :  { %5988 = vmatmul.mubr.msk.bf16.vlgmr.msra.gmra.mxu0 %vm131_vm2, %v6183_v6  ;;  %p6807_p9 = pnand %p6806_p8, %p6800_p5 }
  0x18   :  { %5991 = vmatprep.mubr.msk.bf16.mxu0 %vm131_vm2, %v6184_v7 }
  0x1f   :  { %5992 = vmatmul.mubr.msk.bf16.gmra.mxu0 %vm131_vm2, %v6185_v8 }
  0x20   :  { %5995 = vmatprep.mubr.msk.bf16.mxu0 %vm131_vm2, %v6186_v9 }
  0x27   :  { %5996 = vmatmul.mubr.msk.bf16.gmra.mxu0 %vm131_vm2, %v6187_v10 }
  0x28   :  { %5999 = vmatprep.mubr.msk.bf16.mxu0 %vm131_vm2, %v6188_v11 }
  0x2f   :  { %6000 = vmatmul.mubr.msk.bf16.gmra.mxu0 %vm131_vm2, %v6189_v12 }
  0xd7   :  { %v5989_v19 = vpop.f32.mrf.mxu0 }
  0xd8   :  { %v206_v20 = vadd.f32 %v5989_v19, %v6962_v18 }
  0xd9   :  { %v197_v21 = vpop.f32.mrf.mxu0 }
  0xda   :  { %vm262_vm4 = vcmp.ge.f32.partialorder %v206_v20, 0.0  ;;  %v278_v22 = vmul.f32 0.01, %v206_v20  ;;  %v198_v23 = vadd.f32 %v197_v21, %v6962_v18 }
  0xdb   :  { %v5990_v24 = vpop.f32.mrf.mxu0 }
  0xdc   :  { %v6966_v25 = vsel %vm262_vm4, %v206_v20, %v278_v22  ;;  %vm260_vm5 = vcmp.ge.f32.partialorder %v198_v23, 0.0  ;;  %v276_v26 = vmul.f32 0.01, %v198_v23  ;;  %v209_v27 = vadd.f32 %v5990_v24, %v6962_v18 }
  0xdd   :  { %v200_v28 = vpop.f32.mrf.mxu0  ;;  %v349_v32 = vmul.f32 %v6966_v25, %v6966_v25  ;;  %v312_v37 = vsel %vm308_vm6, %v6966_v25, 0.0 }
  0xde   :  { %v6969_v29 = vsel %vm260_vm5, %v198_v23, %v276_v26  ;;  %vm263_vm7 = vcmp.ge.f32.partialorder %v209_v27, 0.0  ;;  %v279_v30 = vmul.f32 0.01, %v209_v27  ;;  %v201_v31 = vadd.f32 %v200_v28, %v6962_v18 }
  0xdf   :  { %v5993_v33 = vpop.f32.mrf.mxu0  ;;  %v347_v38 = vmul.f32 %v6969_v29, %v6969_v29  ;;  %v309_v43 = vsel %vm308_vm6, %v6969_v29, 0.0  ;;  %v366_v48 = vsel %vm308_vm6, %v349_v32, 0.0 }
  0xe0   :  { %v6974_v34 = vsel %vm263_vm7, %v209_v27, %v279_v30  ;;  %vm261_vm8 = vcmp.ge.f32.partialorder %v201_v31, 0.0  ;;  %v277_v35 = vmul.f32 0.01, %v201_v31  ;;  %v222_v36 = vadd.f32 %v5993_v33, %v6962_v18 }
  0xe1   :  { %v213_v39 = vpop.f32.mrf.mxu0  ;;  %v350_v44 = vmul.f32 %v6974_v34, %v6974_v34  ;;  %v363_v51 = vsel %vm308_vm6, %v347_v38, 0.0  ;;  %v314_v60 = vsel %vm308_vm6, %v6974_v34, 0.0 }
  0xe2   :  { %v6981_v40 = vsel %vm261_vm8, %v201_v31, %v277_v35  ;;  %vm266_vm9 = vcmp.ge.f32.partialorder %v222_v36, 0.0  ;;  %v282_v41 = vmul.f32 0.01, %v222_v36  ;;  %v214_v42 = vadd.f32 %v213_v39, %v6962_v18 }
  0xe3   :  { %v310_v45 = vsel %vm308_vm6, %v6981_v40, 0.0  ;;  %v348_v46 = vmul.f32 %v6981_v40, %v6981_v40  ;;  %v5994_v47 = vpop.f32.mrf.mxu0  ;;  %v368_v61 = vsel %vm308_vm6, %v350_v44, 0.0 }
  0xe4   :  { %v311_v49 = vadd.f32 %v310_v45, %v309_v43  ;;  %vm264_vm10 = vcmp.ge.f32.partialorder %v214_v42, 0.0  ;;  %v280_v50 = vmul.f32 0.01, %v214_v42  ;;  %v6995_v53 = vsel %vm266_vm9, %v222_v36, %v282_v41 }
  0xe5   :  { %v364_v52 = vsel %vm308_vm6, %v348_v46, 0.0  ;;  %v225_v54 = vadd.f32 %v5994_v47, %v6962_v18  ;;  %v216_v55 = vpop.f32.mrf.mxu0  ;;  %v320_v3 = vsel %vm308_vm6, %v6995_v53, 0.0  ;;  %v353_v12 = vmul.f32 %v6995_v53, %v6995_v53 }
  0xe6   :  { %v313_v56 = vadd.f32 %v312_v37, %v311_v49  ;;  %v365_v57 = vadd.f32 %v364_v52, %v363_v51  ;;  %v6998_v58 = vsel %vm264_vm10, %v214_v42, %v280_v50  ;;  %v217_v59 = vadd.f32 %v216_v55, %v6962_v18 }
  0xe7   :  { %v351_v62 = vmul.f32 %v6998_v58, %v6998_v58  ;;  %vm267_vm11 = vcmp.ge.f32.partialorder %v225_v54, 0.0  ;;  %v5997_v63 = vpop.f32.mrf.mxu0  ;;  %v283_v2 = vmul.f32 0.01, %v225_v54  ;;  %v316_v4 = vsel %vm308_vm6, %v6998_v58, 0.0 }
  0xe8   :  { %v367_v0 = vadd.f32 %v366_v48, %v365_v57  ;;  %v315_v1 = vadd.f32 %v314_v60, %v313_v56  ;;  %vm265_vm12 = vcmp.ge.f32.partialorder %v217_v59, 0.0  ;;  %v281_v5 = vmul.f32 0.01, %v217_v59 }
  0xe9   :  { %v238_v6 = vadd.f32 %v5997_v63, %v6962_v18  ;;  %v229_v7 = vpop.f32.mrf.mxu0  ;;  %v7011_v10 = vsel %vm267_vm11, %v225_v54, %v283_v2  ;;  %v370_v13 = vsel %vm308_vm6, %v351_v62, 0.0  ;;  %v374_v35 = vsel %vm308_vm6, %v353_v12, 0.0 }
  0xea   :  { %v317_v8 = vadd.f32 %v316_v4, %v315_v1  ;;  %v369_v9 = vadd.f32 %v368_v61, %v367_v0  ;;  %v230_v11 = vadd.f32 %v229_v7, %v6962_v18  ;;  %v7017_v14 = vsel %vm265_vm12, %v217_v59, %v281_v5 }
  0xeb   :  { %vm270_vm13 = vcmp.ge.f32.partialorder %v238_v6, 0.0  ;;  %v5998_v19 = vpop.f32.mrf.mxu0  ;;  %v318_v21 = vsel %vm308_vm6, %v7017_v14, 0.0  ;;  %v352_v22 = vmul.f32 %v7017_v14, %v7017_v14  ;;  %v286_v23 = vmul.f32 0.01, %v238_v6 }
  0xec   :  { %v371_v20 = vadd.f32 %v370_v13, %v369_v9  ;;  %v354_v24 = vmul.f32 %v7011_v10, %v7011_v10  ;;  %v319_v26 = vadd.f32 %v318_v21, %v317_v8  ;;  %vm268_vm14 = vcmp.ge.f32.partialorder %v230_v11, 0.0 }
  0xed   :  { %v284_v27 = vmul.f32 0.01, %v230_v11  ;;  %v232_v28 = vpop.f32.mrf.mxu0  ;;  %v372_v30 = vsel %vm308_vm6, %v352_v22, 0.0  ;;  %v7026_v31 = vsel %vm270_vm13, %v238_v6, %v286_v23  ;;  %v241_v32 = vadd.f32 %v5998_v19, %v6962_v18 }
  0xee   :  { %v233_v33 = vadd.f32 %v232_v28, %v6962_v18  ;;  %v321_v36 = vadd.f32 %v320_v3, %v319_v26  ;;  %v373_v37 = vadd.f32 %v372_v30, %v371_v20  ;;  %v322_v39 = vsel %vm308_vm6, %v7011_v10, 0.0 }
  0xef   :  { %v6001_v38 = vpop.f32.mrf.mxu0  ;;  %v7033_v41 = vsel %vm268_vm14, %v230_v11, %v284_v27  ;;  %vm271_vm15 = vcmp.ge.f32.partialorder %v241_v32, 0.0  ;;  %v287_v42 = vmul.f32 0.01, %v241_v32  ;;  %v357_v44 = vmul.f32 %v7026_v31, %v7026_v31 }
  0xf0   :  { %v375_v43 = vadd.f32 %v374_v35, %v373_v37  ;;  %v323_v45 = vadd.f32 %v322_v39, %v321_v36  ;;  %vm269_vm2 = vcmp.ge.f32.partialorder %v233_v33, 0.0  ;;  %v376_v47 = vsel %vm308_vm6, %v354_v24, 0.0 }
  0xf1   :  { %v245_v46 = vpop.f32.mrf.mxu0  ;;  %v324_v48 = vsel %vm308_vm6, %v7033_v41, 0.0  ;;  %v355_v49 = vmul.f32 %v7033_v41, %v7033_v41  ;;  %v285_v50 = vmul.f32 0.01, %v233_v33  ;;  %v7042_v54 = vsel %vm271_vm15, %v241_v32, %v287_v42 }
  0xf2   :  { %v325_v51 = vadd.f32 %v324_v48, %v323_v45  ;;  %v377_v52 = vadd.f32 %v376_v47, %v375_v43  ;;  %v254_v55 = vadd.f32 %v6001_v38, %v6962_v18  ;;  %v328_v57 = vsel %vm308_vm6, %v7026_v31, 0.0 }
  0xf3   :  { %v6002_v56 = vpop.f32.mrf.mxu0  ;;  %v378_v59 = vsel %vm308_vm6, %v355_v49, 0.0  ;;  %v7048_v60 = vsel %vm269_vm2, %v233_v33, %v285_v50  ;;  %v382_v61 = vsel %vm308_vm6, %v357_v44, 0.0  ;;  %v358_v2 = vmul.f32 %v7042_v54, %v7042_v54 }
  0xf4   :  { %v379_v62 = vadd.f32 %v378_v59, %v377_v52  ;;  %v326_v63 = vsel %vm308_vm6, %v7048_v60, 0.0  ;;  %v356_v0 = vmul.f32 %v7048_v60, %v7048_v60  ;;  %v246_v4 = vadd.f32 %v245_v46, %v6962_v18  ;;  %v6208_v46 = vld [vmem:[%s7914_s2 + $0x38] sm:$0xff]  }
  0xf5   :  { %v248_v1 = vpop.f32.mrf.mxu0  ;;  %v327_v3 = vadd.f32 %v326_v63, %v325_v51  ;;  %v257_v5 = vadd.f32 %v6002_v56, %v6962_v18  ;;  %vm274_vm4 = vcmp.ge.f32.partialorder %v254_v55, 0.0  ;;  %v290_v7 = vmul.f32 0.01, %v254_v55  ;;  %6043 = vmatprep.subr.bf16.mxu0 %v6208_v46 }
  0xf6   :  { %v380_v6 = vsel %vm308_vm6, %v356_v0, 0.0  ;;  %v249_v8 = vadd.f32 %v248_v1, %v6962_v18  ;;  %vm272_vm5 = vcmp.ge.f32.partialorder %v246_v4, 0.0  ;;  %v288_v12 = vmul.f32 0.01, %v246_v4  ;;  %6044 = vmatpush3.bf16.msra.mxu0 %v6208_v46 }
  0xf7   :  { %v329_v9 = vadd.f32 %v328_v57, %v327_v3  ;;  %v381_v11 = vadd.f32 %v380_v6, %v379_v62  ;;  %v330_v13 = vsel %vm308_vm6, %v7042_v54, 0.0  ;;  %vm275_vm7 = vcmp.ge.f32.partialorder %v257_v5, 0.0 }
  0xf8   :  { %v291_v19 = vmul.f32 0.01, %v257_v5  ;;  %vm273_vm8 = vcmp.ge.f32.partialorder %v249_v8, 0.0  ;;  %v7063_v21 = vsel %vm272_vm5, %v246_v4, %v288_v12  ;;  %v289_v23 = vmul.f32 0.01, %v249_v8 }
  0xf9   :  { %v383_v20 = vadd.f32 %v382_v61, %v381_v11  ;;  %v331_v22 = vadd.f32 %v330_v13, %v329_v9  ;;  %v384_v24 = vsel %vm308_vm6, %v358_v2, 0.0  ;;  %v7067_v26 = vsel %vm274_vm4, %v254_v55, %v290_v7 }
  0xfa   :  { %v332_v18 = vsel %vm308_vm6, %v7063_v21, 0.0  ;;  %v359_v27 = vmul.f32 %v7063_v21, %v7063_v21  ;;  %v7074_v33 = vsel %vm275_vm7, %v257_v5, %v291_v19  ;;  %v305_v35 = vsel %vm273_vm8, %v249_v8, %v289_v23 }
  0xfb   :  { %v333_v28 = vadd.f32 %v332_v18, %v331_v22  ;;  %v385_v30 = vadd.f32 %v384_v24, %v383_v20  ;;  %v361_v36 = vmul.f32 %v7067_v26, %v7067_v26  ;;  %v334_v38 = vsel %vm308_vm6, %v305_v35, 0.0 }
  0xfc   :  { %v386_v32 = vsel %vm308_vm6, %v359_v27, 0.0  ;;  %v360_v39 = vmul.f32 %v305_v35, %v305_v35  ;;  %v336_v43 = vsel %vm308_vm6, %v7067_v26, 0.0  ;;  %v362_v44 = vmul.f32 %v7074_v33, %v7074_v33 }
  0xfd   :  { %v387_v37 = vadd.f32 %v386_v32, %v385_v30  ;;  %v335_v42 = vadd.f32 %v334_v38, %v333_v28  ;;  %v390_v49 = vsel %vm308_vm6, %v361_v36, 0.0  ;;  %v338_v50 = vsel %vm308_vm6, %v7074_v33, 0.0 }
  0xfe   :  { %v388_v45 = vsel %vm308_vm6, %v360_v39, 0.0  ;;  %v392_v55 = vsel %vm308_vm6, %v362_v44, 0.0  ;;  %v7096_v13 = vsub.s32 1, %v6950_v15  ;;  %v7099_v19 = vsub.s32 2, %v6950_v15 }
  0xff   :  { %v337_v47 = vadd.f32 %v336_v43, %v335_v42  ;;  %v389_v48 = vadd.f32 %v388_v45, %v387_v37  ;;  %vm1795_vm12 = vcmask 64512   ;;  %vm2561_vm5 = vcmask 1041408  }
 0x100   :  { %v7103_v20 = vrot.slane %v6958_v17, %v7096_v13  ;;  %v7107_v22 = vrot.slane %v6958_v17, %v7099_v19  ;;  %vm2698_vm8 = vcmask 1040384  }
 0x101   :  { %v339_v51 = vadd.f32 %v338_v50, %v337_v47  ;;  %v391_v52 = vadd.f32 %v390_v49, %v389_v48 }
 0x103   :  { %v340_v56 = vrot.slane %v339_v51, 4  ;;  %v393_v57 = vadd.f32 %v392_v55, %v391_v52 }
 0x105   :  { %v341_v59 = vadd.f32 %v340_v56, %v339_v51  ;;  %v394_v61 = vrot.slane %v393_v57, 4 }
 0x107   :  { %v342_v62 = vrot.slane %v341_v59, 2  ;;  %v395_v63 = vadd.f32 %v394_v61, %v393_v57 }
 0x109   :  { %v343_v0 = vadd.f32 %v342_v62, %v341_v59  ;;  %v396_v1 = vrot.slane %v395_v63, 2 }
 0x10b   :  { %v344_v2 = vrot.slane %v343_v0, 1  ;;  %v397_v3 = vadd.f32 %v396_v1, %v395_v63 }
 0x10d   :  { %v345_v4 = vadd.f32 %v344_v2, %v343_v0  ;;  %v398_v5 = vrot.slane %v397_v3, 1 }
 0x10f   :  { %v7091_v6 = vmul.f32 0.0078125, %v345_v4  ;;  %v399_v7 = vadd.f32 %v398_v5, %v397_v3 }
 0x111   :  { %v400_v8 = vmul.f32 0.0078125, %v399_v7  ;;  %v401_v9 = vmul.f32 %v7091_v6, %v7091_v6  ;;  %v416_v23 = vsub.f32 %v305_v35, %v7091_v6  ;;  %v405_v24 = vsub.f32 %v6966_v25, %v7091_v6 }
 0x112   :  { %v406_v18 = vsub.f32 %v6974_v34, %v7091_v6  ;;  %v409_v27 = vsub.f32 %v6995_v53, %v7091_v6  ;;  %v410_v28 = vsub.f32 %v7011_v10, %v7091_v6  ;;  %v413_v30 = vsub.f32 %v7026_v31, %v7091_v6 }
 0x113   :  { %v402_v11 = vsub.f32 %v400_v8, %v401_v9  ;;  %v414_v17 = vsub.f32 %v7042_v54, %v7091_v6  ;;  %v417_v32 = vsub.f32 %v7067_v26, %v7091_v6  ;;  %v418_v25 = vsub.f32 %v7074_v33, %v7091_v6 }
 0x114   :  { %v403_v34 = vsub.f32 %v6969_v29, %v7091_v6  ;;  %v404_v53 = vsub.f32 %v6981_v40, %v7091_v6  ;;  %v407_v10 = vsub.f32 %v6998_v58, %v7091_v6  ;;  %v408_v31 = vsub.f32 %v7017_v14, %v7091_v6 }
 0x115   :  { %v419_v12 = vadd.f32 1e-05, %v402_v11  ;;  %v411_v54 = vsub.f32 %v7033_v41, %v7091_v6  ;;  %v412_v26 = vsub.f32 %v7048_v60, %v7091_v6  ;;  %v415_v33 = vsub.f32 %v7063_v21, %v7091_v6 }
 0x117   :  { %6763 = vrsqrt.f32 %v419_v12 }
 0x124   :  { %v6764_v35 = vpop.eup %6763 }
 0x125   :  { %v434_v29 = vmul.f32 %v6764_v35, %v416_v23  ;;  %v423_v36 = vmul.f32 %v6764_v35, %v405_v24  ;;  %v424_v37 = vmul.f32 %v6764_v35, %v406_v18  ;;  %v427_v40 = vmul.f32 %v6764_v35, %v409_v27 }
 0x126   :  { %v428_v38 = vmul.f32 %v6764_v35, %v410_v28  ;;  %v431_v39 = vmul.f32 %v6764_v35, %v413_v30  ;;  %v432_v58 = vmul.f32 %v6764_v35, %v414_v17  ;;  %v435_v42 = vmul.f32 %v6764_v35, %v417_v32 }
 0x127   :  { %v454_v43 = vmul.f32 %v7103_v20, %v434_v29  ;;  %v436_v14 = vmul.f32 %v6764_v35, %v418_v25  ;;  %v443_v44 = vmul.f32 %v7103_v20, %v423_v36  ;;  %v444_v41 = vmul.f32 %v7103_v20, %v424_v37 }
 0x128   :  { %v447_v60 = vmul.f32 %v7103_v20, %v427_v40  ;;  %v448_v45 = vmul.f32 %v7103_v20, %v428_v38  ;;  %v451_v21 = vmul.f32 %v7103_v20, %v431_v39  ;;  %v452_v46 = vmul.f32 %v7103_v20, %v432_v58  ;;  %v6191_v40 = vld [vmem:[%s7921_s9 + $0x8] sm:$0xff]   ;;  %v6192_v38 = vld [vmem:[%s7921_s9 + $0x10] sm:$0xff]   ;;  %v6194_v39 = vld [vmem:[%s7921_s9 + $0x20] sm:$0xff]  }
 0x129   :  { %v455_v47 = vmul.f32 %v7103_v20, %v435_v42  ;;  %v456_v48 = vmul.f32 %v7103_v20, %v436_v14  ;;  %v463_v49 = vadd.f32 %v7107_v22, %v443_v44  ;;  %v464_v50 = vadd.f32 %v7107_v22, %v444_v41  ;;  %v6195_v58 = vld [vmem:[%s7921_s9 + $0x28] sm:$0xff]   ;;  %v6196_v42 = vld [vmem:[%s7921_s9 + $0x30] sm:$0xff]   ;;  %v6198_v14 = vld [vmem:[%s7921_s9 + $0x40] sm:$0xff]  }
 0x12a   :  { %v467_v51 = vadd.f32 %v7107_v22, %v447_v60  ;;  %v468_v52 = vadd.f32 %v7107_v22, %v448_v45  ;;  %v471_v55 = vadd.f32 %v7107_v22, %v451_v21  ;;  %v472_v56 = vadd.f32 %v7107_v22, %v452_v46  ;;  %v6199_v44 = vld [vmem:[%s7921_s9 + $0x48] sm:$0xff]   ;;  %v6200_v41 = vld [vmem:[%s7921_s9 + $0x50] sm:$0xff]   ;;  %v6201_v60 = vld [vmem:[%s7921_s9 + $0x58] sm:$0xff]  }
 0x12b   :  { %v475_v57 = vadd.f32 %v7107_v22, %v455_v47  ;;  %v476_v59 = vadd.f32 %v7107_v22, %v456_v48  ;;  %v421_v61 = vmul.f32 %v6764_v35, %v403_v34  ;;  %v422_v62 = vmul.f32 %v6764_v35, %v404_v53  ;;  %v6202_v45 = vld [vmem:[%s7921_s9 + $0x60] sm:$0xff]   ;;  %v6203_v21 = vld [vmem:[%s7921_s9 + $0x68] sm:$0xff]   ;;  %v6204_v46 = vld [vmem:[%s7921_s9 + $0x70] sm:$0xff]  }
 0x12c   :  { %v479_v63 = vmax.f32 %v463_v49, %v467_v51  ;;  %v480_v0 = vmax.f32 %v464_v50, %v468_v52  ;;  %v425_v1 = vmul.f32 %v6764_v35, %v407_v10  ;;  %v426_v2 = vmul.f32 %v6764_v35, %v408_v31  ;;  %v6205_v47 = vld [vmem:[%s7921_s9 + $0x78] sm:$0xff]   ;;  %v6206_v48 = vld [vmem:[%s7921_s9 + $0x80] sm:$0xff]   ;;  %v6207_v49 = vld [vmem:[%s7921_s9 + $0x88] sm:$0xff]  }
 0x12d   :  { %v483_v3 = vmax.f32 %v471_v55, %v475_v57  ;;  %v484_v4 = vmax.f32 %v472_v56, %v476_v59  ;;  %v429_v5 = vmul.f32 %v6764_v35, %v411_v54  ;;  %v430_v6 = vmul.f32 %v6764_v35, %v412_v26  ;;  %v6209_v50 = vld [vmem:[%s7914_s2 + $0x78] sm:$0xff]   ;;  %v6210_v51 = vld [vmem:[%s7914_s2 + $0x30] sm:$0xff]   ;;  %v6211_v52 = vld [vmem:[%s7914_s2 + $0x28] sm:$0xff]  }
 0x12e   :  { %v433_v7 = vmul.f32 %v6764_v35, %v415_v33  ;;  %v441_v8 = vmul.f32 %v7103_v20, %v421_v61  ;;  %v442_v9 = vmul.f32 %v7103_v20, %v422_v62  ;;  %v445_v11 = vmul.f32 %v7103_v20, %v425_v1  ;;  %6045 = vmatprep.subr.bf16.mxu0 %v6210_v51  ;;  %v6212_v55 = vld [vmem:[%s7914_s2 + $0x20] sm:$0xff]   ;;  %v6213_v56 = vld [vmem:[%s7914_s2 + $0x18] sm:$0xff]   ;;  %v6215_v57 = vld [vmem:[%s7914_s2 + $0x70] sm:$0xff]  }
 0x12f   :  { %v487_v12 = vmax.f32 %v479_v63, %v483_v3  ;;  %v488_v23 = vmax.f32 %v480_v0, %v484_v4  ;;  %v446_v24 = vmul.f32 %v7103_v20, %v426_v2  ;;  %v449_v18 = vmul.f32 %v7103_v20, %v429_v5  ;;  %6046 = vmatpush3.bf16.msra.mxu0 %v6210_v51  ;;  %v6219_v59 = vld [vmem:[%s7914_s2 + $0x68] sm:$0xff]   ;;  %v6221_v61 = vld [vmem:[%s7914_s2 + $0x60] sm:$0xff]   ;;  %v6223_v62 = vld [vmem:[%s7914_s2 + $0xb8] sm:$0xff]  }
 0x130   :  { %v450_v27 = vmul.f32 %v7103_v20, %v430_v6  ;;  %v453_v28 = vmul.f32 %v7103_v20, %v433_v7  ;;  %v461_v30 = vadd.f32 %v7107_v22, %v441_v8  ;;  %v462_v17 = vadd.f32 %v7107_v22, %v442_v9  ;;  %6047 = vmatprep.subr.bf16.mxu0 %v6211_v52  ;;  %v6214_v9 = vld [vmem:[%s7914_s2 + $0x10] sm:$0xff]  }
 0x131   :  { %v526_v32 = vpack.c.bf16 %v488_v23, %v487_v12  ;;  %v465_v25 = vadd.f32 %v7107_v22, %v445_v11  ;;  %v466_v34 = vadd.f32 %v7107_v22, %v446_v24  ;;  %v469_v53 = vadd.f32 %v7107_v22, %v449_v18  ;;  %v6216_v24 = vld [vmem:[%s7914_s2 + $0x8] sm:$0xff]  }
 0x132   :  { %v470_v10 = vadd.f32 %v7107_v22, %v450_v27  ;;  %v473_v35 = vadd.f32 %v7107_v22, %v453_v28  ;;  %v474_v31 = vadd.f32 %v7107_v22, %v454_v43  ;;  %v6193_v22 = vld [vmem:[%s7921_s9 + $0x18] sm:$0xff]   ;;  %v6217_v28 = vld [vmem:[%s7914_s2] sm:$0xff]  }
 0x133   :  { %6003 = vmatprep.subr.bf16.mxu1 %v526_v32  ;;  %v477_v54 = vmax.f32 %v461_v30, %v465_v25  ;;  %v478_v20 = vmax.f32 %v462_v17, %v466_v34  ;;  %v6197_v43 = vld [vmem:[%s7921_s9 + $0x38] sm:$0xff]   ;;  %6048 = vmatpush3.bf16.msra.mxu0 %v6211_v52 }
 0x134   :  { %6004 = vmatpush3.bf16.msra.mxu1 %v526_v32  ;;  %v481_v26 = vmax.f32 %v469_v53, %v473_v35  ;;  %v482_v33 = vmax.f32 %v470_v10, %v474_v31  ;;  %6049 = vmatprep.subr.bf16.mxu0 %v6212_v55  ;;  %v6218_v32 = vld [vmem:[%s7914_s2 + $0x58] sm:$0xff]  }
 0x136   :  { %v485_v29 = vmax.f32 %v477_v54, %v481_v26  ;;  %v486_v36 = vmax.f32 %v478_v20, %v482_v33  ;;  %v6220_v54 = vld [vmem:[%s7914_s2 + $0x50] sm:$0xff]  }
 0x137   :  { %6050 = vmatpush3.bf16.msra.mxu0 %v6212_v55  ;;  %v6225_v26 = vld [vmem:[%s7914_s2 + $0xb0] sm:$0xff]   ;;  %v6235_v55 = vld [vmem:[%s7914_s2 + $0xe8] sm:$0xff]  }
 0x138   :  { %v525_v37 = vpack.c.bf16 %v486_v36, %v485_v29  ;;  %6055 = vmatprep.subr.bf16.mxu0 %v6213_v56  ;;  %v6222_v29 = vld [vmem:[%s7914_s2 + $0x48] sm:$0xff]  }
 0x13a   :  { %6005 = vmatprep.subr.bf16.mxu1 %v525_v37 }
 0x13b   :  { %6006 = vmatpush3.bf16.msra.mxu1 %v525_v37  ;;  %v6227_v37 = vld [vmem:[%s7914_s2 + $0xa8] sm:$0xff]  }
 0x13c   :  { %6079 = vmatprep.subr.bf16.mxu1 %v6209_v50 }
 0x13e   :  { %6008 = vmatmul.mubr.msk.bf16.vlgmr.msra.gmra.mxu1 %vm617_vm3, %v6191_v40 }
 0x13f   :  { %6011 = vmatprep.mubr.msk.bf16.mxu1 %vm617_vm3, %v6192_v38  ;;  %6080 = vmatpush3.bf16.msra.mxu1 %v6209_v50  ;;  %v6224_v38 = vld [vmem:[%s7914_s2 + $0x40] sm:$0xff]   ;;  %v6230_v50 = vld [vmem:[%s7914_s2 + $0x88] sm:$0xff]  }
 0x140   :  { %6081 = vmatprep.subr.bf16.mxu1 %v6215_v57 }
 0x143   :  { %6082 = vmatpush3.bf16.msra.mxu1 %v6215_v57 }
 0x144   :  { %6083 = vmatprep.subr.bf16.mxu1 %v6219_v59 }
 0x146   :  { %6012 = vmatmul.mubr.msk.bf16.gmra.mxu1 %vm617_vm3, %v6193_v22 }
 0x147   :  { %6015 = vmatprep.mubr.msk.bf16.mxu1 %vm617_vm3, %v6194_v39  ;;  %6084 = vmatpush3.bf16.msra.mxu1 %v6219_v59  ;;  %v6229_v39 = vld [vmem:[%s7914_s2 + $0xa0] sm:$0xff]  }
 0x148   :  { %6085 = vmatprep.subr.bf16.mxu1 %v6221_v61 }
 0x14b   :  { %6086 = vmatpush3.bf16.msra.mxu1 %v6221_v61  ;;  %v6237_v61 = vld [vmem:[%s7914_s2 + $0xe0] sm:$0xff]  }
 0x14c   :  { %6103 = vmatprep.subr.bf16.mxu1 %v6223_v62 }
 0x14e   :  { %6016 = vmatmul.mubr.msk.bf16.gmra.mxu1 %vm617_vm3, %v6195_v58 }
 0x14f   :  { %6019 = vmatprep.mubr.msk.bf16.mxu1 %vm617_vm3, %v6196_v42  ;;  %v6226_v42 = vld [vmem:[%s7914_s2 + $0x98] sm:$0xff]  }
 0x156   :  { %6020 = vmatmul.mubr.msk.bf16.gmra.mxu1 %vm617_vm3, %v6197_v43 }
 0x157   :  { %6023 = vmatprep.mubr.msk.bf16.mxu1 %vm617_vm3, %v6198_v14  ;;  %v6231_v14 = vld [vmem:[%s7914_s2 + $0xf8] sm:$0xff]  }
 0x15e   :  { %6024 = vmatmul.mubr.msk.bf16.gmra.mxu1 %vm617_vm3, %v6199_v44 }
 0x15f   :  { %6027 = vmatprep.mubr.msk.bf16.mxu1 %vm617_vm3, %v6200_v41 }
 0x166   :  { %6028 = vmatmul.mubr.msk.bf16.gmra.mxu1 %vm617_vm3, %v6201_v60 }
 0x167   :  { %6031 = vmatprep.mubr.msk.bf16.mxu1 %vm617_vm3, %v6202_v45 }
 0x16e   :  { %6032 = vmatmul.mubr.msk.bf16.gmra.mxu1 %vm617_vm3, %v6203_v21  ;;  %v6228_v21 = vld [vmem:[%s7914_s2 + $0x90] sm:$0xff]  }
 0x16f   :  { %6035 = vmatprep.mubr.msk.bf16.mxu1 %vm617_vm3, %v6204_v46 }
 0x176   :  { %6036 = vmatmul.mubr.msk.bf16.gmra.mxu1 %vm617_vm3, %v6205_v47 }
 0x177   :  { %6039 = vmatprep.mubr.msk.bf16.mxu1 %vm617_vm3, %v6206_v48 }
 0x17e   :  { %6040 = vmatmul.mubr.msk.bf16.gmra.mxu1 %vm617_vm3, %v6207_v49  ;;  %v6233_v49 = vld [vmem:[%s7914_s2 + $0xf0] sm:$0xff]   ;;  %vm6828_vm3 = vmmov 0  }
 0x1fe   :  { %v6009_v63 = vpop.f32.mrf.mxu1 }
 0x200   :  { %v706_v0 = vpop.f32.mrf.mxu1 }
 0x202   :  { %v6010_v1 = vpop.f32.mrf.mxu1 }
 0x203   :  { %v850_v31 = vpack.c.bf16 %v6010_v1, %v6009_v63 }
 0x204   :  { %v709_v2 = vpop.f32.mrf.mxu1 }
 0x205   :  { %v849_v12 = vpack.c.bf16 %v709_v2, %v706_v0 }
 0x206   :  { %v6013_v3 = vpop.f32.mrf.mxu1 }
 0x208   :  { %v722_v4 = vpop.f32.mrf.mxu1 }
 0x20a   :  { %v6014_v5 = vpop.f32.mrf.mxu1 }
 0x20b   :  { %v852_v8 = vpack.c.bf16 %v6014_v5, %v6013_v3 }
 0x20c   :  { %v725_v6 = vpop.f32.mrf.mxu1 }
 0x20d   :  { %v851_v7 = vpack.c.bf16 %v725_v6, %v722_v4  ;;  %v6236_v4 = vld [vmem:[%s7914_s2 + $0xd0] sm:$0xff]  }
 0x20e   :  { %v7270_v11 = vpop.f32.mrf.mxu1 }
 0x20f   :  { %6051 = vmatprep.mubr.msk.bf16.mxu0 %vm308_vm6, %v851_v7  ;;  %v6238_v7 = vld [vmem:[%s7914_s2 + $0xc8] sm:$0xff]  }
 0x210   :  { %6052 = vmatmul.mubr.msk.bf16.vlgmr.msra.gmra.mxu0 %vm308_vm6, %v852_v8  ;;  %v738_v23 = vpop.f32.mrf.mxu1 }
 0x211   :  { %6056 = vmatpush3.bf16.msra.mxu0 %v6213_v56  ;;  %6063 = vmatprep.mubr.msk.bf16.mxu0 %vm308_vm6, %v849_v12  ;;  %v6232_v56 = vld [vmem:[%s7914_s2 + $0x80] sm:$0xff]   ;;  %v6240_v12 = vld [vmem:[%s7914_s2 + $0x118] sm:$0xff]  }
 0x212   :  { %6057 = vmatprep.subr.bf16.mxu0 %v6214_v9  ;;  %v6018_v18 = vpop.f32.mrf.mxu1 }
 0x213   :  { %v854_v45 = vpack.c.bf16 %v6018_v18, %v7270_v11 }
 0x214   :  { %v741_v27 = vpop.f32.mrf.mxu1 }
 0x215   :  { %6058 = vmatpush3.bf16.msra.mxu0 %v6214_v9  ;;  %v853_v10 = vpack.c.bf16 %v741_v27, %v738_v23  ;;  %v6239_v9 = vld [vmem:[%s7914_s2 + $0xc0] sm:$0xff]   ;;  %v6241_v27 = vld [vmem:[%s7914_s2 + $0x110] sm:$0xff]  }
 0x216   :  { %6059 = vmatprep.subr.bf16.mxu0 %v6216_v24  ;;  %v6021_v30 = vpop.f32.mrf.mxu1 }
 0x218   :  { %v754_v17 = vpop.f32.mrf.mxu1 }
 0x219   :  { %6060 = vmatpush3.bf16.msra.mxu0 %v6216_v24 }
 0x21a   :  { %6061 = vmatprep.subr.bf16.mxu0 %v6217_v28  ;;  %v6022_v25 = vpop.f32.mrf.mxu1 }
 0x21b   :  { %v856_v34 = vpack.c.bf16 %v6022_v25, %v6021_v30  ;;  %v6243_v30 = vld [vmem:[%s7914_s2 + $0x100] sm:$0xff]  }
 0x21c   :  { %v757_v53 = vpop.f32.mrf.mxu1 }
 0x21d   :  { %6062 = vmatpush3.bf16.msra.mxu0 %v6217_v28  ;;  %v855_v35 = vpack.c.bf16 %v757_v53, %v754_v17  ;;  %v6242_v28 = vld [vmem:[%s7914_s2 + $0x108] sm:$0xff]  }
 0x21e   :  { %6067 = vmatprep.subr.bf16.mxu0 %v6218_v32  ;;  %v7287_v20 = vpop.f32.mrf.mxu1 }
 0x21f   :  { %6087 = vmatprep.mubr.msk.bf16.mxu1 %vm308_vm6, %v855_v35 }
 0x220   :  { %6064 = vmatmul.mubr.msk.bf16.vlgmr.msra.gmra.mxu0 %vm308_vm6, %v850_v31  ;;  %v770_v33 = vpop.f32.mrf.mxu1  ;;  %6088 = vmatmul.mubr.msk.bf16.vlgmr.msra.gmra.mxu1 %vm308_vm6, %v856_v34 }
 0x221   :  { %6068 = vmatpush3.bf16.msra.mxu0 %v6218_v32  ;;  %6075 = vmatprep.mubr.msk.bf16.mxu0 %vm308_vm6, %v853_v10  ;;  %v6827_v32 = vmov 0.0  }
 0x222   :  { %6069 = vmatprep.subr.bf16.mxu0 %v6220_v54  ;;  %6104 = vmatpush3.bf16.msra.mxu1 %v6223_v62  ;;  %v7299_v36 = vpop.f32.mrf.mxu1  ;;  %v6234_v62 = vld [vmem:[%s7914_s2 + $0xd8] sm:$0xff]  }
 0x223   :  { %6105 = vmatprep.subr.bf16.mxu1 %v6225_v26  ;;  %v858_v3 = vpack.c.bf16 %v7299_v36, %v7287_v20 }
 0x224   :  { %v773_v40 = vpop.f32.mrf.mxu1 }
 0x225   :  { %6070 = vmatpush3.bf16.msra.mxu0 %v6220_v54  ;;  %v857_v41 = vpack.c.bf16 %v773_v40, %v770_v33 }
 0x226   :  { %6071 = vmatprep.subr.bf16.mxu0 %v6222_v29  ;;  %6106 = vmatpush3.bf16.msra.mxu1 %v6225_v26  ;;  %v6029_v22 = vpop.f32.mrf.mxu1 }
 0x227   :  { %6107 = vmatprep.subr.bf16.mxu1 %v6227_v37 }
 0x228   :  { %v786_v58 = vpop.f32.mrf.mxu1 }
 0x229   :  { %6072 = vmatpush3.bf16.msra.mxu0 %v6222_v29 }
 0x22a   :  { %6073 = vmatprep.subr.bf16.mxu0 %v6224_v38  ;;  %6108 = vmatpush3.bf16.msra.mxu1 %v6227_v37  ;;  %v6030_v43 = vpop.f32.mrf.mxu1 }
 0x22b   :  { %6109 = vmatprep.subr.bf16.mxu1 %v6229_v39  ;;  %v860_v46 = vpack.c.bf16 %v6030_v43, %v6029_v22  ;;  %v6266_v43 = vld [vmem:[%s7915_s3 + $0xf4] ss:$8 sps:$4 sm:$0xff]  }
 0x22c   :  { %v789_v44 = vpop.f32.mrf.mxu1 }
 0x22d   :  { %6074 = vmatpush3.bf16.msra.mxu0 %v6224_v38  ;;  %v859_v60 = vpack.c.bf16 %v789_v44, %v786_v58 }
 0x22e   :  { %6091 = vmatprep.subr.bf16.mxu0 %v6226_v42  ;;  %6110 = vmatpush3.bf16.msra.mxu1 %v6229_v39  ;;  %v6033_v47 = vpop.f32.mrf.mxu1 }
 0x22f   :  { %6111 = vmatprep.mubr.msk.bf16.mxu1 %vm308_vm6, %v859_v60  ;;  %6127 = vmatprep.subr.bf16.mxu1 %v6231_v14  ;;  %v6270_v60 = vld [vmem:[%s7915_s3 + $0xe0] ss:$8 sps:$4 sm:$0xff]  }
 0x230   :  { %6076 = vmatmul.mubr.msk.bf16.vlgmr.msra.gmra.mxu0 %vm308_vm6, %v854_v45  ;;  %v802_v48 = vpop.f32.mrf.mxu1 }
 0x231   :  { %6092 = vmatpush3.bf16.msra.mxu0 %v6226_v42  ;;  %6099 = vmatprep.mubr.msk.bf16.mxu0 %vm308_vm6, %v857_v41  ;;  %v6264_v42 = vld [vmem:[%s7915_s3 + $0xf0] ss:$8 sps:$4 sm:$0xff]   ;;  %v6272_v41 = vld [vmem:[%s7915_s3 + $0xe4] ss:$8 sps:$4 sm:$0xff]  }
 0x232   :  { %6093 = vmatprep.subr.bf16.mxu0 %v6228_v21  ;;  %6112 = vmatmul.mubr.msk.bf16.vlgmr.msra.gmra.mxu1 %vm308_vm6, %v860_v46  ;;  %v6034_v51 = vpop.f32.mrf.mxu1 }
 0x233   :  { %6128 = vmatpush3.bf16.msra.mxu1 %v6231_v14  ;;  %v862_v18 = vpack.c.bf16 %v6034_v51, %v6033_v47 }
 0x234   :  { %v805_v52 = vpop.f32.mrf.mxu1  ;;  %6129 = vmatprep.subr.bf16.mxu1 %v6233_v49 }
 0x235   :  { %6094 = vmatpush3.bf16.msra.mxu0 %v6228_v21  ;;  %v861_v1 = vpack.c.bf16 %v805_v52, %v802_v48 }
 0x236   :  { %6095 = vmatprep.subr.bf16.mxu0 %v6230_v50  ;;  %v6037_v57 = vpop.f32.mrf.mxu1 }
 0x237   :  { %6130 = vmatpush3.bf16.msra.mxu1 %v6233_v49 }
 0x238   :  { %v818_v59 = vpop.f32.mrf.mxu1  ;;  %6131 = vmatprep.subr.bf16.mxu1 %v6235_v55 }
 0x239   :  { %6096 = vmatpush3.bf16.msra.mxu0 %v6230_v50 }
 0x23a   :  { %6097 = vmatprep.subr.bf16.mxu0 %v6232_v56  ;;  %v6038_v63 = vpop.f32.mrf.mxu1 }
 0x23b   :  { %6132 = vmatpush3.bf16.msra.mxu1 %v6235_v55  ;;  %v864_v5 = vpack.c.bf16 %v6038_v63, %v6037_v57 }
 0x23c   :  { %v821_v0 = vpop.f32.mrf.mxu1  ;;  %6133 = vmatprep.subr.bf16.mxu1 %v6237_v61 }
 0x23d   :  { %6098 = vmatpush3.bf16.msra.mxu0 %v6232_v56  ;;  %v863_v2 = vpack.c.bf16 %v821_v0, %v818_v59 }
 0x23e   :  { %6115 = vmatprep.subr.bf16.mxu0 %v6234_v62  ;;  %v6041_v6 = vpop.f32.mrf.mxu1 }
 0x23f   :  { %6134 = vmatpush3.bf16.msra.mxu1 %v6237_v61  ;;  %6135 = vmatprep.mubr.msk.bf16.mxu1 %vm308_vm6, %v863_v2 }
 0x240   :  { %6100 = vmatmul.mubr.msk.bf16.vlgmr.msra.gmra.mxu0 %vm308_vm6, %v858_v3  ;;  %v834_v8 = vpop.f32.mrf.mxu1  ;;  %6151 = vmatprep.subr.bf16.mxu1 %v6827_v32 }
 0x241   :  { %6116 = vmatpush3.bf16.msra.mxu0 %v6234_v62  ;;  %6123 = vmatprep.mubr.msk.bf16.mxu0 %vm308_vm6, %v861_v1 }
 0x242   :  { %6117 = vmatprep.subr.bf16.mxu0 %v6236_v4  ;;  %6136 = vmatmul.mubr.msk.bf16.vlgmr.msra.gmra.mxu1 %vm308_vm6, %v864_v5  ;;  %v6042_v11 = vpop.f32.mrf.mxu1 }
 0x243   :  { %v866_v17 = vpack.c.bf16 %v6042_v11, %v6041_v6  ;;  %6153 = vmatprep.mubr.msk.bf16.mxu1 %vm6828_vm3, %v6827_v32 }
 0x244   :  { %v837_v23 = vpop.f32.mrf.mxu1 }
 0x245   :  { %6118 = vmatpush3.bf16.msra.mxu0 %v6236_v4  ;;  %v865_v24 = vpack.c.bf16 %v837_v23, %v834_v8 }
 0x246   :  { %6119 = vmatprep.subr.bf16.mxu0 %v6238_v7 }
 0x249   :  { %6120 = vmatpush3.bf16.msra.mxu0 %v6238_v7 }
 0x24a   :  { %6121 = vmatprep.subr.bf16.mxu0 %v6239_v9 }
 0x24d   :  { %6122 = vmatpush3.bf16.msra.mxu0 %v6239_v9 }
 0x24e   :  { %6139 = vmatprep.subr.bf16.mxu0 %v6240_v12 }
 0x250   :  { %6124 = vmatmul.mubr.msk.bf16.vlgmr.msra.gmra.mxu0 %vm308_vm6, %v862_v18 }
 0x251   :  { %6140 = vmatpush3.bf16.msra.mxu0 %v6240_v12  ;;  %6147 = vmatprep.mubr.msk.bf16.mxu0 %vm308_vm6, %v865_v24 }
 0x252   :  { %6141 = vmatprep.subr.bf16.mxu0 %v6241_v27 }
 0x255   :  { %6142 = vmatpush3.bf16.msra.mxu0 %v6241_v27 }
 0x256   :  { %6143 = vmatprep.subr.bf16.mxu0 %v6242_v28 }
 0x259   :  { %6144 = vmatpush3.bf16.msra.mxu0 %v6242_v28  ;;  %v7390_v28 = vld [vmem:[%s7918_s6] sm:$0x7] }
 0x25a   :  { %6145 = vmatprep.subr.bf16.mxu0 %v6243_v30 }
 0x25d   :  { %6146 = vmatpush3.bf16.msra.mxu0 %v6243_v30 }
 0x25e   :  { %2012 = vmatprep.subr.bf16.mxu0 %v6266_v43 }
 0x260   :  { %6148 = vmatmul.mubr.msk.bf16.vlgmr.msra.gmra.mxu0 %vm308_vm6, %v866_v17 }
 0x261   :  { %2013 = vmatpush1.bf16.msra.mxu0 %v6264_v42 }
 0x262   :  { %2014 = vmatprep.subr.bf16.mxu0 %v6272_v41 }
 0x265   :  { %2015 = vmatpush1.bf16.msra.mxu0 %v6270_v60 }
 0x2d0   :  { %v6053_v25 = vpop.f32.mrf.mxu0 }
 0x2d2   :  { %v948_v34 = vpop.f32.mrf.mxu0 }
 0x2d4   :  { %v6054_v53 = vpop.f32.mrf.mxu0 }
 0x2d6   :  { %v951_v10 = vpop.f32.mrf.mxu0 }
 0x2e0   :  { %v6065_v35 = vpop.f32.mrf.mxu0  ;;  %v6089_v29 = vpop.f32.mrf.mxu1 }
 0x2e1   :  { %v1036_v45 = vadd.f32 %v6065_v35, %v6053_v25 }
 0x2e2   :  { %v1027_v31 = vpop.f32.mrf.mxu0  ;;  %v1207_v37 = vpop.f32.mrf.mxu1 }
 0x2e3   :  { %v1028_v21 = vadd.f32 %v1027_v31, %v948_v34  ;;  %v1690_v31 = vrot.slane %v7390_v28, %v6953_v16 }
 0x2e4   :  { %v6066_v54 = vpop.f32.mrf.mxu0  ;;  %v6090_v22 = vpop.f32.mrf.mxu1 }
 0x2e5   :  { %v1039_v49 = vadd.f32 %v6066_v54, %v6054_v53 }
 0x2e6   :  { %v1030_v20 = vpop.f32.mrf.mxu0  ;;  %v1210_v58 = vpop.f32.mrf.mxu1 }
 0x2e7   :  { %v1031_v56 = vadd.f32 %v1030_v20, %v951_v10 }
 0x2f0   :  { %v6077_v26 = vpop.f32.mrf.mxu0 }
 0x2f1   :  { %v1132_v47 = vadd.f32 %v6077_v26, %v1036_v45 }
 0x2f2   :  { %v1115_v33 = vpop.f32.mrf.mxu0  ;;  %v6113_v14 = vpop.f32.mrf.mxu1 }
 0x2f3   :  { %v1130_v50 = vadd.f32 %v1115_v33, %v1028_v21  ;;  %v1224_v57 = vadd.f32 %v6089_v29, %v1132_v47 }
 0x2f4   :  { %v6078_v36 = vpop.f32.mrf.mxu0  ;;  %v1391_v46 = vpop.f32.mrf.mxu1 }
 0x2f5   :  { %v1133_v52 = vadd.f32 %v6078_v36, %v1039_v49  ;;  %v1222_v59 = vadd.f32 %v1207_v37, %v1130_v50 }
 0x2f6   :  { %v1118_v40 = vpop.f32.mrf.mxu0  ;;  %v6114_v55 = vpop.f32.mrf.mxu1 }
 0x2f7   :  { %v1131_v61 = vadd.f32 %v1118_v40, %v1031_v56  ;;  %v1225_v2 = vadd.f32 %v6090_v22, %v1133_v52 }
 0x2f8   :  { %v1394_v0 = vpop.f32.mrf.mxu1 }
 0x2f9   :  { %v1223_v5 = vadd.f32 %v1210_v58, %v1131_v61 }
 0x300   :  { %v6101_v38 = vpop.f32.mrf.mxu0 }
 0x301   :  { %v1316_v62 = vadd.f32 %v6101_v38, %v1224_v57 }
 0x302   :  { %v1299_v39 = vpop.f32.mrf.mxu0  ;;  %v6137_v4 = vpop.f32.mrf.mxu1 }
 0x303   :  { %v1314_v1 = vadd.f32 %v1299_v39, %v1222_v59  ;;  %v1408_v6 = vadd.f32 %v6113_v14, %v1316_v62 }
 0x304   :  { %v6102_v44 = vpop.f32.mrf.mxu0  ;;  %v1575_v12 = vpop.f32.mrf.mxu1 }
 0x305   :  { %v1317_v3 = vadd.f32 %v6102_v44, %v1225_v2  ;;  %v1406_v8 = vadd.f32 %v1391_v46, %v1314_v1 }
 0x306   :  { %v1302_v48 = vpop.f32.mrf.mxu0  ;;  %v6138_v34 = vpop.f32.mrf.mxu1 }
 0x307   :  { %v1315_v9 = vadd.f32 %v1302_v48, %v1223_v5  ;;  %v1409_v24 = vadd.f32 %v6114_v55, %v1317_v3 }
 0x308   :  { %v1578_v29 = vpop.f32.mrf.mxu1 }
 0x309   :  { %v1407_v30 = vadd.f32 %v1394_v0, %v1315_v9 }
 0x310   :  { %v6125_v51 = vpop.f32.mrf.mxu0 }
 0x311   :  { %v1500_v11 = vadd.f32 %v6125_v51, %v1408_v6 }
 0x312   :  { %v1483_v63 = vpop.f32.mrf.mxu0 }
 0x313   :  { %v1498_v23 = vadd.f32 %v1483_v63, %v1406_v8  ;;  %v1592_v17 = vadd.f32 %v6137_v4, %v1500_v11 }
 0x314   :  { %v6126_v7 = vpop.f32.mrf.mxu0 }
 0x315   :  { %v1501_v27 = vadd.f32 %v6126_v7, %v1409_v24  ;;  %v1590_v53 = vadd.f32 %v1575_v12, %v1498_v23 }
 0x316   :  { %v1486_v18 = vpop.f32.mrf.mxu0 }
 0x317   :  { %v1499_v10 = vadd.f32 %v1486_v18, %v1407_v30  ;;  %v1593_v26 = vadd.f32 %v6138_v34, %v1501_v27  ;;  %v1746_v18 = vrot.slane %v7390_v28, %v7096_v13 }
 0x319   :  { %v1591_v38 = vadd.f32 %v1578_v29, %v1499_v10 }
 0x320   :  { %v6149_v25 = vpop.f32.mrf.mxu0 }
 0x321   :  { %v1684_v35 = vadd.f32 %v6149_v25, %v1592_v17 }
 0x322   :  { %v1667_v54 = vpop.f32.mrf.mxu0 }
 0x323   :  { %v1682_v20 = vadd.f32 %v1667_v54, %v1590_v53  ;;  %v1693_v40 = vadd.f32 %v1690_v31, %v1684_v35  ;;  %v1754_v53 = vrot.slane %v7390_v28, %v7099_v19  ;;  %v6251_v28 = vld [vmem:[%s7915_s3 + $0x74] ss:$8 sps:$4 sm:$0xff]  }
 0x324   :  { %v6150_v33 = vpop.f32.mrf.mxu0 }
 0x325   :  { %v1691_v36 = vadd.f32 %v1690_v31, %v1682_v20  ;;  %v1685_v37 = vadd.f32 %v6150_v33, %v1593_v26  ;;  %v1701_v43 = vmul.f32 0.01, %v1693_v40  ;;  %vm1697_vm9 = vcmp.ge.f32.partialorder %v1693_v40, 0.0 }
 0x326   :  { %v1670_v22 = vpop.f32.mrf.mxu0 }
 0x327   :  { %v1699_v39 = vmul.f32 0.01, %v1691_v36  ;;  %v1694_v58 = vadd.f32 %v1690_v31, %v1685_v37  ;;  %v1683_v42 = vadd.f32 %v1670_v22, %v1591_v38  ;;  %vm1695_vm6 = vcmp.ge.f32.partialorder %v1691_v36, 0.0 }
 0x328   :  { %v1705_v45 = vsel %vm1697_vm9, %v1693_v40, %v1701_v43 }
 0x329   :  { %v1692_v14 = vadd.f32 %v1690_v31, %v1683_v42  ;;  %v1703_v44 = vsel %vm1695_vm6, %v1691_v36, %v1699_v39  ;;  %v1702_v41 = vmul.f32 0.01, %v1694_v58  ;;  %vm1698_vm11 = vcmp.ge.f32.partialorder %v1694_v58, 0.0 }
 0x32a   :  { %v1717_v46 = vmul.f32 %v1703_v44, %v1703_v44  ;;  %v1719_v50 = vmul.f32 %v1705_v45, %v1705_v45 }
 0x32b   :  { %vm1696_vm10 = vcmp.ge.f32.partialorder %v1692_v14, 0.0  ;;  %v1700_v60 = vmul.f32 0.01, %v1692_v14  ;;  %v1706_v49 = vsel %vm1698_vm11, %v1694_v58, %v1702_v41  ;;  %v6254_v41 = vld [vmem:[%s7915_s3 + $0x64] ss:$8 sps:$4 sm:$0xff]  }
 0x32c   :  { %v1720_v55 = vmul.f32 %v1706_v49, %v1706_v49 }
 0x32d   :  { %v1704_v21 = vsel %vm1696_vm10, %v1692_v14, %v1700_v60  ;;  %v6244_v14 = vld [vmem:[%s7922_s10] sm:$0xff]  }
 0x32e   :  { %v1707_v47 = vadd.f32 %v1704_v21, %v1703_v44  ;;  %v1718_v48 = vmul.f32 %v1704_v21, %v1704_v21  ;;  %v6252_v60 = vld [vmem:[%s7915_s3 + $0x60] ss:$8 sps:$4 sm:$0xff]  }
 0x330   :  { %v1708_v51 = vadd.f32 %v1707_v47, %v1705_v45  ;;  %v1721_v52 = vadd.f32 %v1718_v48, %v1717_v46  ;;  %v6255_v46 = vld [vmem:[%s7915_s3 + $0x50] ss:$8 sps:$4 sm:$0xff]   ;;  %v6260_v47 = vld [vmem:[%s7915_s3 + $0x44] ss:$8 sps:$4 sm:$0xff]   ;;  %v6258_v48 = vld [vmem:[%s7915_s3 + $0x40] ss:$8 sps:$4 sm:$0xff]  }
 0x332   :  { %v1709_v56 = vadd.f32 %v1708_v51, %v1706_v49  ;;  %v1722_v57 = vadd.f32 %v1721_v52, %v1719_v50  ;;  %v6246_v50 = vld [vmem:[%s7922_s10 + $0x10] sm:$0xff]   ;;  %v6269_v52 = vld [vmem:[%s7915_s3 + $0x24] ss:$8 sps:$4 sm:$0xff]  }
 0x333   :  { %v6261_v51 = vld [vmem:[%s7915_s3 + $0x30] ss:$8 sps:$4 sm:$0xff]  }
 0x334   :  { %v1710_v59 = vrot.slane %v1709_v56, 4  ;;  %v1723_v61 = vadd.f32 %v1722_v57, %v1720_v55  ;;  %v6267_v55 = vld [vmem:[%s7915_s3 + $0x20] ss:$8 sps:$4 sm:$0xff]   ;;  %v6247_v57 = vld [vmem:[%s7922_s10 + $0x18] sm:$0xff]  }
 0x336   :  { %v1711_v62 = vadd.f32 %v1710_v59, %v1709_v56  ;;  %v1724_v63 = vrot.slane %v1723_v61, 4  ;;  %v6275_v56 = vld [vmem:[%s7915_s3 + $0x14] ss:$8 sps:$4 sm:$0xff]   ;;  %v6273_v59 = vld [vmem:[%s7915_s3 + $0x10] ss:$8 sps:$4 sm:$0xff]  }
 0x338   :  { %v1712_v0 = vrot.slane %v1711_v62, 2  ;;  %v1725_v1 = vadd.f32 %v1724_v63, %v1723_v61  ;;  %v6248_v61 = vld [vmem:[%s7922_s10 + $0x20] ss:$0 sps:$4 sm:$0xff]   ;;  %v6278_v63 = vld [vmem:[%s7915_s3 + $0xd4] ss:$8 sps:$4 sm:$0xff]  }
 0x339   :  { %2016 = vmatprep.subr.bf16.mxu0 %v6278_v63  ;;  %v6330_v63 = vld [vmem:[%s7915_s3 + $0x180] ss:$8 sps:$4 sm:$0xff]  }
 0x33a   :  { %v1713_v2 = vadd.f32 %v1712_v0, %v1711_v62  ;;  %v1726_v3 = vrot.slane %v1725_v1, 2  ;;  %v6276_v62 = vld [vmem:[%s7915_s3 + $0xd0] ss:$8 sps:$4 sm:$0xff]   ;;  %v6281_v0 = vld [vmem:[%s7915_s3 + $0x4] ss:$8 sps:$4 sm:$0xff]  }
 0x33b   :  { %2017 = vmatpush1.bf16.msra.mxu0 %v6276_v62 }
 0x33c   :  { %v1714_v4 = vrot.slane %v1713_v2, 1  ;;  %v1727_v5 = vadd.f32 %v1726_v3, %v1725_v1  ;;  %v6282_v1 = vld [vmem:[%s7915_s3 + $0xc0] ss:$8 sps:$4 sm:$0xff]   ;;  %v6829_v3 = vmov 0  }
 0x33d   :  { %2044 = vmatprep.mubr.bf16.mxu0 %v6829_v3 }
 0x33e   :  { %v1715_v6 = vadd.f32 %v1714_v4, %v1713_v2  ;;  %v1728_v7 = vrot.slane %v1727_v5, 1  ;;  %v6284_v2 = vld [vmem:[%s7915_s3 + $0xc4] ss:$8 sps:$4 sm:$0xff]   ;;  %v6285_v4 = vld [vmem:[%s7915_s3 + $0xb0] ss:$8 sps:$4 sm:$0xff]  }
 0x33f   :  { %2018 = vmatprep.subr.bf16.mxu0 %v6284_v2  ;;  %v6327_v2 = vld [vmem:[%s7915_s3 + $0x140] ss:$8 sps:$4 sm:$0xff]  }
 0x340   :  { %v1716_v8 = vmul.f32 0.03125, %v1715_v6  ;;  %v1729_v9 = vadd.f32 %v1728_v7, %v1727_v5  ;;  %2019 = vmatpush1.bf16.msra.mxu0 %v6282_v1  ;;  %v6287_v5 = vld [vmem:[%s7915_s3 + $0xb4] ss:$8 sps:$4 sm:$0xff]   ;;  %v6293_v7 = vld [vmem:[%s7915_s3 + $0xa4] ss:$8 sps:$4 sm:$0xff]  }
 0x341   :  { %2020 = vmatprep.subr.bf16.mxu0 %v6287_v5  ;;  %v6290_v6 = vld [vmem:[%s7915_s3 + $0x1f4] ss:$8 sps:$4 sm:$0xff]  }
 0x342   :  { %v1730_v11 = vmul.f32 0.03125, %v1729_v9  ;;  %v1731_v12 = vmul.f32 %v1716_v8, %v1716_v8  ;;  %v1734_v27 = vsub.f32 %v1704_v21, %v1716_v8  ;;  %v1733_v30 = vsub.f32 %v1703_v44, %v1716_v8  ;;  %v6249_v44 = vld [vmem:[%s7915_s3 + $0x70] ss:$8 sps:$4 sm:$0xff]   ;;  %v6245_v21 = vld [vmem:[%s7922_s10 + $0x8] sm:$0xff]   ;;  %v6335_v5 = vld [vmem:[%s7915_s3 + $0x134] ss:$8 sps:$4 sm:$0xff]  }
 0x343   :  { %v1735_v17 = vsub.f32 %v1705_v45, %v1716_v8  ;;  %v1736_v25 = vsub.f32 %v1706_v49, %v1716_v8  ;;  %v6257_v45 = vld [vmem:[%s7915_s3 + $0x54] ss:$8 sps:$4 sm:$0xff]   ;;  %v6291_v8 = vld [vmem:[%s7915_s3 + $0xa0] ss:$8 sps:$4 sm:$0xff]   ;;  %v6297_v9 = vld [vmem:[%s7915_s3 + $0x90] ss:$8 sps:$4 sm:$0xff]  }
 0x344   :  { %v1732_v23 = vsub.f32 %v1730_v11, %v1731_v12  ;;  %v6263_v49 = vld [vmem:[%s7915_s3 + $0x34] ss:$8 sps:$4 sm:$0xff]   ;;  %2021 = vmatpush1.bf16.msra.mxu0 %v6285_v4  ;;  %v6305_v12 = vld [vmem:[%s7915_s3 + $0x84] ss:$8 sps:$4 sm:$0xff]  }
 0x345   :  { %2022 = vmatprep.subr.bf16.mxu0 %v6293_v7  ;;  %v6299_v11 = vld [vmem:[%s7915_s3 + $0x94] ss:$8 sps:$4 sm:$0xff]  }
 0x346   :  { %v1737_v24 = vadd.f32 1e-05, %v1732_v23  ;;  %v6303_v23 = vld [vmem:[%s7915_s3 + $0x80] ss:$8 sps:$4 sm:$0xff]  }
 0x348   :  { %6765 = vrsqrt.f32 %v1737_v24  ;;  %2023 = vmatpush1.bf16.msra.mxu0 %v6291_v8  ;;  %v6311_v24 = vld [vmem:[%s7915_s3 + $0x174] ss:$8 sps:$4 sm:$0xff]  }
 0x349   :  { %2024 = vmatprep.subr.bf16.mxu0 %v6299_v11  ;;  %v6338_v11 = vld [vmem:[%s7915_s3 + $0x124] ss:$8 sps:$4 sm:$0xff]  }
 0x34c   :  { %2025 = vmatpush1.bf16.msra.mxu0 %v6297_v9  ;;  %v6333_v9 = vld [vmem:[%s7915_s3 + $0x130] ss:$8 sps:$4 sm:$0xff]  }
 0x34d   :  { %2026 = vmatprep.subr.bf16.mxu0 %v6305_v12  ;;  %v6336_v12 = vld [vmem:[%s7915_s3 + $0x120] ss:$8 sps:$4 sm:$0xff]  }
 0x350   :  { %2027 = vmatpush1.bf16.msra.mxu0 %v6303_v23  ;;  %v6341_v23 = vld [vmem:[%s7915_s3 + $0x114] ss:$8 sps:$4 sm:$0xff]  }
 0x351   :  { %2298 = vmatprep.subr.bf16.mxu0 %v6311_v24  ;;  %v6339_v24 = vld [vmem:[%s7915_s3 + $0x110] ss:$8 sps:$4 sm:$0xff]  }
 0x355   :  { %v6766_v34 = vpop.eup %6765 }
 0x356   :  { %v1740_v10 = vmul.f32 %v6766_v34, %v1734_v27  ;;  %v1739_v35 = vmul.f32 %v6766_v34, %v1733_v30  ;;  %v1741_v31 = vmul.f32 %v6766_v34, %v1735_v17  ;;  %v1742_v54 = vmul.f32 %v6766_v34, %v1736_v25  ;;  %v6288_v17 = vld [vmem:[%s7915_s3 + $0x1f0] ss:$8 sps:$4 sm:$0xff]   ;;  %v6296_v34 = vld [vmem:[%s7915_s3 + $0x1e4] ss:$8 sps:$4 sm:$0xff]  }
 0x358   :  { %v1747_v20 = vmul.f32 %v1746_v18, %v1739_v35  ;;  %v1748_v26 = vmul.f32 %v1746_v18, %v1740_v10  ;;  %v1749_v33 = vmul.f32 %v1746_v18, %v1741_v31  ;;  %v1750_v29 = vmul.f32 %v1746_v18, %v1742_v54  ;;  %v6294_v35 = vld [vmem:[%s7915_s3 + $0x1e0] ss:$8 sps:$4 sm:$0xff]   ;;  %v6302_v31 = vld [vmem:[%s7915_s3 + $0x1d4] ss:$8 sps:$4 sm:$0xff]  }
 0x35a   :  { %v1755_v36 = vadd.f32 %v1754_v53, %v1747_v20  ;;  %v1756_v37 = vadd.f32 %v1754_v53, %v1748_v26  ;;  %v1757_v40 = vadd.f32 %v1754_v53, %v1749_v33  ;;  %v1758_v38 = vadd.f32 %v1754_v53, %v1750_v29  ;;  %v6300_v26 = vld [vmem:[%s7915_s3 + $0x1d0] ss:$8 sps:$4 sm:$0xff]   ;;  %v6308_v29 = vld [vmem:[%s7915_s3 + $0x1c4] ss:$8 sps:$4 sm:$0xff]  }
 0x35c   :  { %v1759_v22 = vmax.f32 %v1755_v36, %v1756_v37  ;;  %v1760_v39 = vmax.f32 %v1757_v40, %v1758_v38  ;;  %v6306_v40 = vld [vmem:[%s7915_s3 + $0x1c0] ss:$8 sps:$4 sm:$0xff]   ;;  %v6314_v38 = vld [vmem:[%s7915_s3 + $0x1b4] ss:$8 sps:$4 sm:$0xff]  }
 0x35e   :  { %v1761_v58 = vmax.f32 %v1759_v22, %v1760_v39 }
 0x360   :  { %v1771_v42 = vpack.c.bf16 %v1761_v58, %v1761_v58  ;;  %v6312_v58 = vld [vmem:[%s7915_s3 + $0x1b0] ss:$8 sps:$4 sm:$0xff]  }
 0x362   :  { %v1812_v43 = vsel %vm156_vm0, %v1771_v42, 0  ;;  %vm1926_vm0 = vcmask 1046528  }
 0x363   :  { %6152 = vmatpush3.bf16.msra.mxu1 %v1812_v43 }
 0x364   :  { %2143 = vmatprep.subr.bf16.mxu1 %v6251_v28  ;;  %v6320_v28 = vld [vmem:[%s7915_s3 + $0x1a4] ss:$8 sps:$4 sm:$0xff]  }
 0x366   :  { %6154 = vmatmul.mubr.msk.bf16.vlgmr.msra.gmra.mxu1 %vm1795_vm12, %v6244_v14 }
 0x367   :  { %6157 = vmatprep.mubr.msk.bf16.mxu1 %vm6828_vm3, %v6827_v32  ;;  %2144 = vmatpush1.bf16.msra.mxu1 %v6249_v44 }
 0x368   :  { %2145 = vmatprep.subr.bf16.mxu1 %v6254_v41  ;;  %v6309_v41 = vld [vmem:[%s7915_s3 + $0x170] ss:$8 sps:$4 sm:$0xff]  }
 0x36b   :  { %2146 = vmatpush1.bf16.msra.mxu1 %v6252_v60 }
 0x36c   :  { %2147 = vmatprep.subr.bf16.mxu1 %v6257_v45  ;;  %v6317_v45 = vld [vmem:[%s7915_s3 + $0x164] ss:$8 sps:$4 sm:$0xff]  }
 0x36e   :  { %6158 = vmatmul.mubr.msk.bf16.gmra.mxu1 %vm1795_vm12, %v6245_v21  ;;  %v6318_v21 = vld [vmem:[%s7915_s3 + $0x1a0] ss:$8 sps:$4 sm:$0xff]  }
 0x36f   :  { %6161 = vmatprep.mubr.msk.bf16.mxu1 %vm6828_vm3, %v6827_v32  ;;  %2148 = vmatpush1.bf16.msra.mxu1 %v6255_v46 }
 0x370   :  { %2149 = vmatprep.subr.bf16.mxu1 %v6260_v47  ;;  %v6326_v47 = vld [vmem:[%s7915_s3 + $0x194] ss:$8 sps:$4 sm:$0xff]  }
 0x373   :  { %2150 = vmatpush1.bf16.msra.mxu1 %v6258_v48 }
 0x374   :  { %2151 = vmatprep.subr.bf16.mxu1 %v6263_v49  ;;  %v6315_v49 = vld [vmem:[%s7915_s3 + $0x160] ss:$8 sps:$4 sm:$0xff]  }
 0x376   :  { %6162 = vmatmul.mubr.msk.bf16.gmra.mxu1 %vm1795_vm12, %v6246_v50 }
 0x377   :  { %6165 = vmatprep.mubr.msk.bf16.mxu1 %vm6828_vm3, %v6827_v32  ;;  %2152 = vmatpush1.bf16.msra.mxu1 %v6261_v51  ;;  %v6323_v51 = vld [vmem:[%s7915_s3 + $0x154] ss:$8 sps:$4 sm:$0xff]  }
 0x378   :  { %2153 = vmatprep.subr.bf16.mxu1 %v6269_v52  ;;  %v6324_v52 = vld [vmem:[%s7915_s3 + $0x190] ss:$8 sps:$4 sm:$0xff]  }
 0x37b   :  { %2154 = vmatpush1.bf16.msra.mxu1 %v6267_v55  ;;  %v6332_v55 = vld [vmem:[%s7915_s3 + $0x184] ss:$8 sps:$4 sm:$0xff]  }
 0x37c   :  { %2155 = vmatprep.subr.bf16.mxu1 %v6275_v56 }
 0x37e   :  { %6166 = vmatmul.mubr.msk.bf16.gmra.mxu1 %vm1795_vm12, %v6247_v57 }
 0x37f   :  { %6169 = vmatprep.mubr.msk.bf16.mxu1 %vm6828_vm3, %v6827_v32  ;;  %2156 = vmatpush1.bf16.msra.mxu1 %v6273_v59  ;;  %v6279_v32 = vld [vmem:[%s7915_s3] ss:$8 sps:$4 sm:$0xff]   ;;  %v6321_v59 = vld [vmem:[%s7915_s3 + $0x150] ss:$8 sps:$4 sm:$0xff]   ;;  %vm2691_vm3 = vcmask 15360  }
 0x380   :  { %2157 = vmatprep.subr.bf16.mxu1 %v6281_v0 }
 0x383   :  { %2158 = vmatpush1.bf16.msra.mxu1 %v6279_v32 }
 0x384   :  { %2459 = vmatprep.subr.bf16.mxu1 %v6290_v6 }
 0x386   :  { %6170 = vmatmul.mubr.msk.bf16.gmra.mxu1 %vm1795_vm12, %v6248_v61  ;;  %v6329_v61 = vld [vmem:[%s7915_s3 + $0x144] ss:$8 sps:$4 sm:$0xff]   ;;  %vm5248_vm12 = vcmask 17408  }
 0x387   :  { %2175 = vmatprep.mubr.bf16.mxu1 %v6829_v3 }
 0x426   :  { %v1848_v18 = vpop.f32.mrf.mxu1 }
 0x428   :  { %v6155_v27 = vpop.f32.mrf.mxu1 }
 0x429   :  { %v6342_v27 = vld [vmem:[%s7915_s3 + $0x100] ss:$8 sps:$4 sm:$0xff]  }
 0x42a   :  { %v1851_v30 = vpop.f32.mrf.mxu1 }
 0x42b   :  { %v1886_v25 = vpack.c.bf16 %v1851_v30, %v1848_v18  ;;  %v6344_v18 = vld [vmem:[%s7915_s3 + $0x104] ss:$8 sps:$4 sm:$0xff]  }
 0x42c   :  { %v6156_v53 = vpop.f32.mrf.mxu1 }
 0x42d   :  { %2176 = vmatmul.mubr.bf16.vlgmr.msra.gmra.mxu1 %v1886_v25 }
 0x42e   :  { %v1856_v10 = vpop.f32.mrf.mxu1  ;;  %2460 = vmatpush1.bf16.msra.mxu1 %v6288_v17  ;;  %2185 = vmatprep.mubr.bf16.mxu1 %v6829_v3 }
 0x42f   :  { %2461 = vmatprep.subr.bf16.mxu1 %v6296_v34 }
 0x430   :  { %v6159_v54 = vpop.f32.mrf.mxu1 }
 0x431   :  { %v6347_v54 = vld [vmem:[#allocation2 + $0x2e0] ss:$16 sps:$4 sm:$0xff]  }
 0x432   :  { %v1859_v20 = vpop.f32.mrf.mxu1  ;;  %2462 = vmatpush1.bf16.msra.mxu1 %v6294_v35 }
 0x433   :  { %v1887_v33 = vpack.c.bf16 %v1859_v20, %v1856_v10  ;;  %2463 = vmatprep.subr.bf16.mxu1 %v6302_v31  ;;  %v6349_v20 = vld [vmem:[#allocation2 + $0x2e4] ss:$16 sps:$4 sm:$0xff]  }
 0x434   :  { %v6160_v36 = vpop.f32.mrf.mxu1 }
 0x435   :  { %2186 = vmatmul.mubr.bf16.gmra.mxu1 %v1887_v33  ;;  %v1927_v14 = vrot.slane %v1887_v33, 1  ;;  %v6355_v33 = vld [vmem:[#allocation2 + $0x2c4] ss:$16 sps:$4 sm:$0xff]   ;;  %v6353_v36 = vld [vmem:[#allocation2 + $0x2c0] ss:$16 sps:$4 sm:$0xff]  }
 0x436   :  { %v1864_v37 = vpop.f32.mrf.mxu1  ;;  %2464 = vmatpush1.bf16.msra.mxu1 %v6300_v26  ;;  %2491 = vmatprep.mubr.bf16.mxu1 %v6829_v3 }
 0x437   :  { %2465 = vmatprep.subr.bf16.mxu1 %v6308_v29 }
 0x438   :  { %v6163_v22 = vpop.f32.mrf.mxu1 }
 0x439   :  { %v6367_v22 = vld [vmem:[#allocation2 + $0x284] ss:$16 sps:$4 sm:$0xff]  }
 0x43a   :  { %v1867_v39 = vpop.f32.mrf.mxu1  ;;  %2466 = vmatpush1.bf16.msra.mxu1 %v6306_v40 }
 0x43b   :  { %v7548_v42 = vpack.c.bf16 %v1867_v39, %v1864_v37  ;;  %2467 = vmatprep.subr.bf16.mxu1 %v6314_v38  ;;  %v6361_v37 = vld [vmem:[#allocation2 + $0x2a4] ss:$16 sps:$4 sm:$0xff]   ;;  %v6359_v38 = vld [vmem:[#allocation2 + $0x2a0] ss:$16 sps:$4 sm:$0xff]  }
 0x43c   :  { %v6164_v43 = vpop.f32.mrf.mxu1 }
 0x43d   :  { %v1928_v44 = vrot.slane %v7548_v42, 1  ;;  %v2213_v17 = vrot.slane %v7548_v42, 2 }
 0x43e   :  { %v1872_v60 = vpop.f32.mrf.mxu1  ;;  %2468 = vmatpush1.bf16.msra.mxu1 %v6312_v58  ;;  %v6365_v58 = vld [vmem:[#allocation2 + $0x280] ss:$16 sps:$4 sm:$0xff]  }
 0x43f   :  { %v1929_v46 = vsel %vm1926_vm0, %v1927_v14, %v1928_v44  ;;  %2469 = vmatprep.subr.bf16.mxu1 %v6320_v28  ;;  %v6373_v28 = vld [vmem:[#allocation2 + $0x264] ss:$16 sps:$4 sm:$0xff]   ;;  %v6371_v14 = vld [vmem:[#allocation2 + $0x260] ss:$16 sps:$4 sm:$0xff]  }
 0x440   :  { %v6167_v48 = vpop.f32.mrf.mxu1  ;;  %2045 = vmatmul.mubr.bf16.vlgmr.msra.gmra.mxu0 %v1929_v46  ;;  %v6385_v46 = vld [vmem:[#allocation2 + $0x224] ss:$16 sps:$4 sm:$0xff]  }
 0x441   :  { %2299 = vmatpush1.bf16.msra.mxu0 %v6309_v41  ;;  %2054 = vmatprep.mubr.bf16.mxu0 %v6829_v3  ;;  %v6379_v41 = vld [vmem:[#allocation2 + $0x244] ss:$16 sps:$4 sm:$0xff]  }
 0x442   :  { %v1875_v50 = vpop.f32.mrf.mxu1  ;;  %2300 = vmatprep.subr.bf16.mxu0 %v6317_v45  ;;  %2470 = vmatpush1.bf16.msra.mxu1 %v6318_v21  ;;  %v6377_v45 = vld [vmem:[#allocation2 + $0x240] ss:$16 sps:$4 sm:$0xff]  }
 0x443   :  { %2471 = vmatprep.subr.bf16.mxu1 %v6326_v47  ;;  %v1889_v57 = vpack.c.bf16 %v1875_v50, %v1872_v60 }
 0x444   :  { %v6168_v56 = vpop.f32.mrf.mxu1 }
 0x445   :  { %2301 = vmatpush1.bf16.msra.mxu0 %v6315_v49  ;;  %v2374_v32 = vrot.slane %v1889_v57, 3  ;;  %v2214_v30 = vrot.slane %v1889_v57, 2  ;;  %v6383_v49 = vld [vmem:[#allocation2 + $0x220] ss:$16 sps:$4 sm:$0xff]   ;;  %v6397_v57 = vld [vmem:[#allocation2 + $0x3e4] ss:$16 sps:$4 sm:$0xff]  }
 0x446   :  { %2302 = vmatprep.subr.bf16.mxu0 %v6323_v51  ;;  %2472 = vmatpush1.bf16.msra.mxu1 %v6324_v52  ;;  %v1880_v62 = vpop.f32.mrf.mxu1  ;;  %v6391_v51 = vld [vmem:[#allocation2 + $0x204] ss:$16 sps:$4 sm:$0xff]   ;;  %v6389_v56 = vld [vmem:[#allocation2 + $0x200] ss:$16 sps:$4 sm:$0xff]  }
 0x447   :  { %v1890_v0 = vpack.c.bf16 %v1880_v62, %v1880_v62  ;;  %2473 = vmatprep.subr.bf16.mxu1 %v6332_v55  ;;  %v6395_v62 = vld [vmem:[#allocation2 + $0x3e0] ss:$16 sps:$4 sm:$0xff]  }
 0x448   :  { %2055 = vmatmul.mubr.bf16.gmra.mxu0 %v1928_v44  ;;  %v6171_v1 = vpop.f32.mrf.mxu1 }
 0x449   :  { %2303 = vmatpush1.bf16.msra.mxu0 %v6321_v59  ;;  %v2375_v4 = vrot.slane %v1890_v0, 3  ;;  %2330 = vmatprep.mubr.bf16.mxu0 %v6829_v3  ;;  %v6401_v1 = vld [vmem:[#allocation2 + $0x3c0] ss:$16 sps:$4 sm:$0xff]  }
 0x44a   :  { %2304 = vmatprep.subr.bf16.mxu0 %v6329_v61  ;;  %2474 = vmatpush1.bf16.msra.mxu1 %v6330_v63  ;;  %v1883_v6 = vpop.f32.mrf.mxu1  ;;  %v6403_v63 = vld [vmem:[#allocation2 + $0x3c4] ss:$16 sps:$4 sm:$0xff]  }
 0x44b   :  { %v2376_v7 = vsel %vm157_vm1, %v2374_v32, %v2375_v4  ;;  %vm2212_vm1 = vcmask 1045504   ;;  %3217 = vmatprep.subr.bf16.mxu1 %v6349_v20  ;;  %v7645_v6 = vld [vmem:[%s7919_s7] sm:$0x77] }
 0x44c   :  { %v6172_v8 = vpop.f32.mrf.mxu1  ;;  %v2215_v25 = vsel %vm2212_vm1, %v2213_v17, %v2214_v30  ;;  %v6421_v17 = vld [vmem:[#allocation2 + $0x364] ss:$16 sps:$4 sm:$0xff]  }
 0x44d   :  { %2305 = vmatpush1.bf16.msra.mxu0 %v6327_v2  ;;  %2492 = vmatmul.mubr.bf16.vlgmr.msra.gmra.mxu1 %v2376_v7  ;;  %v6409_v2 = vld [vmem:[#allocation2 + $0x3a4] ss:$16 sps:$4 sm:$0xff]   ;;  %v6407_v7 = vld [vmem:[#allocation2 + $0x3a0] ss:$16 sps:$4 sm:$0xff]  }
 0x44e   :  { %2306 = vmatprep.subr.bf16.mxu0 %v6335_v5  ;;  %2501 = vmatprep.mubr.bf16.mxu1 %v6829_v3  ;;  %v7640_v5 = vsub.s32 4, %v6950_v15  ;;  %v6415_v8 = vld [vmem:[#allocation2 + $0x384] ss:$16 sps:$4 sm:$0xff]  }
 0x44f   :  { %3218 = vmatpush1.bf16.msra.mxu1 %v6347_v54 }
 0x450   :  { %3219 = vmatprep.subr.bf16.mxu1 %v6355_v33 }
 0x451   :  { %2307 = vmatpush1.bf16.msra.mxu0 %v6333_v9 }
 0x452   :  { %2308 = vmatprep.subr.bf16.mxu0 %v6338_v11 }
 0x453   :  { %3220 = vmatpush1.bf16.msra.mxu1 %v6353_v36 }
 0x454   :  { %3221 = vmatprep.subr.bf16.mxu1 %v6361_v37 }
 0x455   :  { %2309 = vmatpush1.bf16.msra.mxu0 %v6336_v12  ;;  %2502 = vmatmul.mubr.bf16.gmra.mxu1 %v2375_v4  ;;  %v2521_v12 = vrot.slane %v7645_v6, %v6953_v16 }
 0x456   :  { %2310 = vmatprep.subr.bf16.mxu0 %v6341_v23  ;;  %v2525_v23 = vrot.slane %v7645_v6, %v7640_v5 }
 0x457   :  { %3222 = vmatpush1.bf16.msra.mxu1 %v6359_v38 }
 0x458   :  { %3223 = vmatprep.subr.bf16.mxu1 %v6367_v22  ;;  %v2535_v33 = vrot.slane %v2525_v23, %v6953_v16  ;;  %v6427_v22 = vld [vmem:[#allocation2 + $0x344] ss:$16 sps:$4 sm:$0xff]  }
 0x459   :  { %2311 = vmatpush1.bf16.msra.mxu0 %v6339_v24 }
 0x45a   :  { %2312 = vmatprep.subr.bf16.mxu0 %v6344_v18 }
 0x45b   :  { %3224 = vmatpush1.bf16.msra.mxu1 %v6365_v58 }
 0x45c   :  { %3225 = vmatprep.subr.bf16.mxu1 %v6373_v28 }
 0x45d   :  { %2313 = vmatpush1.bf16.msra.mxu0 %v6342_v27  ;;  %v6413_v27 = vld [vmem:[#allocation2 + $0x380] ss:$16 sps:$4 sm:$0xff]  }
 0x45f   :  { %3226 = vmatpush1.bf16.msra.mxu1 %v6371_v14 }
 0x460   :  { %2331 = vmatmul.mubr.bf16.vlgmr.msra.gmra.mxu0 %v2215_v25  ;;  %3227 = vmatprep.subr.bf16.mxu1 %v6379_v41 }
 0x461   :  { %2340 = vmatprep.mubr.bf16.mxu0 %v6829_v3 }
 0x463   :  { %3228 = vmatpush1.bf16.msra.mxu1 %v6377_v45  ;;  %v6425_v45 = vld [vmem:[#allocation2 + $0x340] ss:$16 sps:$4 sm:$0xff]  }
 0x464   :  { %3229 = vmatprep.subr.bf16.mxu1 %v6385_v46 }
 0x467   :  { %3230 = vmatpush1.bf16.msra.mxu1 %v6383_v49 }
 0x468   :  { %2341 = vmatmul.mubr.bf16.gmra.mxu0 %v2214_v30  ;;  %3231 = vmatprep.subr.bf16.mxu1 %v6391_v51 }
 0x469   :  { %2737 = vmatprep.mubr.bf16.mxu0 %v6829_v3 }
 0x46b   :  { %3232 = vmatpush1.bf16.msra.mxu1 %v6389_v56 }
 0x46c   :  { %3233 = vmatprep.subr.bf16.mxu1 %v6397_v57 }
 0x46f   :  { %3234 = vmatpush2.bf16.msra.mxu1 %v6395_v62 }
 0x470   :  { %3235 = vmatprep.subr.bf16.mxu1 %v6403_v63 }
 0x473   :  { %3236 = vmatpush2.bf16.msra.mxu1 %v6401_v1 }
 0x474   :  { %3237 = vmatprep.subr.bf16.mxu1 %v6409_v2 }
 0x477   :  { %3238 = vmatpush2.bf16.msra.mxu1 %v6407_v7 }
 0x478   :  { %3239 = vmatprep.subr.bf16.mxu1 %v6415_v8 }
 0x47b   :  { %3240 = vmatpush2.bf16.msra.mxu1 %v6413_v27 }
 0x47c   :  { %3241 = vmatprep.subr.bf16.mxu1 %v6421_v17 }
 0x4ed   :  { %v7621_v34 = vpop.f32.mrf.mxu1 }
 0x4ef   :  { %v7623_v53 = vpop.f32.mrf.mxu1 }
 0x4f1   :  { %v7625_v10 = vpop.f32.mrf.mxu1 }
 0x4f3   :  { %v7627_v35 = vpop.f32.mrf.mxu1 }
 0x4f5   :  { %v7629_v31 = vpop.f32.mrf.mxu1 }
 0x4f7   :  { %v7631_v26 = vpop.f32.mrf.mxu1 }
 0x4f9   :  { %v2191_v29 = vpop.f32.mrf.mxu1 }
 0x4fb   :  { %v2192_v40 = vpop.f32.mrf.mxu1 }
 0x4fc   :  { %v6419_v40 = vld [vmem:[#allocation2 + $0x360] ss:$16 sps:$4 sm:$0xff]  }
 0x4fd   :  { %3242 = vmatpush2.bf16.msra.mxu1 %v6419_v40 }
 0x4fe   :  { %3243 = vmatprep.subr.bf16.mxu1 %v6427_v22 }
 0x500   :  { %v2046_v39 = vpop.f32.mrf.mxu0 }
 0x501   :  { %v2178_v9 = vadd.f32 %v7621_v34, %v2046_v39  ;;  %v2531_v34 = vrot.slane %v2521_v12, %v6953_v16  ;;  %3244 = vmatpush2.bf16.msra.mxu1 %v6425_v45 }
 0x502   :  { %v2048_v42 = vpop.f32.mrf.mxu0 }
 0x503   :  { %v2180_v24 = vadd.f32 %v7623_v53, %v2048_v42 }
 0x504   :  { %v2050_v43 = vpop.f32.mrf.mxu0 }
 0x505   :  { %v2182_v25 = vadd.f32 %v7625_v10, %v2050_v43 }
 0x506   :  { %v2052_v44 = vpop.f32.mrf.mxu0 }
 0x507   :  { %v2184_v53 = vadd.f32 %v7627_v35, %v2052_v44 }
 0x508   :  { %v7633_v60 = vpop.f32.mrf.mxu0 }
 0x509   :  { %v2188_v10 = vadd.f32 %v7629_v31, %v7633_v60 }
 0x50a   :  { %v7635_v21 = vpop.f32.mrf.mxu0 }
 0x50b   :  { %v2190_v14 = vadd.f32 %v7631_v26, %v7635_v21 }
 0x50c   :  { %v2060_v47 = vpop.f32.mrf.mxu0 }
 0x50d   :  { %v2493_v48 = vpop.f32.mrf.mxu1 }
 0x50e   :  { %v2061_v50 = vpop.f32.mrf.mxu0 }
 0x50f   :  { %v2495_v52 = vpop.f32.mrf.mxu1 }
 0x511   :  { %v2497_v55 = vpop.f32.mrf.mxu1 }
 0x513   :  { %v2499_v59 = vpop.f32.mrf.mxu1 }
 0x515   :  { %v7637_v61 = vpop.f32.mrf.mxu1 }
 0x517   :  { %v2505_v32 = vpop.f32.mrf.mxu1 }
 0x519   :  { %v2507_v0 = vpop.f32.mrf.mxu1 }
 0x51b   :  { %v2508_v4 = vpop.f32.mrf.mxu1 }
 0x520   :  { %v2332_v11 = vpop.f32.mrf.mxu0 }
 0x521   :  { %v2349_v18 = vadd.f32 %v2332_v11, %v2178_v9 }
 0x522   :  { %v2334_v30 = vpop.f32.mrf.mxu0 }
 0x523   :  { %v2350_v54 = vadd.f32 %v2334_v30, %v2180_v24  ;;  %v2510_v20 = vadd.f32 %v2493_v48, %v2349_v18 }
 0x524   :  { %v2336_v29 = vpop.f32.mrf.mxu0 }
 0x525   :  { %v2511_v36 = vadd.f32 %v2495_v52, %v2350_v54  ;;  %v2351_v37 = vadd.f32 %v2336_v29, %v2182_v25  ;;  %v2536_v58 = vadd.f32 %v2531_v34, %v2510_v20 }
 0x526   :  { %v2338_v38 = vpop.f32.mrf.mxu0 }
 0x527   :  { %v2512_v39 = vadd.f32 %v2497_v55, %v2351_v37  ;;  %v2537_v42 = vadd.f32 %v2535_v33, %v2511_v36  ;;  %v2352_v28 = vadd.f32 %v2338_v38, %v2184_v53  ;;  %v2548_v49 = vmul.f32 0.01, %v2536_v58 }
 0x528   :  { %v2342_v43 = vpop.f32.mrf.mxu0  ;;  %vm2542_vm14 = vcmp.ge.f32.partialorder %v2536_v58, 0.0 }
 0x529   :  { %v2538_v41 = vadd.f32 %v2531_v34, %v2512_v39  ;;  %v2513_v46 = vadd.f32 %v2499_v59, %v2352_v28  ;;  %v2353_v47 = vadd.f32 %v2342_v43, %v2188_v10  ;;  %v2549_v50 = vmul.f32 0.01, %v2537_v42 }
 0x52a   :  { %v2344_v35 = vpop.f32.mrf.mxu0  ;;  %vm2543_vm15 = vcmp.ge.f32.partialorder %v2537_v42, 0.0  ;;  %v7662_v59 = vsel %vm2542_vm14, %v2536_v58, %v2548_v49 }
 0x52b   :  { %vm2544_vm13 = vcmp.ge.f32.partialorder %v2538_v41, 0.0  ;;  %v2550_v44 = vmul.f32 0.01, %v2538_v41  ;;  %v2354_v48 = vadd.f32 %v2344_v35, %v2190_v14  ;;  %v2539_v31 = vadd.f32 %v2535_v33, %v2513_v46 }
 0x52c   :  { %v2514_v60 = vadd.f32 %v7637_v61, %v2353_v47  ;;  %v2346_v51 = vpop.f32.mrf.mxu0  ;;  %v7664_v62 = vsel %vm2543_vm15, %v2537_v42, %v2549_v50 }
 0x52d   :  { %v2515_v52 = vadd.f32 %v2505_v32, %v2354_v48  ;;  %v2556_v26 = vsel %vm2544_vm13, %v2538_v41, %v2550_v44  ;;  %vm2545_vm2 = vcmp.ge.f32.partialorder %v2539_v31, 0.0  ;;  %v2551_v21 = vmul.f32 0.01, %v2539_v31 }
 0x52e   :  { %v2347_v55 = vpop.f32.mrf.mxu0  ;;  %v2540_v56 = vadd.f32 %v2531_v34, %v2514_v60  ;;  %v2583_v0 = vmul.f32 %v2556_v26, %v2556_v26  ;;  %v2581_v32 = vmul.f32 %v7662_v59, %v7662_v59  ;;  %v2582_v4 = vmul.f32 %v7664_v62, %v7664_v62 }
 0x52f   :  { %v2541_v57 = vadd.f32 %v2535_v33, %v2515_v52  ;;  %v2557_v63 = vsel %vm2545_vm2, %v2539_v31, %v2551_v21  ;;  %v2560_v7 = vadd.f32 %v2556_v26, %v7662_v59 }
 0x530   :  { %vm2546_vm4 = vcmp.ge.f32.partialorder %v2540_v56, 0.0  ;;  %v2552_v1 = vmul.f32 0.01, %v2540_v56  ;;  %v2584_v61 = vmul.f32 %v2557_v63, %v2557_v63  ;;  %v2570_v9 = vadd.f32 %v2557_v63, %v7664_v62 }
 0x531   :  { %vm2547_vm7 = vcmp.ge.f32.partialorder %v2541_v57, 0.0  ;;  %v2553_v2 = vmul.f32 0.01, %v2541_v57  ;;  %v2587_v24 = vadd.f32 %v2583_v0, %v2581_v32 }
 0x532   :  { %v2558_v8 = vsel %vm2546_vm4, %v2540_v56, %v2552_v1  ;;  %v2596_v17 = vadd.f32 %v2584_v61, %v2582_v4  ;;  %v7677_v1 = vsub.s32 5, %v6950_v15  ;;  %v7680_v61 = vsub.s32 6, %v6950_v15 }
 0x533   :  { %v2562_v11 = vsel %vm2561_vm5, %v2558_v8, 0.0  ;;  %v2585_v12 = vmul.f32 %v2558_v8, %v2558_v8  ;;  %v2559_v23 = vsel %vm2547_vm7, %v2541_v57, %v2553_v2  ;;  %v2622_v2 = vrot.slane %v7645_v6, %v7096_v13 }
 0x534   :  { %v2563_v18 = vadd.f32 %v2562_v11, %v2560_v7  ;;  %v2571_v27 = vsel %vm2561_vm5, %v2559_v23, 0.0  ;;  %v2586_v30 = vmul.f32 %v2559_v23, %v2559_v23  ;;  %v2626_v32 = vrot.slane %v7645_v6, %v7677_v1 }
 0x535   :  { %v2588_v25 = vsel %vm2561_vm5, %v2585_v12, 0.0  ;;  %v2572_v54 = vadd.f32 %v2571_v27, %v2570_v9  ;;  %v2642_v4 = vrot.slane %v7645_v6, %v7099_v19  ;;  %v2646_v7 = vrot.slane %v7645_v6, %v7680_v61 }
 0x536   :  { %v2564_v20 = vrot.slane %v2563_v18, 4  ;;  %v2589_v34 = vadd.f32 %v2588_v25, %v2587_v24  ;;  %v2597_v33 = vsel %vm2561_vm5, %v2586_v30, 0.0  ;;  %v2632_v9 = vrot.slane %v2622_v2, %v7096_v13  ;;  %v6428_v2 = vld [vmem:[#allocation2 + $0x348] ss:$16 sps:$4 sm:$0xff]  }
 0x537   :  { %v2573_v29 = vrot.slane %v2572_v54, 4  ;;  %v2598_v36 = vadd.f32 %v2597_v33, %v2596_v17  ;;  %v2636_v12 = vrot.slane %v2626_v32, %v7096_v13  ;;  %v2656_v30 = vrot.slane %v2646_v7, %v7099_v19  ;;  %v6431_v32 = vld [vmem:[#allocation2 + $0x320] ss:$16 sps:$4 sm:$0xff]   ;;  %v6434_v7 = vld [vmem:[#allocation2 + $0x328] ss:$16 sps:$4 sm:$0xff]  }
 0x538   :  { %v2565_v37 = vadd.f32 %v2564_v20, %v2563_v18  ;;  %v2590_v40 = vrot.slane %v2589_v34, 4  ;;  %v2652_v18 = vrot.slane %v2642_v4, %v7099_v19  ;;  %v6433_v4 = vld [vmem:[#allocation2 + $0x324] ss:$16 sps:$4 sm:$0xff]  }
 0x539   :  { %v2574_v53 = vadd.f32 %v2573_v29, %v2572_v54  ;;  %v2599_v38 = vrot.slane %v2598_v36, 4  ;;  %3245 = vmatprep.subr.bf16.mxu1 %v6433_v4  ;;  %v6506_v4 = vld [vmem:[#allocation2 + $0x1a8] ss:$16 sps:$4 sm:$0xff]  }
 0x53a   :  { %v2566_v22 = vrot.slane %v2565_v37, 2  ;;  %v2591_v39 = vadd.f32 %v2590_v40, %v2589_v34  ;;  %3246 = vmatpush2.bf16.msra.mxu1 %v6431_v32  ;;  %v6503_v32 = vld [vmem:[#allocation2 + $0x1a0] ss:$16 sps:$4 sm:$0xff]  }
 0x53b   :  { %v2575_v10 = vrot.slane %v2574_v53, 2  ;;  %v2600_v58 = vadd.f32 %v2599_v38, %v2598_v36  ;;  %v6352_v38 = vld [vmem:[#allocation2 + $0x2ec] ss:$16 sps:$4 sm:$0xff]  }
 0x53c   :  { %v2567_v42 = vadd.f32 %v2566_v22, %v2565_v37  ;;  %v2592_v28 = vrot.slane %v2591_v39, 2 }
 0x53d   :  { %v2576_v43 = vadd.f32 %v2575_v10, %v2574_v53  ;;  %v2601_v14 = vrot.slane %v2600_v58, 2  ;;  %v6350_v10 = vld [vmem:[#allocation2 + $0x2e8] ss:$16 sps:$4 sm:$0xff]  }
 0x53e   :  { %v2568_v41 = vrot.slane %v2567_v42, 1  ;;  %v2593_v45 = vadd.f32 %v2592_v28, %v2591_v39  ;;  %v6345_v39 = vld [vmem:[%s7923_s11] sm:$0xff]   ;;  %v6364_v28 = vld [vmem:[#allocation2 + $0x2ac] ss:$16 sps:$4 sm:$0xff]  }
 0x53f   :  { %v2577_v46 = vrot.slane %v2576_v43, 1  ;;  %v2602_v47 = vadd.f32 %v2601_v14, %v2600_v58  ;;  %v6358_v58 = vld [vmem:[#allocation2 + $0x2cc] ss:$16 sps:$4 sm:$0xff]   ;;  %v6362_v14 = vld [vmem:[#allocation2 + $0x2a8] ss:$16 sps:$4 sm:$0xff]  }
 0x540   :  { %v2569_v35 = vadd.f32 %v2568_v41, %v2567_v42  ;;  %v2594_v44 = vrot.slane %v2593_v45, 1  ;;  %v6356_v42 = vld [vmem:[#allocation2 + $0x2c8] ss:$16 sps:$4 sm:$0xff]   ;;  %v6370_v41 = vld [vmem:[#allocation2 + $0x28c] ss:$16 sps:$4 sm:$0xff]  }
 0x541   :  { %v2578_v48 = vadd.f32 %v2577_v46, %v2576_v43  ;;  %v2603_v49 = vrot.slane %v2602_v47, 1  ;;  %v6346_v43 = vld [vmem:[%s7923_s11 + $0x8] sm:$0xff]  }
 0x542   :  { %v2579_v50 = vmul.f32 0.055555556, %v2569_v35  ;;  %v2595_v31 = vadd.f32 %v2594_v44, %v2593_v45  ;;  %v6368_v45 = vld [vmem:[#allocation2 + $0x288] ss:$16 sps:$4 sm:$0xff]   ;;  %v6376_v46 = vld [vmem:[#allocation2 + $0x26c] ss:$16 sps:$4 sm:$0xff]  }
 0x543   :  { %v2580_v60 = vmul.f32 0.055555556, %v2578_v48  ;;  %v2604_v51 = vadd.f32 %v2603_v49, %v2602_v47  ;;  %v6374_v47 = vld [vmem:[#allocation2 + $0x268] ss:$16 sps:$4 sm:$0xff]   ;;  %v6388_v44 = vld [vmem:[#allocation2 + $0x22c] ss:$16 sps:$4 sm:$0xff]  }
 0x544   :  { %v2605_v52 = vmul.f32 0.055555556, %v2595_v31  ;;  %v2607_v26 = vmul.f32 %v2579_v50, %v2579_v50  ;;  %v2611_v8 = vsub.f32 %v7662_v59, %v2579_v50  ;;  %v6380_v35 = vld [vmem:[#allocation2 + $0x248] ss:$16 sps:$4 sm:$0xff]   ;;  %v6394_v49 = vld [vmem:[#allocation2 + $0x20c] ss:$16 sps:$4 sm:$0xff]  }
 0x545   :  { %v2606_v21 = vmul.f32 0.055555556, %v2604_v51  ;;  %v2608_v55 = vmul.f32 %v2580_v60, %v2580_v60  ;;  %v2612_v15 = vsub.f32 %v7664_v62, %v2580_v60  ;;  %v6386_v48 = vld [vmem:[#allocation2 + $0x228] ss:$16 sps:$4 sm:$0xff]   ;;  %v6400_v31 = vld [vmem:[#allocation2 + $0x3ec] ss:$16 sps:$4 sm:$0xff]  }
 0x546   :  { %v2609_v56 = vsub.f32 %v2605_v52, %v2607_v26  ;;  %v6392_v50 = vld [vmem:[#allocation2 + $0x208] ss:$16 sps:$4 sm:$0xff]   ;;  %v6406_v51 = vld [vmem:[#allocation2 + $0x3cc] ss:$16 sps:$4 sm:$0xff]  }
 0x547   :  { %v2610_v57 = vsub.f32 %v2606_v21, %v2608_v55  ;;  %v6398_v60 = vld [vmem:[#allocation2 + $0x3e8] ss:$16 sps:$4 sm:$0xff]   ;;  %v6412_v26 = vld [vmem:[#allocation2 + $0x3ac] ss:$16 sps:$4 sm:$0xff]  }
 0x548   :  { %v2613_v63 = vadd.f32 1e-05, %v2609_v56  ;;  %v6404_v52 = vld [vmem:[#allocation2 + $0x3c8] ss:$16 sps:$4 sm:$0xff]   ;;  %v6418_v55 = vld [vmem:[#allocation2 + $0x38c] ss:$16 sps:$4 sm:$0xff]  }
 0x549   :  { %v2614_v0 = vadd.f32 1e-05, %v2610_v57  ;;  %v6410_v21 = vld [vmem:[#allocation2 + $0x3a8] ss:$16 sps:$4 sm:$0xff]   ;;  %v6424_v57 = vld [vmem:[#allocation2 + $0x36c] ss:$16 sps:$4 sm:$0xff]  }
 0x54a   :  { %6767 = vrsqrt.f32 %v2613_v63  ;;  %v6416_v56 = vld [vmem:[#allocation2 + $0x388] ss:$16 sps:$4 sm:$0xff]  }
 0x54b   :  { %6769 = vrsqrt.f32 %v2614_v0  ;;  %v6422_v63 = vld [vmem:[#allocation2 + $0x368] ss:$16 sps:$4 sm:$0xff]   ;;  %v6430_v0 = vld [vmem:[#allocation2 + $0x34c] ss:$16 sps:$4 sm:$0xff]  }
 0x557   :  { %v6768_v11 = vpop.eup %6767 }
 0x558   :  { %v6770_v23 = vpop.eup %6769  ;;  %v2617_v24 = vmul.f32 %v6768_v11, %v2611_v8  ;;  %v6436_v8 = vld [vmem:[#allocation2 + $0x32c] ss:$16 sps:$4 sm:$0xff]  }
 0x559   :  { %v2618_v27 = vmul.f32 %v6770_v23, %v2612_v15  ;;  %v6442_v11 = vld [vmem:[#allocation2 + $0x30c] ss:$16 sps:$4 sm:$0xff]   ;;  %v6437_v15 = vld [vmem:[#allocation2 + $0x300] ss:$16 sps:$4 sm:$0xff]   ;;  %v6445_v23 = vld [vmem:[#allocation2 + $0xe4] ss:$16 sps:$4 sm:$0xff]  }
 0x55a   :  { %v2637_v17 = vmul.f32 %v2632_v9, %v2617_v24  ;;  %v6439_v9 = vld [vmem:[#allocation2 + $0x304] ss:$16 sps:$4 sm:$0xff]   ;;  %v6448_v24 = vld [vmem:[#allocation2 + $0xec] ss:$16 sps:$4 sm:$0xff]  }
 0x55b   :  { %v2638_v25 = vmul.f32 %v2636_v12, %v2618_v27  ;;  %v6440_v12 = vld [vmem:[#allocation2 + $0x308] ss:$16 sps:$4 sm:$0xff]   ;;  %3247 = vmatprep.subr.bf16.mxu1 %v6439_v9  ;;  %v6509_v9 = vld [vmem:[#allocation2 + $0x180] ss:$16 sps:$4 sm:$0xff]  }
 0x55c   :  { %v2657_v54 = vadd.f32 %v2652_v18, %v2637_v17  ;;  %3248 = vmatpush2.bf16.msra.mxu1 %v6437_v15  ;;  %v6517_v15 = vld [vmem:[#allocation2 + $0x164] ss:$16 sps:$4 sm:$0xff]  }
 0x55d   :  { %v2658_v6 = vadd.f32 %v2656_v30, %v2638_v25  ;;  %3619 = vmatprep.subr.bf16.mxu1 %v6445_v23  ;;  %v6515_v23 = vld [vmem:[#allocation2 + $0x160] ss:$16 sps:$4 sm:$0xff]  }
 0x55e   :  { %v2661_v20 = vrot.slane %v2657_v54, 2 }
 0x55f   :  { %v2662_v59 = vrot.slane %v2658_v6, 2 }
 0x560   :  { %v2665_v34 = vmax.f32 %v2657_v54, %v2661_v20  ;;  %v6443_v20 = vld [vmem:[#allocation2 + $0xe0] ss:$16 sps:$4 sm:$0xff]  }
 0x561   :  { %v2666_v33 = vmax.f32 %v2658_v6, %v2662_v59  ;;  %v6446_v59 = vld [vmem:[#allocation2 + $0xe8] ss:$16 sps:$4 sm:$0xff]  }
 0x562   :  { %v2669_v29 = vrot.slane %v2665_v34, 4 }
 0x563   :  { %v2670_v36 = vrot.slane %v2666_v33, 4 }
 0x564   :  { %v2673_v62 = vmax.f32 %v2665_v34, %v2669_v29  ;;  %v6454_v29 = vld [vmem:[#allocation2 + $0xcc] ss:$16 sps:$4 sm:$0xff]  }
 0x565   :  { %v2674_v37 = vmax.f32 %v2666_v33, %v2670_v36  ;;  %v6451_v33 = vld [vmem:[#allocation2 + $0xc4] ss:$16 sps:$4 sm:$0xff]   ;;  %v6449_v36 = vld [vmem:[#allocation2 + $0xc0] ss:$16 sps:$4 sm:$0xff]  }
 0x566   :  { %v2679_v40 = vpack.c.bf16 %v2673_v62, %v2673_v62  ;;  %v6452_v62 = vld [vmem:[#allocation2 + $0xc8] ss:$16 sps:$4 sm:$0xff]  }
 0x567   :  { %v2680_v53 = vpack.c.bf16 %v2674_v37, %v2674_v37  ;;  %v6457_v37 = vld [vmem:[#allocation2 + $0xa4] ss:$16 sps:$4 sm:$0xff]  }
 0x568   :  { %v2700_v22 = vsel %vm2698_vm8, %v2679_v40, 0  ;;  %v6460_v40 = vld [vmem:[#allocation2 + $0xac] ss:$16 sps:$4 sm:$0xff]  }
 0x569   :  { %5560 = vmatprep.subr.msk.bf16.mxu0 %vm2698_vm8, %v2680_v53  ;;  %v6455_v53 = vld [vmem:[#allocation2 + $0xa0] ss:$16 sps:$4 sm:$0xff]  }
 0x56a   :  { %2720 = vmatpush1.bf16.msra.mxu0 %v2700_v22  ;;  %v6463_v22 = vld [vmem:[#allocation2 + $0x84] ss:$16 sps:$4 sm:$0xff]  }
 0x56b   :  { %3258 = vmatprep.subr.bf16.mxu0 %v6352_v38  ;;  %v6458_v38 = vld [vmem:[#allocation2 + $0xa8] ss:$16 sps:$4 sm:$0xff]  }
 0x56d   :  { %5561 = vmatmul.mubr.msk.bf16.vlgmr.msra.gmra.mxu0 %vm2691_vm3, %v6345_v39  ;;  %v6466_v39 = vld [vmem:[#allocation2 + $0x8c] ss:$16 sps:$4 sm:$0xff]  }
 0x56e   :  { %2747 = vmatprep.mubr.bf16.mxu0 %v6829_v3  ;;  %3259 = vmatpush1.bf16.msra.mxu0 %v6350_v10  ;;  %v6382_v3 = vld [vmem:[#allocation2 + $0x24c] ss:$16 sps:$4 sm:$0xff]   ;;  %v6461_v10 = vld [vmem:[#allocation2 + $0x80] ss:$16 sps:$4 sm:$0xff]  }
 0x56f   :  { %3260 = vmatprep.subr.bf16.mxu0 %v6358_v58  ;;  %v6464_v58 = vld [vmem:[#allocation2 + $0x88] ss:$16 sps:$4 sm:$0xff]  }
 0x572   :  { %3261 = vmatpush1.bf16.msra.mxu0 %v6356_v42  ;;  %v6469_v42 = vld [vmem:[#allocation2 + $0x64] ss:$16 sps:$4 sm:$0xff]  }
 0x573   :  { %3262 = vmatprep.subr.bf16.mxu0 %v6364_v28  ;;  %v6472_v28 = vld [vmem:[#allocation2 + $0x6c] ss:$16 sps:$4 sm:$0xff]  }
 0x575   :  { %5562 = vmatmul.mubr.msk.bf16.gmra.mxu0 %vm2691_vm3, %v6346_v43  ;;  %v6467_v43 = vld [vmem:[#allocation2 + $0x60] ss:$16 sps:$4 sm:$0xff]  }
 0x576   :  { %3263 = vmatpush1.bf16.msra.mxu0 %v6362_v14  ;;  %v6470_v14 = vld [vmem:[#allocation2 + $0x68] ss:$16 sps:$4 sm:$0xff]  }
 0x577   :  { %3264 = vmatprep.subr.bf16.mxu0 %v6370_v41  ;;  %v6475_v41 = vld [vmem:[#allocation2 + $0x44] ss:$16 sps:$4 sm:$0xff]  }
 0x57a   :  { %3265 = vmatpush1.bf16.msra.mxu0 %v6368_v45  ;;  %v6478_v45 = vld [vmem:[#allocation2 + $0x4c] ss:$16 sps:$4 sm:$0xff]  }
 0x57b   :  { %3266 = vmatprep.subr.bf16.mxu0 %v6376_v46  ;;  %v6473_v46 = vld [vmem:[#allocation2 + $0x40] ss:$16 sps:$4 sm:$0xff]  }
 0x57e   :  { %3267 = vmatpush1.bf16.msra.mxu0 %v6374_v47  ;;  %v6476_v47 = vld [vmem:[#allocation2 + $0x48] ss:$16 sps:$4 sm:$0xff]  }
 0x57f   :  { %3268 = vmatprep.subr.bf16.mxu0 %v6382_v3  ;;  %v6481_v3 = vld [vmem:[#allocation2 + $0x24] ss:$16 sps:$4 sm:$0xff]  }
 0x582   :  { %3269 = vmatpush1.bf16.msra.mxu0 %v6380_v35  ;;  %v6484_v35 = vld [vmem:[#allocation2 + $0x2c] ss:$16 sps:$4 sm:$0xff]  }
 0x583   :  { %3270 = vmatprep.subr.bf16.mxu0 %v6388_v44  ;;  %v6479_v44 = vld [vmem:[#allocation2 + $0x20] ss:$16 sps:$4 sm:$0xff]  }
 0x586   :  { %3271 = vmatpush1.bf16.msra.mxu0 %v6386_v48  ;;  %v6482_v48 = vld [vmem:[#allocation2 + $0x28] ss:$16 sps:$4 sm:$0xff]  }
 0x587   :  { %3272 = vmatprep.subr.bf16.mxu0 %v6394_v49  ;;  %v6487_v49 = vld [vmem:[#allocation2 + $0x4] ss:$16 sps:$4 sm:$0xff]  }
 0x58a   :  { %3273 = vmatpush1.bf16.msra.mxu0 %v6392_v50  ;;  %v6490_v50 = vld [vmem:[#allocation2 + $0xc] ss:$16 sps:$4 sm:$0xff]  }
 0x58b   :  { %3274 = vmatprep.subr.bf16.mxu0 %v6400_v31  ;;  %v6485_v31 = vld [vmem:[#allocation2] ss:$16 sps:$4 sm:$0xff]  }
 0x58e   :  { %3275 = vmatpush2.bf16.msra.mxu0 %v6398_v60  ;;  %v6488_v60 = vld [vmem:[#allocation2 + $0x8] ss:$16 sps:$4 sm:$0xff]  }
 0x58f   :  { %3276 = vmatprep.subr.bf16.mxu0 %v6406_v51  ;;  %v6493_v51 = vld [vmem:[#allocation2 + $0x1e4] ss:$16 sps:$4 sm:$0xff]  }
 0x592   :  { %3277 = vmatpush2.bf16.msra.mxu0 %v6404_v52  ;;  %v6496_v52 = vld [vmem:[#allocation2 + $0x1ec] ss:$16 sps:$4 sm:$0xff]  }
 0x593   :  { %3278 = vmatprep.subr.bf16.mxu0 %v6412_v26  ;;  %v6491_v26 = vld [vmem:[#allocation2 + $0x1e0] ss:$16 sps:$4 sm:$0xff]  }
 0x596   :  { %3279 = vmatpush2.bf16.msra.mxu0 %v6410_v21  ;;  %v6494_v21 = vld [vmem:[#allocation2 + $0x1e8] ss:$16 sps:$4 sm:$0xff]  }
 0x597   :  { %3280 = vmatprep.subr.bf16.mxu0 %v6418_v55  ;;  %v6499_v55 = vld [vmem:[#allocation2 + $0x1c4] ss:$16 sps:$4 sm:$0xff]  }
 0x59a   :  { %3281 = vmatpush2.bf16.msra.mxu0 %v6416_v56  ;;  %v6502_v56 = vld [vmem:[#allocation2 + $0x1cc] ss:$16 sps:$4 sm:$0xff]  }
 0x59b   :  { %3282 = vmatprep.subr.bf16.mxu0 %v6424_v57  ;;  %v6497_v57 = vld [vmem:[#allocation2 + $0x1c0] ss:$16 sps:$4 sm:$0xff]  }
 0x59e   :  { %3283 = vmatpush2.bf16.msra.mxu0 %v6422_v63  ;;  %v6500_v63 = vld [vmem:[#allocation2 + $0x1c8] ss:$16 sps:$4 sm:$0xff]  }
 0x59f   :  { %3284 = vmatprep.subr.bf16.mxu0 %v6430_v0  ;;  %v6505_v0 = vld [vmem:[#allocation2 + $0x1a4] ss:$16 sps:$4 sm:$0xff]  }
 0x5a2   :  { %3285 = vmatpush2.bf16.msra.mxu0 %v6428_v2  ;;  %v6508_v2 = vld [vmem:[#allocation2 + $0x1ac] ss:$16 sps:$4 sm:$0xff]  }
 0x5a3   :  { %3286 = vmatprep.subr.bf16.mxu0 %v6436_v8  ;;  %v6514_v8 = vld [vmem:[#allocation2 + $0x18c] ss:$16 sps:$4 sm:$0xff]  }
 0x5a6   :  { %3287 = vmatpush2.bf16.msra.mxu0 %v6434_v7  ;;  %v6511_v7 = vld [vmem:[#allocation2 + $0x184] ss:$16 sps:$4 sm:$0xff]  }
 0x5a7   :  { %3288 = vmatprep.subr.bf16.mxu0 %v6442_v11  ;;  %v6512_v11 = vld [vmem:[#allocation2 + $0x188] ss:$16 sps:$4 sm:$0xff]  }
 0x5aa   :  { %3289 = vmatpush2.bf16.msra.mxu0 %v6440_v12  ;;  %v6520_v12 = vld [vmem:[#allocation2 + $0x16c] ss:$16 sps:$4 sm:$0xff]  }
 0x5ab   :  { %3660 = vmatprep.subr.bf16.mxu0 %v6448_v24  ;;  %v6518_v24 = vld [vmem:[#allocation2 + $0x168] ss:$16 sps:$4 sm:$0xff]  }
 0x62d   :  { %v2739_v18 = vpop.f32.mrf.mxu0 }
 0x62f   :  { %v2741_v27 = vpop.f32.mrf.mxu0 }
 0x631   :  { %v2743_v30 = vpop.f32.mrf.mxu0 }
 0x632   :  { %v7703_v17 = vpack.c.bf16 %v2743_v30, %v2739_v18  ;;  %v6523_v18 = vld [vmem:[#allocation2 + $0x144] ss:$16 sps:$4 sm:$0xff]  }
 0x633   :  { %v2745_v25 = vpop.f32.mrf.mxu0 }
 0x634   :  { %v2759_v54 = vpack.c.bf16 %v2745_v25, %v2741_v27  ;;  %v2893_v34 = vrot.slane %v7703_v17, 4  ;;  %v6526_v27 = vld [vmem:[#allocation2 + $0x14c] ss:$16 sps:$4 sm:$0xff]   ;;  %v6521_v25 = vld [vmem:[#allocation2 + $0x140] ss:$16 sps:$4 sm:$0xff]  }
 0x635   :  { %v7706_v30 = vpop.f32.mrf.mxu0 }
 0x636   :  { %v2894_v6 = vrot.slane %v2759_v54, 4 }
 0x638   :  { %3249 = vmatprep.mubr.bf16.mxu1 %v2894_v6  ;;  %3290 = vmatprep.mubr.bf16.mxu0 %v2894_v6  ;;  %v6529_v6 = vld [vmem:[#allocation2 + $0x124] ss:$16 sps:$4 sm:$0xff]  }
 0x639   :  { %3250 = vmatmul.mubr.bf16.vlgmr.msra.gmra.mxu1 %v2893_v34  ;;  %3291 = vmatmul.mubr.bf16.vlgmr.msra.gmra.mxu0 %v2893_v34  ;;  %v6527_v34 = vld [vmem:[#allocation2 + $0x120] ss:$16 sps:$4 sm:$0xff]  }
 0x63a   :  { %3620 = vmatpush1.bf16.msra.mxu1 %v6443_v20  ;;  %3661 = vmatpush1.bf16.msra.mxu0 %v6446_v59  ;;  %v6532_v20 = vld [vmem:[#allocation2 + $0x12c] ss:$16 sps:$4 sm:$0xff]   ;;  %v2751_v59 = vpop.f32.mrf.mxu0 }
 0x63b   :  { %3621 = vmatprep.subr.bf16.mxu1 %v6451_v33  ;;  %3662 = vmatprep.subr.bf16.mxu0 %v6454_v29  ;;  %v6530_v33 = vld [vmem:[#allocation2 + $0x128] ss:$16 sps:$4 sm:$0xff]   ;;  %v6535_v29 = vld [vmem:[#allocation2 + $0x104] ss:$16 sps:$4 sm:$0xff]  }
 0x63c   :  { %3651 = vmatprep.mubr.bf16.mxu1 %v2759_v54  ;;  %3692 = vmatprep.mubr.bf16.mxu0 %v2759_v54  ;;  %v6524_v54 = vld [vmem:[#allocation2 + $0x148] ss:$16 sps:$4 sm:$0xff]  }
 0x63e   :  { %3622 = vmatpush1.bf16.msra.mxu1 %v6449_v36  ;;  %3663 = vmatpush1.bf16.msra.mxu0 %v6452_v62  ;;  %v6538_v36 = vld [vmem:[#allocation2 + $0x10c] ss:$16 sps:$4 sm:$0xff]   ;;  %v7708_v62 = vpop.f32.mrf.mxu0 }
 0x63f   :  { %3623 = vmatprep.subr.bf16.mxu1 %v6457_v37  ;;  %3664 = vmatprep.subr.bf16.mxu0 %v6460_v40  ;;  %v6533_v37 = vld [vmem:[#allocation2 + $0x100] ss:$16 sps:$4 sm:$0xff]   ;;  %v6536_v40 = vld [vmem:[#allocation2 + $0x108] ss:$16 sps:$4 sm:$0xff]  }
 0x642   :  { %3624 = vmatpush1.bf16.msra.mxu1 %v6455_v53  ;;  %3665 = vmatpush1.bf16.msra.mxu0 %v6458_v38  ;;  %v6541_v53 = vld [vmem:[#allocation2 + $0x4e4] ss:$16 sps:$4 sm:$0xff]   ;;  %v6544_v38 = vld [vmem:[#allocation2 + $0x4ec] ss:$16 sps:$4 sm:$0xff]  }
 0x643   :  { %3625 = vmatprep.subr.bf16.mxu1 %v6463_v22  ;;  %3666 = vmatprep.subr.bf16.mxu0 %v6466_v39  ;;  %v2755_v22 = vpop.f32.mrf.mxu0  ;;  %v6539_v39 = vld [vmem:[#allocation2 + $0x4e0] ss:$16 sps:$4 sm:$0xff]  }
 0x646   :  { %3626 = vmatpush1.bf16.msra.mxu1 %v6461_v10  ;;  %3667 = vmatpush1.bf16.msra.mxu0 %v6464_v58  ;;  %v6542_v10 = vld [vmem:[#allocation2 + $0x4e8] ss:$16 sps:$4 sm:$0xff]   ;;  %v6547_v58 = vld [vmem:[#allocation2 + $0x4c4] ss:$16 sps:$4 sm:$0xff]  }
 0x647   :  { %3627 = vmatprep.subr.bf16.mxu1 %v6469_v42  ;;  %3668 = vmatprep.subr.bf16.mxu0 %v6472_v28  ;;  %v6550_v42 = vld [vmem:[#allocation2 + $0x4cc] ss:$16 sps:$4 sm:$0xff]   ;;  %v7710_v28 = vpack.c.bf16 %v2755_v22, %v2751_v59  ;;  %v6608_v59 = vld [vmem:[#allocation2 + $0x588] ss:$16 sps:$4 sm:$0xff]   ;;  %v6625_v22 = vld [vmem:[#allocation2 + $0x524] ss:$16 sps:$4 sm:$0xff]  }
 0x64a   :  { %3628 = vmatpush1.bf16.msra.mxu1 %v6467_v43  ;;  %3669 = vmatpush1.bf16.msra.mxu0 %v6470_v14  ;;  %v6545_v43 = vld [vmem:[#allocation2 + $0x4c0] ss:$16 sps:$4 sm:$0xff]   ;;  %v6548_v14 = vld [vmem:[#allocation2 + $0x4c8] ss:$16 sps:$4 sm:$0xff]  }
 0x64b   :  { %3629 = vmatprep.subr.bf16.mxu1 %v6475_v41  ;;  %3670 = vmatprep.subr.bf16.mxu0 %v6478_v45  ;;  %v6553_v41 = vld [vmem:[#allocation2 + $0x4a4] ss:$16 sps:$4 sm:$0xff]   ;;  %v6556_v45 = vld [vmem:[#allocation2 + $0x4ac] ss:$16 sps:$4 sm:$0xff]  }
 0x64e   :  { %3630 = vmatpush1.bf16.msra.mxu1 %v6473_v46  ;;  %3671 = vmatpush1.bf16.msra.mxu0 %v6476_v47  ;;  %v6551_v46 = vld [vmem:[#allocation2 + $0x4a0] ss:$16 sps:$4 sm:$0xff]   ;;  %v6554_v47 = vld [vmem:[#allocation2 + $0x4a8] ss:$16 sps:$4 sm:$0xff]  }
 0x64f   :  { %3631 = vmatprep.subr.bf16.mxu1 %v6481_v3  ;;  %3672 = vmatprep.subr.bf16.mxu0 %v6484_v35  ;;  %v6559_v3 = vld [vmem:[#allocation2 + $0x484] ss:$16 sps:$4 sm:$0xff]   ;;  %v6557_v35 = vld [vmem:[#allocation2 + $0x480] ss:$16 sps:$4 sm:$0xff]  }
 0x652   :  { %3632 = vmatpush1.bf16.msra.mxu1 %v6479_v44  ;;  %3673 = vmatpush1.bf16.msra.mxu0 %v6482_v48  ;;  %v6560_v44 = vld [vmem:[#allocation2 + $0x488] ss:$16 sps:$4 sm:$0xff]   ;;  %v6565_v48 = vld [vmem:[#allocation2 + $0x464] ss:$16 sps:$4 sm:$0xff]  }
 0x653   :  { %3633 = vmatprep.subr.bf16.mxu1 %v6487_v49  ;;  %3674 = vmatprep.subr.bf16.mxu0 %v6490_v50  ;;  %v6568_v49 = vld [vmem:[#allocation2 + $0x46c] ss:$16 sps:$4 sm:$0xff]   ;;  %v6563_v50 = vld [vmem:[#allocation2 + $0x460] ss:$16 sps:$4 sm:$0xff]  }
 0x656   :  { %3634 = vmatpush1.bf16.msra.mxu1 %v6485_v31  ;;  %3675 = vmatpush1.bf16.msra.mxu0 %v6488_v60  ;;  %v6566_v31 = vld [vmem:[#allocation2 + $0x468] ss:$16 sps:$4 sm:$0xff]   ;;  %v6571_v60 = vld [vmem:[#allocation2 + $0x444] ss:$16 sps:$4 sm:$0xff]  }
 0x657   :  { %3635 = vmatprep.subr.bf16.mxu1 %v6493_v51  ;;  %3676 = vmatprep.subr.bf16.mxu0 %v6496_v52  ;;  %v6574_v51 = vld [vmem:[#allocation2 + $0x44c] ss:$16 sps:$4 sm:$0xff]   ;;  %v6569_v52 = vld [vmem:[#allocation2 + $0x440] ss:$16 sps:$4 sm:$0xff]  }
 0x65a   :  { %3636 = vmatpush2.bf16.msra.mxu1 %v6491_v26  ;;  %3677 = vmatpush2.bf16.msra.mxu0 %v6494_v21  ;;  %v6572_v26 = vld [vmem:[#allocation2 + $0x448] ss:$16 sps:$4 sm:$0xff]   ;;  %v6577_v21 = vld [vmem:[#allocation2 + $0x424] ss:$16 sps:$4 sm:$0xff]  }
 0x65b   :  { %3637 = vmatprep.subr.bf16.mxu1 %v6499_v55  ;;  %3678 = vmatprep.subr.bf16.mxu0 %v6502_v56  ;;  %v6580_v55 = vld [vmem:[#allocation2 + $0x42c] ss:$16 sps:$4 sm:$0xff]   ;;  %v6575_v56 = vld [vmem:[#allocation2 + $0x420] ss:$16 sps:$4 sm:$0xff]  }
 0x65e   :  { %3638 = vmatpush2.bf16.msra.mxu1 %v6497_v57  ;;  %3679 = vmatpush2.bf16.msra.mxu0 %v6500_v63  ;;  %v6578_v57 = vld [vmem:[#allocation2 + $0x428] ss:$16 sps:$4 sm:$0xff]   ;;  %v6583_v63 = vld [vmem:[#allocation2 + $0x404] ss:$16 sps:$4 sm:$0xff]  }
 0x65f   :  { %3639 = vmatprep.subr.bf16.mxu1 %v6505_v0  ;;  %3680 = vmatprep.subr.bf16.mxu0 %v6508_v2  ;;  %v6586_v0 = vld [vmem:[#allocation2 + $0x40c] ss:$16 sps:$4 sm:$0xff]   ;;  %v6581_v2 = vld [vmem:[#allocation2 + $0x400] ss:$16 sps:$4 sm:$0xff]  }
 0x662   :  { %3640 = vmatpush2.bf16.msra.mxu1 %v6503_v32  ;;  %3681 = vmatpush2.bf16.msra.mxu0 %v6506_v4  ;;  %v6584_v32 = vld [vmem:[#allocation2 + $0x408] ss:$16 sps:$4 sm:$0xff]   ;;  %v6589_v4 = vld [vmem:[#allocation2 + $0x5e4] ss:$16 sps:$4 sm:$0xff]  }
 0x663   :  { %3641 = vmatprep.subr.bf16.mxu1 %v6511_v7  ;;  %3682 = vmatprep.subr.bf16.mxu0 %v6514_v8  ;;  %v6592_v7 = vld [vmem:[#allocation2 + $0x5ec] ss:$16 sps:$4 sm:$0xff]   ;;  %v6587_v8 = vld [vmem:[#allocation2 + $0x5e0] ss:$16 sps:$4 sm:$0xff]  }
 0x666   :  { %3642 = vmatpush2.bf16.msra.mxu1 %v6509_v9  ;;  %3683 = vmatpush2.bf16.msra.mxu0 %v6512_v11  ;;  %v6590_v9 = vld [vmem:[#allocation2 + $0x5e8] ss:$16 sps:$4 sm:$0xff]   ;;  %v6595_v11 = vld [vmem:[#allocation2 + $0x5c4] ss:$16 sps:$4 sm:$0xff]  }
 0x667   :  { %3643 = vmatprep.subr.bf16.mxu1 %v6517_v15  ;;  %3684 = vmatprep.subr.bf16.mxu0 %v6520_v12  ;;  %v6598_v15 = vld [vmem:[#allocation2 + $0x5cc] ss:$16 sps:$4 sm:$0xff]   ;;  %v6593_v12 = vld [vmem:[#allocation2 + $0x5c0] ss:$16 sps:$4 sm:$0xff]  }
 0x66a   :  { %3644 = vmatpush2.bf16.msra.mxu1 %v6515_v23  ;;  %3685 = vmatpush2.bf16.msra.mxu0 %v6518_v24  ;;  %v6596_v23 = vld [vmem:[#allocation2 + $0x5c8] ss:$16 sps:$4 sm:$0xff]   ;;  %v6601_v24 = vld [vmem:[#allocation2 + $0x5a4] ss:$16 sps:$4 sm:$0xff]  }
 0x66b   :  { %3645 = vmatprep.subr.bf16.mxu1 %v6523_v18  ;;  %3686 = vmatprep.subr.bf16.mxu0 %v6526_v27  ;;  %v6604_v18 = vld [vmem:[#allocation2 + $0x5ac] ss:$16 sps:$4 sm:$0xff]   ;;  %v6599_v27 = vld [vmem:[#allocation2 + $0x5a0] ss:$16 sps:$4 sm:$0xff]  }
 0x66e   :  { %3646 = vmatpush2.bf16.msra.mxu1 %v6521_v25  ;;  %3687 = vmatpush2.bf16.msra.mxu0 %v6524_v54  ;;  %v6602_v25 = vld [vmem:[#allocation2 + $0x5a8] ss:$16 sps:$4 sm:$0xff]   ;;  %v6607_v54 = vld [vmem:[#allocation2 + $0x584] ss:$16 sps:$4 sm:$0xff]  }
 0x66f   :  { %3647 = vmatprep.subr.bf16.mxu1 %v6529_v6  ;;  %3688 = vmatprep.subr.bf16.mxu0 %v6532_v20  ;;  %v6610_v6 = vld [vmem:[#allocation2 + $0x58c] ss:$16 sps:$4 sm:$0xff]   ;;  %v6605_v20 = vld [vmem:[#allocation2 + $0x580] ss:$16 sps:$4 sm:$0xff]  }
 0x672   :  { %3648 = vmatpush2.bf16.msra.mxu1 %v6527_v34  ;;  %3689 = vmatpush2.bf16.msra.mxu0 %v6530_v33  ;;  %v6613_v34 = vld [vmem:[#allocation2 + $0x564] ss:$16 sps:$4 sm:$0xff]   ;;  %v6616_v33 = vld [vmem:[#allocation2 + $0x56c] ss:$16 sps:$4 sm:$0xff]  }
 0x673   :  { %3649 = vmatprep.subr.bf16.mxu1 %v6535_v29  ;;  %3690 = vmatprep.subr.bf16.mxu0 %v6538_v36  ;;  %v6611_v29 = vld [vmem:[#allocation2 + $0x560] ss:$16 sps:$4 sm:$0xff]   ;;  %v6614_v36 = vld [vmem:[#allocation2 + $0x568] ss:$16 sps:$4 sm:$0xff]  }
 0x676   :  { %3650 = vmatpush2.bf16.msra.mxu1 %v6533_v37  ;;  %3691 = vmatpush2.bf16.msra.mxu0 %v6536_v40  ;;  %v6619_v37 = vld [vmem:[#allocation2 + $0x544] ss:$16 sps:$4 sm:$0xff]   ;;  %v6622_v40 = vld [vmem:[#allocation2 + $0x54c] ss:$16 sps:$4 sm:$0xff]  }
 0x677   :  { %4086 = vmatprep.subr.bf16.mxu1 %v6541_v53  ;;  %4127 = vmatprep.subr.bf16.mxu0 %v6544_v38  ;;  %v6617_v53 = vld [vmem:[#allocation2 + $0x540] ss:$16 sps:$4 sm:$0xff]   ;;  %v6620_v38 = vld [vmem:[#allocation2 + $0x548] ss:$16 sps:$4 sm:$0xff]  }
 0x679   :  { %3652 = vmatmul.mubr.bf16.vlgmr.msra.gmra.mxu1 %v7703_v17  ;;  %3693 = vmatmul.mubr.bf16.vlgmr.msra.gmra.mxu0 %v7703_v17  ;;  %v6562_v17 = vld [vmem:[#allocation2 + $0x48c] ss:$16 sps:$4 sm:$0xff]  }
 0x67a   :  { %4087 = vmatpush1.bf16.msra.mxu1 %v6539_v39  ;;  %4128 = vmatpush1.bf16.msra.mxu0 %v6542_v10  ;;  %v6628_v39 = vld [vmem:[#allocation2 + $0x52c] ss:$16 sps:$4 sm:$0xff]   ;;  %v6623_v10 = vld [vmem:[#allocation2 + $0x520] ss:$16 sps:$4 sm:$0xff]  }
 0x67b   :  { %4088 = vmatprep.subr.bf16.mxu1 %v6547_v58  ;;  %4129 = vmatprep.subr.bf16.mxu0 %v6550_v42  ;;  %v6626_v58 = vld [vmem:[#allocation2 + $0x528] ss:$16 sps:$4 sm:$0xff]   ;;  %v6631_v42 = vld [vmem:[#allocation2 + $0x504] ss:$16 sps:$4 sm:$0xff]  }
 0x67c   :  { %4118 = vmatprep.mubr.bf16.mxu1 %v7710_v28  ;;  %4159 = vmatprep.mubr.bf16.mxu0 %v7710_v28 }
 0x67e   :  { %4089 = vmatpush1.bf16.msra.mxu1 %v6545_v43  ;;  %4130 = vmatpush1.bf16.msra.mxu0 %v6548_v14  ;;  %v6634_v43 = vld [vmem:[#allocation2 + $0x50c] ss:$16 sps:$4 sm:$0xff]   ;;  %v6629_v14 = vld [vmem:[#allocation2 + $0x500] ss:$16 sps:$4 sm:$0xff]  }
 0x67f   :  { %4090 = vmatprep.subr.bf16.mxu1 %v6553_v41  ;;  %4131 = vmatprep.subr.bf16.mxu0 %v6556_v45  ;;  %v6632_v41 = vld [vmem:[#allocation2 + $0x508] ss:$16 sps:$4 sm:$0xff]   ;;  %v6637_v45 = vld [vmem:[#allocation2 + $0x6e4] ss:$16 sps:$4 sm:$0xff]  }
 0x682   :  { %4091 = vmatpush1.bf16.msra.mxu1 %v6551_v46  ;;  %4132 = vmatpush1.bf16.msra.mxu0 %v6554_v47  ;;  %v6640_v46 = vld [vmem:[#allocation2 + $0x6ec] ss:$16 sps:$4 sm:$0xff]   ;;  %v6635_v47 = vld [vmem:[#allocation2 + $0x6e0] ss:$16 sps:$4 sm:$0xff]  }
 0x683   :  { %4092 = vmatprep.subr.bf16.mxu1 %v6559_v3  ;;  %4133 = vmatprep.subr.bf16.mxu0 %v6562_v17  ;;  %v6638_v3 = vld [vmem:[#allocation2 + $0x6e8] ss:$16 sps:$4 sm:$0xff]   ;;  %v7718_v17 = vpack.c.bf16 %v7708_v62, %v7706_v30  ;;  %v6647_v30 = vld [vmem:[#allocation2 + $0x6a0] ss:$16 sps:$4 sm:$0xff]  }
 0x684   :  { %v6650_v62 = vld [vmem:[#allocation2 + $0x6a8] ss:$16 sps:$4 sm:$0xff]  }
 0x686   :  { %4093 = vmatpush1.bf16.msra.mxu1 %v6557_v35  ;;  %4134 = vmatpush1.bf16.msra.mxu0 %v6560_v44  ;;  %v6643_v35 = vld [vmem:[#allocation2 + $0x6c4] ss:$16 sps:$4 sm:$0xff]   ;;  %v6646_v44 = vld [vmem:[#allocation2 + $0x6cc] ss:$16 sps:$4 sm:$0xff]  }
 0x687   :  { %4094 = vmatprep.subr.bf16.mxu1 %v6565_v48  ;;  %4135 = vmatprep.subr.bf16.mxu0 %v6568_v49  ;;  %v6641_v48 = vld [vmem:[#allocation2 + $0x6c0] ss:$16 sps:$4 sm:$0xff]   ;;  %v6644_v49 = vld [vmem:[#allocation2 + $0x6c8] ss:$16 sps:$4 sm:$0xff]  }
 0x68a   :  { %4095 = vmatpush1.bf16.msra.mxu1 %v6563_v50  ;;  %4136 = vmatpush1.bf16.msra.mxu0 %v6566_v31  ;;  %v4240_v50 = vrot.slane %v7710_v28, 4  ;;  %v6649_v31 = vld [vmem:[#allocation2 + $0x6a4] ss:$16 sps:$4 sm:$0xff]  }
 0x68b   :  { %4096 = vmatprep.subr.bf16.mxu1 %v6571_v60  ;;  %4137 = vmatprep.subr.bf16.mxu0 %v6574_v51  ;;  %v6652_v60 = vld [vmem:[#allocation2 + $0x6ac] ss:$16 sps:$4 sm:$0xff]   ;;  %v6655_v51 = vld [vmem:[#allocation2 + $0x684] ss:$16 sps:$4 sm:$0xff]  }
 0x68c   :  { %v6661_v28 = vld [vmem:[#allocation2 + $0x664] ss:$16 sps:$4 sm:$0xff]  }
 0x68e   :  { %4097 = vmatpush1.bf16.msra.mxu1 %v6569_v52  ;;  %4138 = vmatpush1.bf16.msra.mxu0 %v6572_v26  ;;  %v6658_v52 = vld [vmem:[#allocation2 + $0x68c] ss:$16 sps:$4 sm:$0xff]   ;;  %v6653_v26 = vld [vmem:[#allocation2 + $0x680] ss:$16 sps:$4 sm:$0xff]  }
 0x68f   :  { %4098 = vmatprep.subr.bf16.mxu1 %v6577_v21  ;;  %4139 = vmatprep.subr.bf16.mxu0 %v6580_v55  ;;  %v6656_v21 = vld [vmem:[#allocation2 + $0x688] ss:$16 sps:$4 sm:$0xff]   ;;  %v6664_v55 = vld [vmem:[#allocation2 + $0x66c] ss:$16 sps:$4 sm:$0xff]  }
 0x692   :  { %4099 = vmatpush1.bf16.msra.mxu1 %v6575_v56  ;;  %4140 = vmatpush1.bf16.msra.mxu0 %v6578_v57  ;;  %v6659_v56 = vld [vmem:[#allocation2 + $0x660] ss:$16 sps:$4 sm:$0xff]   ;;  %v6662_v57 = vld [vmem:[#allocation2 + $0x668] ss:$16 sps:$4 sm:$0xff]  }
 0x693   :  { %4100 = vmatprep.subr.bf16.mxu1 %v6583_v63  ;;  %4141 = vmatprep.subr.bf16.mxu0 %v6586_v0  ;;  %v6667_v63 = vld [vmem:[#allocation2 + $0x644] ss:$16 sps:$4 sm:$0xff]   ;;  %v6670_v0 = vld [vmem:[#allocation2 + $0x64c] ss:$16 sps:$4 sm:$0xff]  }
 0x696   :  { %4101 = vmatpush1.bf16.msra.mxu1 %v6581_v2  ;;  %4142 = vmatpush1.bf16.msra.mxu0 %v6584_v32  ;;  %v6665_v2 = vld [vmem:[#allocation2 + $0x640] ss:$16 sps:$4 sm:$0xff]   ;;  %v6668_v32 = vld [vmem:[#allocation2 + $0x648] ss:$16 sps:$4 sm:$0xff]  }
 0x697   :  { %4102 = vmatprep.subr.bf16.mxu1 %v6589_v4  ;;  %4143 = vmatprep.subr.bf16.mxu0 %v6592_v7  ;;  %v6673_v4 = vld [vmem:[#allocation2 + $0x624] ss:$16 sps:$4 sm:$0xff]   ;;  %v6676_v7 = vld [vmem:[#allocation2 + $0x62c] ss:$16 sps:$4 sm:$0xff]  }
 0x69a   :  { %4103 = vmatpush2.bf16.msra.mxu1 %v6587_v8  ;;  %4144 = vmatpush2.bf16.msra.mxu0 %v6590_v9  ;;  %v6671_v8 = vld [vmem:[#allocation2 + $0x620] ss:$16 sps:$4 sm:$0xff]   ;;  %v6674_v9 = vld [vmem:[#allocation2 + $0x628] ss:$16 sps:$4 sm:$0xff]  }
 0x69b   :  { %4104 = vmatprep.subr.bf16.mxu1 %v6595_v11  ;;  %4145 = vmatprep.subr.bf16.mxu0 %v6598_v15  ;;  %v6679_v11 = vld [vmem:[#allocation2 + $0x604] ss:$16 sps:$4 sm:$0xff]   ;;  %v6682_v15 = vld [vmem:[#allocation2 + $0x60c] ss:$16 sps:$4 sm:$0xff]  }
 0x69e   :  { %4105 = vmatpush2.bf16.msra.mxu1 %v6593_v12  ;;  %4146 = vmatpush2.bf16.msra.mxu0 %v6596_v23  ;;  %v6677_v12 = vld [vmem:[#allocation2 + $0x600] ss:$16 sps:$4 sm:$0xff]   ;;  %v6680_v23 = vld [vmem:[#allocation2 + $0x608] ss:$16 sps:$4 sm:$0xff]  }
 0x69f   :  { %4106 = vmatprep.subr.bf16.mxu1 %v6601_v24  ;;  %4147 = vmatprep.subr.bf16.mxu0 %v6604_v18  ;;  %v6685_v24 = vld [vmem:[#allocation2 + $0x7e4] ss:$16 sps:$4 sm:$0xff]   ;;  %v6688_v18 = vld [vmem:[#allocation2 + $0x7ec] ss:$16 sps:$4 sm:$0xff]  }
 0x6a2   :  { %4107 = vmatpush2.bf16.msra.mxu1 %v6599_v27  ;;  %4148 = vmatpush2.bf16.msra.mxu0 %v6602_v25  ;;  %v6683_v27 = vld [vmem:[#allocation2 + $0x7e0] ss:$16 sps:$4 sm:$0xff]   ;;  %v6686_v25 = vld [vmem:[#allocation2 + $0x7e8] ss:$16 sps:$4 sm:$0xff]  }
 0x6a3   :  { %4108 = vmatprep.subr.bf16.mxu1 %v6607_v54  ;;  %4149 = vmatprep.subr.bf16.mxu0 %v6610_v6  ;;  %v6691_v54 = vld [vmem:[#allocation2 + $0x7c4] ss:$16 sps:$4 sm:$0xff]   ;;  %v6694_v6 = vld [vmem:[#allocation2 + $0x7cc] ss:$16 sps:$4 sm:$0xff]  }
 0x6a6   :  { %4109 = vmatpush2.bf16.msra.mxu1 %v6605_v20  ;;  %4150 = vmatpush2.bf16.msra.mxu0 %v6608_v59  ;;  %v6689_v20 = vld [vmem:[#allocation2 + $0x7c0] ss:$16 sps:$4 sm:$0xff]   ;;  %v6692_v59 = vld [vmem:[#allocation2 + $0x7c8] ss:$16 sps:$4 sm:$0xff]  }
 0x6a7   :  { %4110 = vmatprep.subr.bf16.mxu1 %v6613_v34  ;;  %4151 = vmatprep.subr.bf16.mxu0 %v6616_v33  ;;  %v6697_v34 = vld [vmem:[#allocation2 + $0x7a4] ss:$16 sps:$4 sm:$0xff]   ;;  %v6700_v33 = vld [vmem:[#allocation2 + $0x7ac] ss:$16 sps:$4 sm:$0xff]  }
 0x6aa   :  { %4111 = vmatpush2.bf16.msra.mxu1 %v6611_v29  ;;  %4152 = vmatpush2.bf16.msra.mxu0 %v6614_v36  ;;  %v6695_v29 = vld [vmem:[#allocation2 + $0x7a0] ss:$16 sps:$4 sm:$0xff]   ;;  %v6698_v36 = vld [vmem:[#allocation2 + $0x7a8] ss:$16 sps:$4 sm:$0xff]  }
 0x6ab   :  { %4112 = vmatprep.subr.bf16.mxu1 %v6619_v37  ;;  %4153 = vmatprep.subr.bf16.mxu0 %v6622_v40  ;;  %v6703_v37 = vld [vmem:[#allocation2 + $0x784] ss:$16 sps:$4 sm:$0xff]   ;;  %v6706_v40 = vld [vmem:[#allocation2 + $0x78c] ss:$16 sps:$4 sm:$0xff]  }
 0x6ae   :  { %4113 = vmatpush2.bf16.msra.mxu1 %v6617_v53  ;;  %4154 = vmatpush2.bf16.msra.mxu0 %v6620_v38  ;;  %v6701_v53 = vld [vmem:[#allocation2 + $0x780] ss:$16 sps:$4 sm:$0xff]   ;;  %v6704_v38 = vld [vmem:[#allocation2 + $0x788] ss:$16 sps:$4 sm:$0xff]  }
 0x6af   :  { %4114 = vmatprep.subr.bf16.mxu1 %v6625_v22  ;;  %4155 = vmatprep.subr.bf16.mxu0 %v6628_v39  ;;  %v6709_v22 = vld [vmem:[#allocation2 + $0x764] ss:$16 sps:$4 sm:$0xff]   ;;  %v6712_v39 = vld [vmem:[#allocation2 + $0x76c] ss:$16 sps:$4 sm:$0xff]  }
 0x6b2   :  { %4115 = vmatpush2.bf16.msra.mxu1 %v6623_v10  ;;  %4156 = vmatpush2.bf16.msra.mxu0 %v6626_v58  ;;  %v6707_v10 = vld [vmem:[#allocation2 + $0x760] ss:$16 sps:$4 sm:$0xff]   ;;  %v6710_v58 = vld [vmem:[#allocation2 + $0x768] ss:$16 sps:$4 sm:$0xff]  }
 0x6b3   :  { %4116 = vmatprep.subr.bf16.mxu1 %v6631_v42  ;;  %4157 = vmatprep.subr.bf16.mxu0 %v6634_v43  ;;  %v6715_v42 = vld [vmem:[#allocation2 + $0x744] ss:$16 sps:$4 sm:$0xff]   ;;  %v6718_v43 = vld [vmem:[#allocation2 + $0x74c] ss:$16 sps:$4 sm:$0xff]  }
 0x6b6   :  { %4117 = vmatpush2.bf16.msra.mxu1 %v6629_v14  ;;  %4158 = vmatpush2.bf16.msra.mxu0 %v6632_v41  ;;  %v6713_v14 = vld [vmem:[#allocation2 + $0x740] ss:$16 sps:$4 sm:$0xff]   ;;  %v6716_v41 = vld [vmem:[#allocation2 + $0x748] ss:$16 sps:$4 sm:$0xff]  }
 0x6b7   :  { %4563 = vmatprep.subr.bf16.mxu1 %v6637_v45  ;;  %4604 = vmatprep.subr.bf16.mxu0 %v6640_v46  ;;  %v6721_v45 = vld [vmem:[#allocation2 + $0x724] ss:$16 sps:$4 sm:$0xff]   ;;  %v6724_v46 = vld [vmem:[#allocation2 + $0x72c] ss:$16 sps:$4 sm:$0xff]  }
 0x6b9   :  { %4119 = vmatmul.mubr.bf16.vlgmr.msra.gmra.mxu1 %v7718_v17  ;;  %4160 = vmatmul.mubr.bf16.vlgmr.msra.gmra.mxu0 %v7718_v17 }
 0x6ba   :  { %4564 = vmatpush1.bf16.msra.mxu1 %v6635_v47  ;;  %4605 = vmatpush1.bf16.msra.mxu0 %v6638_v3  ;;  %v6719_v47 = vld [vmem:[#allocation2 + $0x720] ss:$16 sps:$4 sm:$0xff]   ;;  %v6722_v3 = vld [vmem:[#allocation2 + $0x728] ss:$16 sps:$4 sm:$0xff]  }
 0x6bb   :  { %4565 = vmatprep.subr.bf16.mxu1 %v6643_v35  ;;  %4606 = vmatprep.subr.bf16.mxu0 %v6646_v44  ;;  %v6727_v35 = vld [vmem:[#allocation2 + $0x704] ss:$16 sps:$4 sm:$0xff]   ;;  %v6730_v44 = vld [vmem:[#allocation2 + $0x70c] ss:$16 sps:$4 sm:$0xff]  }
 0x6bc   :  { %4595 = vmatprep.mubr.bf16.mxu1 %v4240_v50  ;;  %4636 = vmatprep.mubr.bf16.mxu0 %v4240_v50  ;;  %v4239_v50 = vrot.slane %v7718_v17, 4 }
 0x6be   :  { %4566 = vmatpush1.bf16.msra.mxu1 %v6641_v48  ;;  %4607 = vmatpush1.bf16.msra.mxu0 %v6644_v49  ;;  %v6725_v48 = vld [vmem:[#allocation2 + $0x700] ss:$16 sps:$4 sm:$0xff]   ;;  %v6728_v49 = vld [vmem:[#allocation2 + $0x708] ss:$16 sps:$4 sm:$0xff]  }
 0x6bf   :  { %4567 = vmatprep.subr.bf16.mxu1 %v6649_v31  ;;  %4608 = vmatprep.subr.bf16.mxu0 %v6652_v60 }
 0x6c2   :  { %4568 = vmatpush1.bf16.msra.mxu1 %v6647_v30  ;;  %4609 = vmatpush1.bf16.msra.mxu0 %v6650_v62 }
 0x6c3   :  { %4569 = vmatprep.subr.bf16.mxu1 %v6655_v51  ;;  %4610 = vmatprep.subr.bf16.mxu0 %v6658_v52 }
 0x6c6   :  { %4570 = vmatpush1.bf16.msra.mxu1 %v6653_v26  ;;  %4611 = vmatpush1.bf16.msra.mxu0 %v6656_v21 }
 0x6c7   :  { %4571 = vmatprep.subr.bf16.mxu1 %v6661_v28  ;;  %4612 = vmatprep.subr.bf16.mxu0 %v6664_v55 }
 0x6ca   :  { %4572 = vmatpush1.bf16.msra.mxu1 %v6659_v56  ;;  %4613 = vmatpush1.bf16.msra.mxu0 %v6662_v57 }
 0x6cb   :  { %4573 = vmatprep.subr.bf16.mxu1 %v6667_v63  ;;  %4614 = vmatprep.subr.bf16.mxu0 %v6670_v0 }
 0x6ce   :  { %4574 = vmatpush1.bf16.msra.mxu1 %v6665_v2  ;;  %4615 = vmatpush1.bf16.msra.mxu0 %v6668_v32 }
 0x6cf   :  { %4575 = vmatprep.subr.bf16.mxu1 %v6673_v4  ;;  %4616 = vmatprep.subr.bf16.mxu0 %v6676_v7 }
 0x6d2   :  { %4576 = vmatpush1.bf16.msra.mxu1 %v6671_v8  ;;  %4617 = vmatpush1.bf16.msra.mxu0 %v6674_v9  ;;  %v6731_v9 = vld [vmem:[%s7924_s12 + $0x78] sm:$0xff]  }
 0x6d3   :  { %4577 = vmatprep.subr.bf16.mxu1 %v6679_v11  ;;  %4618 = vmatprep.subr.bf16.mxu0 %v6682_v15  ;;  %v6732_v11 = vld [vmem:[%s7924_s12 + $0xf8] sm:$0xff]  }
 0x6d4   :  { %v6733_v15 = vld [vmem:[%s7924_s12 + $0x38] sm:$0xff]  }
 0x6d6   :  { %4578 = vmatpush1.bf16.msra.mxu1 %v6677_v12  ;;  %4619 = vmatpush1.bf16.msra.mxu0 %v6680_v23  ;;  %v6734_v12 = vld [vmem:[%s7924_s12 + $0xb8] sm:$0xff]   ;;  %v6735_v23 = vld [vmem:[%s7924_s12 + $0x70] sm:$0xff]  }
 0x6d7   :  { %4579 = vmatprep.subr.bf16.mxu1 %v6685_v24  ;;  %4620 = vmatprep.subr.bf16.mxu0 %v6688_v18  ;;  %v6736_v24 = vld [vmem:[%s7924_s12 + $0xf0] sm:$0xff]  }
 0x6d8   :  { %v6737_v18 = vld [vmem:[%s7924_s12 + $0x30] sm:$0xff]  }
 0x6da   :  { %4580 = vmatpush2.bf16.msra.mxu1 %v6683_v27  ;;  %4621 = vmatpush2.bf16.msra.mxu0 %v6686_v25  ;;  %v6738_v27 = vld [vmem:[%s7924_s12 + $0xb0] sm:$0xff]   ;;  %v6739_v25 = vld [vmem:[%s7924_s12 + $0x68] sm:$0xff]  }
 0x6db   :  { %4581 = vmatprep.subr.bf16.mxu1 %v6691_v54  ;;  %4622 = vmatprep.subr.bf16.mxu0 %v6694_v6  ;;  %v6740_v54 = vld [vmem:[%s7924_s12 + $0xe8] sm:$0xff]  }
 0x6dc   :  { %v6741_v6 = vld [vmem:[%s7924_s12 + $0x28] sm:$0xff]  }
 0x6de   :  { %4582 = vmatpush2.bf16.msra.mxu1 %v6689_v20  ;;  %4623 = vmatpush2.bf16.msra.mxu0 %v6692_v59  ;;  %v6742_v20 = vld [vmem:[%s7924_s12 + $0xa8] sm:$0xff]   ;;  %v6743_v59 = vld [vmem:[%s7924_s12 + $0x60] sm:$0xff]  }
 0x6df   :  { %4583 = vmatprep.subr.bf16.mxu1 %v6697_v34  ;;  %4624 = vmatprep.subr.bf16.mxu0 %v6700_v33  ;;  %v6744_v34 = vld [vmem:[%s7924_s12 + $0xe0] sm:$0xff]  }
 0x6e0   :  { %v6745_v33 = vld [vmem:[%s7924_s12 + $0x20] sm:$0xff]  }
 0x6e2   :  { %4584 = vmatpush2.bf16.msra.mxu1 %v6695_v29  ;;  %4625 = vmatpush2.bf16.msra.mxu0 %v6698_v36  ;;  %v6746_v29 = vld [vmem:[%s7924_s12 + $0xa0] sm:$0xff]   ;;  %v6747_v36 = vld [vmem:[%s7924_s12 + $0x58] sm:$0xff]  }
 0x6e3   :  { %4585 = vmatprep.subr.bf16.mxu1 %v6703_v37  ;;  %4626 = vmatprep.subr.bf16.mxu0 %v6706_v40  ;;  %v6748_v37 = vld [vmem:[%s7924_s12 + $0xd8] sm:$0xff]  }
 0x6e4   :  { %v6749_v40 = vld [vmem:[%s7924_s12 + $0x18] sm:$0xff]  }
 0x6e6   :  { %4586 = vmatpush2.bf16.msra.mxu1 %v6701_v53  ;;  %4627 = vmatpush2.bf16.msra.mxu0 %v6704_v38  ;;  %v6750_v53 = vld [vmem:[%s7924_s12 + $0x98] sm:$0xff]   ;;  %v6751_v38 = vld [vmem:[%s7924_s12 + $0x50] sm:$0xff]  }
 0x6e7   :  { %4587 = vmatprep.subr.bf16.mxu1 %v6709_v22  ;;  %4628 = vmatprep.subr.bf16.mxu0 %v6712_v39  ;;  %v6752_v22 = vld [vmem:[%s7924_s12 + $0xd0] sm:$0xff]  }
 0x6e8   :  { %v6753_v39 = vld [vmem:[%s7924_s12 + $0x10] sm:$0xff]  }
 0x6ea   :  { %4588 = vmatpush2.bf16.msra.mxu1 %v6707_v10  ;;  %4629 = vmatpush2.bf16.msra.mxu0 %v6710_v58  ;;  %v6754_v10 = vld [vmem:[%s7924_s12 + $0x90] sm:$0xff]   ;;  %v6755_v58 = vld [vmem:[%s7924_s12 + $0x48] sm:$0xff]  }
 0x6eb   :  { %4589 = vmatprep.subr.bf16.mxu1 %v6715_v42  ;;  %4630 = vmatprep.subr.bf16.mxu0 %v6718_v43  ;;  %v6756_v42 = vld [vmem:[%s7924_s12 + $0xc8] sm:$0xff]  }
 0x6ec   :  { %v6757_v43 = vld [vmem:[%s7924_s12 + $0x8] sm:$0xff]  }
 0x6ee   :  { %4590 = vmatpush2.bf16.msra.mxu1 %v6713_v14  ;;  %4631 = vmatpush2.bf16.msra.mxu0 %v6716_v41  ;;  %v6758_v14 = vld [vmem:[%s7924_s12 + $0x88] sm:$0xff]   ;;  %v6759_v41 = vld [vmem:[%s7924_s12 + $0x40] sm:$0xff]  }
 0x6ef   :  { %4591 = vmatprep.subr.bf16.mxu1 %v6721_v45  ;;  %4632 = vmatprep.subr.bf16.mxu0 %v6724_v46  ;;  %v6760_v45 = vld [vmem:[%s7924_s12 + $0xc0] sm:$0xff]  }
 0x6f0   :  { %v6761_v46 = vld [vmem:[%s7924_s12] sm:$0xff]  }
 0x6f2   :  { %4592 = vmatpush2.bf16.msra.mxu1 %v6719_v47  ;;  %4633 = vmatpush2.bf16.msra.mxu0 %v6722_v3  ;;  %v6762_v47 = vld [vmem:[%s7924_s12 + $0x80] sm:$0xff]  }
 0x6f3   :  { %4593 = vmatprep.subr.bf16.mxu1 %v6727_v35  ;;  %4634 = vmatprep.subr.bf16.mxu0 %v6730_v44 }
 0x6f6   :  { %4594 = vmatpush2.bf16.msra.mxu1 %v6725_v48  ;;  %4635 = vmatpush2.bf16.msra.mxu0 %v6728_v49 }
 0x6f7   :  { %5941 = vmatprep.subr.bf16.mxu1 %v6731_v9  ;;  %5963 = vmatprep.subr.bf16.mxu0 %v6732_v11 }
 0x6f9   :  { %4596 = vmatmul.mubr.bf16.vlgmr.msra.gmra.mxu1 %v4239_v50  ;;  %4637 = vmatmul.mubr.bf16.vlgmr.msra.gmra.mxu0 %v4239_v50  ;;  %v3251_v31 = vpop.f32.mrf.mxu1  ;;  %v3292_v60 = vpop.f32.mrf.mxu0 }
 0x6fa   :  { %5942 = vmatpush3.bf16.msra.mxu1 %v6733_v15  ;;  %5964 = vmatpush3.bf16.msra.mxu0 %v6734_v12 }
 0x6fb   :  { %v3253_v30 = vpop.f32.mrf.mxu1  ;;  %v3294_v62 = vpop.f32.mrf.mxu0  ;;  %5943 = vmatprep.subr.bf16.mxu1 %v6735_v23  ;;  %5965 = vmatprep.subr.bf16.mxu0 %v6736_v24 }
 0x6fd   :  { %v3255_v51 = vpop.f32.mrf.mxu1  ;;  %v3296_v52 = vpop.f32.mrf.mxu0 }
 0x6fe   :  { %5944 = vmatpush3.bf16.msra.mxu1 %v6737_v18  ;;  %5966 = vmatpush3.bf16.msra.mxu0 %v6738_v27 }
 0x6ff   :  { %v3256_v26 = vpop.f32.mrf.mxu1  ;;  %v3297_v21 = vpop.f32.mrf.mxu0  ;;  %5945 = vmatprep.subr.bf16.mxu1 %v6739_v25  ;;  %5967 = vmatprep.subr.bf16.mxu0 %v6740_v54 }
 0x700   :  { %v7835_v26 = vld [vmem:[%s7920_s8] sm:$0x77]  ;;  %v7840_v21 = vld [vmem:[%s7920_s8 + $0x8] sm:$0x77] }
 0x702   :  { %5946 = vmatpush3.bf16.msra.mxu1 %v6741_v6  ;;  %5968 = vmatpush3.bf16.msra.mxu0 %v6742_v20 }
 0x703   :  { %5947 = vmatprep.subr.bf16.mxu1 %v6743_v59  ;;  %5969 = vmatprep.subr.bf16.mxu0 %v6744_v34 }
 0x706   :  { %5948 = vmatpush3.bf16.msra.mxu1 %v6745_v33  ;;  %5970 = vmatpush3.bf16.msra.mxu0 %v6746_v29 }
 0x707   :  { %5949 = vmatprep.subr.bf16.mxu1 %v6747_v36  ;;  %5971 = vmatprep.subr.bf16.mxu0 %v6748_v37 }
 0x70a   :  { %5950 = vmatpush3.bf16.msra.mxu1 %v6749_v40  ;;  %5972 = vmatpush3.bf16.msra.mxu0 %v6750_v53 }
 0x70b   :  { %5951 = vmatprep.subr.bf16.mxu1 %v6751_v38  ;;  %5973 = vmatprep.subr.bf16.mxu0 %v6752_v22 }
 0x70e   :  { %5952 = vmatpush3.bf16.msra.mxu1 %v6753_v39  ;;  %5974 = vmatpush3.bf16.msra.mxu0 %v6754_v10 }
 0x70f   :  { %5953 = vmatprep.subr.bf16.mxu1 %v6755_v58  ;;  %5975 = vmatprep.subr.bf16.mxu0 %v6756_v42 }
 0x712   :  { %5954 = vmatpush3.bf16.msra.mxu1 %v6757_v43  ;;  %5976 = vmatpush3.bf16.msra.mxu0 %v6758_v14 }
 0x713   :  { %5955 = vmatprep.subr.bf16.mxu1 %v6759_v41  ;;  %5977 = vmatprep.subr.bf16.mxu0 %v6760_v45 }
 0x716   :  { %5956 = vmatpush3.bf16.msra.mxu1 %v6761_v46  ;;  %5978 = vmatpush3.bf16.msra.mxu0 %v6762_v47 }
 0x739   :  { %v3653_v28 = vpop.f32.mrf.mxu1  ;;  %v3694_v55 = vpop.f32.mrf.mxu0 }
 0x73a   :  { %v7724_v56 = vadd.f32 %v3653_v28, %v3251_v31  ;;  %v7726_v57 = vadd.f32 %v3694_v55, %v3292_v60  ;;  %v4656_v28 = vrot.slane %v7835_v26, %v6953_v16  ;;  %v4664_v55 = vrot.slane %v7840_v21, %v6953_v16 }
 0x73b   :  { %v3655_v63 = vpop.f32.mrf.mxu1  ;;  %v3696_v0 = vpop.f32.mrf.mxu0 }
 0x73c   :  { %v7728_v2 = vadd.f32 %v3655_v63, %v3253_v30  ;;  %v7730_v17 = vadd.f32 %v3696_v0, %v3294_v62  ;;  %v4676_v63 = vrot.slane %v4656_v28, %v6953_v16  ;;  %v4684_v0 = vrot.slane %v4664_v55, %v6953_v16 }
 0x73d   :  { %v3657_v32 = vpop.f32.mrf.mxu1  ;;  %v3698_v4 = vpop.f32.mrf.mxu0 }
 0x73f   :  { %v3658_v7 = vpop.f32.mrf.mxu1  ;;  %v3699_v8 = vpop.f32.mrf.mxu0 }
 0x779   :  { %v4120_v3 = vpop.f32.mrf.mxu1  ;;  %v4161_v35 = vpop.f32.mrf.mxu0 }
 0x77a   :  { %v4168_v44 = vadd.f32 %v4120_v3, %v7724_v56  ;;  %v4170_v48 = vadd.f32 %v4161_v35, %v7726_v57  ;;  %v4660_v56 = vrot.slane %v7835_v26, %v7640_v5  ;;  %v4668_v57 = vrot.slane %v7840_v21, %v7640_v5 }
 0x77b   :  { %v4122_v49 = vpop.f32.mrf.mxu1  ;;  %v4163_v50 = vpop.f32.mrf.mxu0 }
 0x77c   :  { %v4169_v31 = vadd.f32 %v4122_v49, %v7728_v2  ;;  %v4171_v60 = vadd.f32 %v4163_v50, %v7730_v17  ;;  %v4680_v8 = vrot.slane %v4660_v56, %v6953_v16  ;;  %v4688_v11 = vrot.slane %v4668_v57, %v6953_v16 }
 0x77d   :  { %v4124_v30 = vpop.f32.mrf.mxu1  ;;  %v4165_v62 = vpop.f32.mrf.mxu0 }
 0x77f   :  { %v4125_v51 = vpop.f32.mrf.mxu1  ;;  %v4166_v52 = vpop.f32.mrf.mxu0 }
 0x7b9   :  { %v4597_v2 = vpop.f32.mrf.mxu1  ;;  %v4638_v17 = vpop.f32.mrf.mxu0 }
 0x7ba   :  { %v4645_v32 = vadd.f32 %v4597_v2, %v4168_v44  ;;  %v4647_v4 = vadd.f32 %v4638_v17, %v4170_v48 }
 0x7bb   :  { %v4599_v7 = vpop.f32.mrf.mxu1  ;;  %v4640_v9 = vpop.f32.mrf.mxu0 }
 0x7bc   :  { %v4689_v15 = vadd.f32 %v4676_v63, %v4645_v32  ;;  %v4691_v12 = vadd.f32 %v4684_v0, %v4647_v4  ;;  %v4646_v23 = vadd.f32 %v4599_v7, %v4169_v31  ;;  %v4648_v24 = vadd.f32 %v4640_v9, %v4171_v60 }
 0x7bd   :  { %v4601_v18 = vpop.f32.mrf.mxu1  ;;  %v4642_v5 = vpop.f32.mrf.mxu0 }
 0x7be   :  { %vm4693_vm6 = vcmp.ge.f32.partialorder %v4689_v15, 0.0  ;;  %v4697_v27 = vmul.f32 0.01, %v4689_v15  ;;  %vm4695_vm9 = vcmp.ge.f32.partialorder %v4691_v12, 0.0  ;;  %v4699_v25 = vmul.f32 0.01, %v4691_v12 }
 0x7bf   :  { %v4690_v54 = vadd.f32 %v4680_v8, %v4646_v23  ;;  %v4692_v6 = vadd.f32 %v4688_v11, %v4648_v24  ;;  %v4602_v20 = vpop.f32.mrf.mxu1  ;;  %v4643_v59 = vpop.f32.mrf.mxu0 }
 0x7c0   :  { %v7854_v34 = vsel %vm4693_vm6, %v4689_v15, %v4697_v27  ;;  %v7856_v33 = vsel %vm4695_vm9, %v4691_v12, %v4699_v25 }
 0x7c1   :  { %v4705_v16 = vrot.slane %v7854_v34, 4  ;;  %v4733_v29 = vmul.f32 %v7854_v34, %v7854_v34  ;;  %v4717_v36 = vrot.slane %v7856_v33, 4  ;;  %v4735_v37 = vmul.f32 %v7856_v33, %v7856_v33 }
 0x7c2   :  { %vm4694_vm10 = vcmp.ge.f32.partialorder %v4690_v54, 0.0  ;;  %v4698_v40 = vmul.f32 0.01, %v4690_v54  ;;  %vm4696_vm11 = vcmp.ge.f32.partialorder %v4692_v6, 0.0  ;;  %v4700_v53 = vmul.f32 0.01, %v4692_v6 }
 0x7c3   :  { %v4706_v38 = vadd.f32 %v4705_v16, %v7854_v34  ;;  %v4737_v22 = vrot.slane %v4733_v29, 4  ;;  %v4718_v39 = vadd.f32 %v4717_v36, %v7856_v33  ;;  %v4749_v10 = vrot.slane %v4735_v37, 4 }
 0x7c4   :  { %v7866_v58 = vsel %vm4694_vm10, %v4690_v54, %v4698_v40  ;;  %v7868_v42 = vsel %vm4696_vm11, %v4692_v6, %v4700_v53 }
 0x7c5   :  { %v4707_v43 = vrot.slane %v4706_v38, 2  ;;  %v4738_v14 = vadd.f32 %v4737_v22, %v4733_v29  ;;  %v4719_v41 = vrot.slane %v4718_v39, 2  ;;  %v4750_v45 = vadd.f32 %v4749_v10, %v4735_v37 }
 0x7c6   :  { %v4711_v46 = vrot.slane %v7866_v58, 4  ;;  %v4734_v47 = vmul.f32 %v7866_v58, %v7866_v58  ;;  %v4723_v3 = vrot.slane %v7868_v42, 4  ;;  %v4736_v35 = vmul.f32 %v7868_v42, %v7868_v42 }
 0x7c7   :  { %v4708_v44 = vadd.f32 %v4707_v43, %v4706_v38  ;;  %v4739_v48 = vrot.slane %v4738_v14, 2  ;;  %v4720_v49 = vadd.f32 %v4719_v41, %v4718_v39  ;;  %v4751_v50 = vrot.slane %v4750_v45, 2 }
 0x7c8   :  { %v4712_v31 = vadd.f32 %v4711_v46, %v7866_v58  ;;  %v4743_v60 = vrot.slane %v4734_v47, 4  ;;  %v4724_v30 = vadd.f32 %v4723_v3, %v7868_v42  ;;  %v4755_v62 = vrot.slane %v4736_v35, 4 }
 0x7c9   :  { %v4709_v51 = vrot.slane %v4708_v44, 1  ;;  %v4740_v52 = vadd.f32 %v4739_v48, %v4738_v14  ;;  %v4721_v28 = vrot.slane %v4720_v49, 1  ;;  %v4752_v55 = vadd.f32 %v4751_v50, %v4750_v45 }
 0x7ca   :  { %v4713_v56 = vrot.slane %v4712_v31, 2  ;;  %v4744_v57 = vadd.f32 %v4743_v60, %v4734_v47  ;;  %v4725_v63 = vrot.slane %v4724_v30, 2  ;;  %v4756_v0 = vadd.f32 %v4755_v62, %v4736_v35 }
 0x7cb   :  { %v4710_v2 = vadd.f32 %v4709_v51, %v4708_v44  ;;  %v4741_v17 = vrot.slane %v4740_v52, 1  ;;  %v4722_v32 = vadd.f32 %v4721_v28, %v4720_v49  ;;  %v4753_v4 = vrot.slane %v4752_v55, 1 }
 0x7cc   :  { %v4714_v7 = vadd.f32 %v4713_v56, %v4712_v31  ;;  %v4745_v8 = vrot.slane %v4744_v57, 2  ;;  %v4726_v9 = vadd.f32 %v4725_v63, %v4724_v30  ;;  %v4757_v11 = vrot.slane %v4756_v0, 2 }
 0x7cd   :  { %v4729_v15 = vmul.f32 0.125, %v4710_v2  ;;  %v4742_v12 = vadd.f32 %v4741_v17, %v4740_v52  ;;  %v4731_v23 = vmul.f32 0.125, %v4722_v32  ;;  %v4754_v24 = vadd.f32 %v4753_v4, %v4752_v55 }
 0x7ce   :  { %v4715_v18 = vrot.slane %v4714_v7, 1  ;;  %v4746_v5 = vadd.f32 %v4745_v8, %v4744_v57  ;;  %v4727_v27 = vrot.slane %v4726_v9, 1  ;;  %v4758_v25 = vadd.f32 %v4757_v11, %v4756_v0 }
 0x7cf   :  { %v4761_v54 = vmul.f32 0.125, %v4742_v12  ;;  %v4765_v6 = vmul.f32 %v4729_v15, %v4729_v15  ;;  %v4763_v20 = vmul.f32 0.125, %v4754_v24  ;;  %v4767_v59 = vmul.f32 %v4731_v23, %v4731_v23 }
 0x7d0   :  { %v4716_v16 = vadd.f32 %v4715_v18, %v4714_v7  ;;  %v4747_v29 = vrot.slane %v4746_v5, 1  ;;  %v4728_v37 = vadd.f32 %v4727_v27, %v4726_v9  ;;  %v4759_v40 = vrot.slane %v4758_v25, 1 }
 0x7d1   :  { %v4769_v36 = vsub.f32 %v4761_v54, %v4765_v6  ;;  %v4771_v53 = vsub.f32 %v4763_v20, %v4767_v59  ;;  %v4792_v49 = vrot.slane %v7835_v26, %v7096_v13  ;;  %v4800_v50 = vrot.slane %v7840_v21, %v7096_v13 }
 0x7d2   :  { %v4730_v38 = vmul.f32 0.125, %v4716_v16  ;;  %v4748_v22 = vadd.f32 %v4747_v29, %v4746_v5  ;;  %v4732_v10 = vmul.f32 0.125, %v4728_v37  ;;  %v4760_v43 = vadd.f32 %v4759_v40, %v4758_v25 }
 0x7d3   :  { %v4777_v39 = vadd.f32 1e-05, %v4769_v36  ;;  %v4779_v14 = vadd.f32 1e-05, %v4771_v53  ;;  %v4832_v31 = vrot.slane %v7835_v26, %v7099_v19  ;;  %v4840_v60 = vrot.slane %v7840_v21, %v7099_v19 }
 0x7d4   :  { %v4762_v41 = vmul.f32 0.125, %v4748_v22  ;;  %v4766_v45 = vmul.f32 %v4730_v38, %v4730_v38  ;;  %v4764_v46 = vmul.f32 0.125, %v4760_v43  ;;  %v4768_v47 = vmul.f32 %v4732_v10, %v4732_v10 }
 0x7d5   :  { %6771 = vrsqrt.f32 %v4777_v39  ;;  %v4773_v30 = vsub.f32 %v7854_v34, %v4729_v15  ;;  %v4812_v62 = vrot.slane %v4792_v49, %v7096_v13  ;;  %v4775_v52 = vsub.f32 %v7856_v33, %v4731_v23 }
 0x7d6   :  { %6773 = vrsqrt.f32 %v4779_v14  ;;  %v4770_v3 = vsub.f32 %v4762_v41, %v4766_v45  ;;  %v4772_v35 = vsub.f32 %v4764_v46, %v4768_v47  ;;  %v4796_v28 = vrot.slane %v7835_v26, %v7677_v1  ;;  %v5819_v46 = vld [vmem:[%s7925_s13] ss:$0 sm:$0xff] }
 0x7d7   :  { %v4820_v55 = vrot.slane %v4800_v50, %v7096_v13  ;;  %v4804_v63 = vrot.slane %v7840_v21, %v7677_v1  ;;  %v4852_v0 = vrot.slane %v4832_v31, %v7099_v19  ;;  %v4836_v34 = vrot.slane %v7835_v26, %v7680_v61 }
 0x7d8   :  { %v4778_v44 = vadd.f32 1e-05, %v4770_v3  ;;  %v4780_v48 = vadd.f32 1e-05, %v4772_v35  ;;  %v4860_v17 = vrot.slane %v4840_v60, %v7099_v19  ;;  %v4844_v33 = vrot.slane %v7840_v21, %v7680_v61 }
 0x7d9   :  { %v4774_v4 = vsub.f32 %v7866_v58, %v4730_v38  ;;  %v4816_v7 = vrot.slane %v4796_v28, %v7096_v13  ;;  %v4776_v1 = vsub.f32 %v7868_v42, %v4732_v10  ;;  %v4824_v11 = vrot.slane %v4804_v63, %v7096_v13 }
 0x7da   :  { %6775 = vrsqrt.f32 %v4778_v44  ;;  %v4856_v26 = vrot.slane %v4836_v34, %v7099_v19  ;;  %v4864_v61 = vrot.slane %v4844_v33, %v7099_v19 }
 0x7db   :  { %6777 = vrsqrt.f32 %v4780_v48 }
 0x7e2   :  { %v6772_v51 = vpop.eup %6771 }
 0x7e3   :  { %v6774_v56 = vpop.eup %6773  ;;  %v4785_v57 = vmul.f32 %v6772_v51, %v4773_v30 }
 0x7e4   :  { %v4787_v2 = vmul.f32 %v6774_v56, %v4775_v52 }
 0x7e5   :  { %v4825_v32 = vmul.f32 %v4812_v62, %v4785_v57 }
 0x7e6   :  { %v4827_v8 = vmul.f32 %v4820_v55, %v4787_v2 }
 0x7e7   :  { %v6776_v9 = vpop.eup %6775  ;;  %v4865_v15 = vadd.f32 %v4852_v0, %v4825_v32 }
 0x7e8   :  { %v6778_v12 = vpop.eup %6777  ;;  %v4786_v23 = vmul.f32 %v6776_v9, %v4774_v4  ;;  %v4867_v24 = vadd.f32 %v4860_v17, %v4827_v8 }
 0x7e9   :  { %v4788_v18 = vmul.f32 %v6778_v12, %v4776_v1  ;;  %v4873_v21 = vrot.slane %v4865_v15, 2 }
 0x7ea   :  { %v4826_v5 = vmul.f32 %v4816_v7, %v4786_v23  ;;  %v4875_v58 = vrot.slane %v4867_v24, 2 }
 0x7eb   :  { %v4828_v27 = vmul.f32 %v4824_v11, %v4788_v18  ;;  %v4881_v25 = vmax.f32 %v4865_v15, %v4873_v21 }
 0x7ec   :  { %v4866_v54 = vadd.f32 %v4856_v26, %v4826_v5  ;;  %v4883_v6 = vmax.f32 %v4867_v24, %v4875_v58 }
 0x7ed   :  { %v4868_v20 = vadd.f32 %v4864_v61, %v4828_v27  ;;  %v4889_v13 = vrot.slane %v4881_v25, 4 }
 0x7ee   :  { %v4874_v42 = vrot.slane %v4866_v54, 2  ;;  %v4891_v29 = vrot.slane %v4883_v6, 4 }
 0x7ef   :  { %v4876_v59 = vrot.slane %v4868_v20, 2  ;;  %v4897_v53 = vmax.f32 %v4881_v25, %v4889_v13 }
 0x7f0   :  { %v4882_v16 = vmax.f32 %v4866_v54, %v4874_v42  ;;  %v4899_v22 = vmax.f32 %v4883_v6, %v4891_v29 }
 0x7f1   :  { %v4884_v36 = vmax.f32 %v4868_v20, %v4876_v59  ;;  %v4901_v43 = vpack.c.bf16 %v4897_v53, %v4897_v53 }
 0x7f2   :  { %v4890_v37 = vrot.slane %v4882_v16, 4  ;;  %v4903_v14 = vpack.c.bf16 %v4899_v22, %v4899_v22 }
 0x7f3   :  { %v4892_v40 = vrot.slane %v4884_v36, 4 }
 0x7f4   :  { %v4898_v38 = vmax.f32 %v4882_v16, %v4890_v37 }
 0x7f5   :  { %v4900_v19 = vmax.f32 %v4884_v36, %v4892_v40 }
 0x7f6   :  { %v4902_v39 = vpack.c.bf16 %v4898_v38, %v4898_v38 }
 0x7f7   :  { %v4904_v10 = vpack.c.bf16 %v4900_v19, %v4900_v19 }
 0x7f8   :  { %5200 = vmatprep.mubr.bf16.mxu1 %v4902_v39 }
 0x7f9   :  { %5240 = vmatprep.mubr.bf16.mxu0 %v4904_v10  ;;  %5201 = vmatmul.mubr.bf16.vlgmr.msra.gmra.mxu1 %v4901_v43 }
 0x7fa   :  { %5241 = vmatmul.mubr.bf16.vlgmr.msra.gmra.mxu0 %v4903_v14 }
 0x8b9   :  { %v5957_v41 = vpop.f32.mrf.mxu1 }
 0x8ba   :  { %v5979_v45 = vpop.f32.mrf.mxu0 }
 0x8bb   :  { %v5958_v47 = vpop.f32.mrf.mxu1 }
 0x8bc   :  { %v5959_v3 = vadd.f32 %v5958_v47, %v5957_v41  ;;  %v5980_v35 = vpop.f32.mrf.mxu0 }
 0x8bd   :  { %v5960_v44 = vpop.f32.mrf.mxu1  ;;  %v5981_v49 = vadd.f32 %v5980_v35, %v5979_v45 }
 0x8be   :  { %v5203_v48 = vadd.f32 %v5959_v3, %v5819_v46  ;;  %v5982_v50 = vpop.f32.mrf.mxu0 }
 0x8bf   :  { %v5961_v31 = vpop.f32.mrf.mxu1 }
 0x8c0   :  { %v5243_v60 = vadd.f32 %v5981_v49, %v5203_v48  ;;  %v5983_v30 = vpop.f32.mrf.mxu0 }
 0x8c2   :  { %5249 = vst.msk [vmem:[#allocation5] sm:$0x3] %vm5248_vm12, %v5243_v60 }
 0x8c3   :  { %6810 = shalt.err (!%p6807_p9)
}
 0x8c4   :  { %5259 = dma.vmem_to_hbm [thread:$0]  %s5257_s19, 32, %s7926_s14, [#allocation4]  }
 0x8c5   :  { %6821 = dma.done.wait [#allocation4], 32  }
 0x8c6   :  { %6822 = vsyncadd [#allocation4], 4294967264 }
 0x8c7   :  { %5263 = vsyncpa [#allocation3], 1 }
 0x8c8   :  { %5264 = vsyncpa [#allocation4], 1 }

</bundles_post_ra>
